<compile_context>
chip_gen: v7x
topology: tpu7x:2x2x1
jax: 0.10.0
libtpu: 0.0.40
codegen_flags: <defaults>
</compile_context>

<pallas_src>
import functools

import numpy as np
import jax
import jax.numpy as jnp
from jax.experimental import pallas as pl
from jax.experimental.pallas import tpu as pltpu

VMEM_SPEC = pl.BlockSpec(memory_space=pltpu.MemorySpace.VMEM)


# ---------------------- host-side constant builders ----------------------

def _make_tap_masks(B, H, W):
    """(9, 1, M) f32 validity masks for the 3x3 taps (zero padding), M = B*H*W."""
    M = B * H * W
    hh = (np.arange(M) // W) % H
    ww = np.arange(M) % W
    masks = []
    for dy in (-1, 0, 1):
        for dx in (-1, 0, 1):
            valid = ((hh + dy >= 0) & (hh + dy < H) &
                     (ww + dx >= 0) & (ww + dx < W))
            masks.append(valid.astype(np.float32))
    return jnp.asarray(np.stack(masks, 0).reshape(9, 1, M))


def _make_pool_matrix(B, H, W, d):
    """(M, Mo) matrix so that act(C, M) @ P == avg_pool2d(act, d) (floor mode)."""
    Ho, Wo = H // d, W // d
    M, Mo = B * H * W, B * Ho * Wo
    P = np.zeros((M, Mo), np.float32)
    inv = 1.0 / float(d * d)
    for b in range(B):
        for h in range(d * Ho):
            for w in range(d * Wo):
                P[(b * H + h) * W + w, (b * Ho + h // d) * Wo + w // d] = inv
    return jnp.asarray(P)


def _lin_interp_weights(n_in, d):
    """(n_in, d*n_in) 1-D bilinear (align_corners=False) upsample weights."""
    n_out = d * n_in
    Wm = np.zeros((n_in, n_out), np.float32)
    for o in range(n_out):
        c = max((o + 0.5) / d - 0.5, 0.0)
        lo = min(int(np.floor(c)), n_in - 1)
        hi = min(lo + 1, n_in - 1)
        frac = c - lo
        Wm[lo, o] += 1.0 - frac
        Wm[hi, o] += frac
    return Wm


def _make_upsample_matrix(B, H, W, d):
    """(M, Mo) matrix so that act(C, M) @ U == bilinear x d upsample, M = B*H*W."""
    blk = np.kron(_lin_interp_weights(H, d), _lin_interp_weights(W, d))
    hw, ohw = H * W, d * H * d * W
    U = np.zeros((B * hw, B * ohw), np.float32)
    for b in range(B):
        U[b * hw:(b + 1) * hw, b * ohw:(b + 1) * ohw] = blk
    return jnp.asarray(U)


# ---------------------------- parameter setup ----------------------------

def _init_conv(key, cin, cout, k):
    kw, kb = jax.random.split(key)
    if k == 1:
        w = 0.1 * jax.random.normal(kw, (cin, cout), jnp.float32)
    else:
        w = 0.1 * jax.random.normal(kw, (k, k, cin, cout), jnp.float32)
    b = 0.05 * jax.random.normal(kb, (cout,), jnp.float32)
    return w, b


def init_block(key, in_size, out_size, hidden, depth):
    ks = iter(jax.random.split(key, 4 + 4 * depth))
    p = {}
    p["into_pre"] = _init_conv(next(ks), in_size, hidden, 1)
    p["into_post"] = _init_conv(next(ks), hidden, out_size, 1)
    p["outof_pre"] = _init_conv(next(ks), out_size + hidden, hidden, 1)
    p["outof_post"] = _init_conv(next(ks), hidden, in_size, 1)
    p["into_blocks"] = [_init_conv(next(ks), hidden, hidden, 3) for _ in range(depth)]
    p["outof_blocks"] = [_init_conv(next(ks), hidden, hidden, 3) for _ in range(depth)]
    # ReZero alphas (deterministic, non-zero so the residual path is exercised)
    p["into_alphas"] = [0.1 + 0.01 * jax.random.normal(next(ks), (hidden,), jnp.float32)
                        for _ in range(depth)]
    p["outof_alphas"] = [0.1 + 0.01 * jax.random.normal(next(ks), (hidden,), jnp.float32)
                         for _ in range(depth)]
    return p


def _prepare_level(p, B, H, W, downscale):
    """Convert 'math' params to the kernel layout: transposed 1x1 weights,
    (Cout, 9*Cin) im2col 3x3 weights, (C,1) biases/alphas, pool/up matrices."""
    out_size = p["into_post"][0].shape[1]

    def t9(wb):
        w, b = wb                                # (3, 3, cin, cout)
        cin, cout = w.shape[2], w.shape[3]
        return (jnp.transpose(w, (3, 0, 1, 2)).reshape(cout, 9 * cin),
                b.reshape(-1, 1))

    opre_w, opre_b = p["outof_pre"]
    opre_wt = opre_w.T                           # (hidden, out_size + hidden)

    lv = {
        "into_pre_w": p["into_pre"][0].T,
        "into_pre_b": p["into_pre"][1].reshape(-1, 1),
        "into_post_w": p["into_post"][0].T,
        "into_post_b": p["into_post"][1].reshape(-1, 1),
        # split concat-weight:  relu(Wx @ up + Ws @ skip + b) replaces cat+conv1x1
        "outof_pre_wx": opre_wt[:, :out_size],
        "outof_pre_ws": opre_wt[:, out_size:],
        "outof_pre_b": opre_b.reshape(-1, 1),
        "outof_post_w": p["outof_post"][0].T,
        "outof_post_b": p["outof_post"][1].reshape(-1, 1),
        "into_w9": [], "into_b": [], "into_alpha": [],
        "outof_w9": [], "outof_b": [], "outof_alpha": [],
        "masks": _make_tap_masks(B, H, W),
    }
    for wb, al in zip(p["into_blocks"], p["into_alphas"]):
        w9, b = t9(wb)
        lv["into_w9"].append(w9)
        lv["into_b"].append(b)
        lv["into_alpha"].append(al.reshape(-1, 1))
    for wb, al in zip(p["outof_blocks"], p["outof_alphas"]):
        w9, b = t9(wb)
        lv["outof_w9"].append(w9)
        lv["outof_b"].append(b)
        lv["outof_alpha"].append(al.reshape(-1, 1))
    if downscale != 1:
        lv["pool"] = _make_pool_matrix(B, H, W, downscale)
        lv["up"] = _make_upsample_matrix(B, H // downscale, W // downscale, downscale)
    return lv


# ------------------------------ fused kernel ------------------------------

def _conv3x3_rezero(a, w9_ref, b_ref, alpha_ref, masks_ref, W):
    """a + alpha * relu(conv3x3(a) + b) with zero 'same' padding.  a: (C, M)."""
    C, M = a.shape
    taps = [dy * W + dx for dy in (-1, 0, 1) for dx in (-1, 0, 1)]
    pieces = []
    for t, s in enumerate(taps):
        # pixel m of the shifted tap reads pixel m + s (lane-axis rotate, XLU);
        # the precomputed mask zeroes positions that would cross a row / image
        # / batch boundary (== the conv's zero padding).
        shifted = a if s == 0 else pltpu.roll(a, shift=(-s) % M, axis=1)
        pieces.append(shifted * masks_ref[t])        # (C, M), lane-dense
    patches = jnp.concatenate(pieces, axis=0)        # (9*C, M) im2col tile
    res = jnp.dot(w9_ref[...], patches, preferred_element_type=jnp.float32)
    res = jnp.maximum(res + b_ref[...], 0.0)
    return a + alpha_ref[...] * res                  # ReZero (dropout = identity)


def _unet_kernel(treedef, level_dims, x_ref, *refs):
    out_ref = refs[-1]
    levels = jax.tree_util.tree_unflatten(treedef, refs[:-1])

    def conv1x1(w_ref, b_ref, a, relu=False):
        o = jnp.dot(w_ref[...], a, preferred_element_type=jnp.float32) + b_ref[...]
        return jnp.maximum(o, 0.0) if relu else o

    a = x_ref[...].astype(jnp.float32)
    skips = []
    # ---------------- descend: block.enter at each level ----------------
    for lv, (_, _, W) in zip(levels, level_dims):
        h = conv1x1(lv["into_pre_w"], lv["into_pre_b"], a, relu=True)
        for w9, b, al in zip(lv["into_w9"], lv["into_b"], lv["into_alpha"]):
            h = _conv3x3_rezero(h, w9, b, al, lv["masks"], W)
        skips.append(h)
        a = conv1x1(lv["into_post_w"], lv["into_post_b"], h)
        if "pool" in lv:                     # avg_pool2d as a small matmul
            a = jnp.dot(a, lv["pool"][...], preferred_element_type=jnp.float32)
    # ---------------- innermost hole = Ignore() = identity ----------------
    # ---------------- ascend: block.exit at each level ----------------
    for lv, (_, _, W), skip in zip(reversed(levels), reversed(level_dims),
                                   reversed(skips)):
        if "up" in lv:                       # bilinear x2 as a small matmul
            a = jnp.dot(a, lv["up"][...], preferred_element_type=jnp.float32)
        # relu(conv1x1(cat(a, skip)))  without materializing the concat:
        h = (jnp.dot(lv["outof_pre_wx"][...], a, preferred_element_type=jnp.float32)
             + jnp.dot(lv["outof_pre_ws"][...], skip, preferred_element_type=jnp.float32)
             + lv["outof_pre_b"][...])
        h = jnp.maximum(h, 0.0)
        for w9, b, al in zip(lv["outof_w9"], lv["outof_b"], lv["outof_alpha"]):
            h = _conv3x3_rezero(h, w9, b, al, lv["masks"], W)
        a = conv1x1(lv["outof_post_w"], lv["outof_post_b"], h)
    out_ref[...] = a.astype(out_ref.dtype)


def _estimate_cost(x2d, prep, level_dims):
    flops = 0
    for lv, (B, H, W) in zip(prep, level_dims):
        M = B * H * W
        mats = [lv["into_pre_w"], lv["into_post_w"], lv["outof_pre_wx"],
                lv["outof_pre_ws"], lv["outof_post_w"]]
        mats += lv["into_w9"] + lv["outof_w9"]
        for m in mats:
            flops += 2 * int(m.shape[0]) * int(m.shape[1]) * M
        if "pool" in lv:
            c = int(lv["into_post_w"].shape[0])
            flops += 2 * c * int(lv["pool"].shape[0]) * int(lv["pool"].shape[1])
            flops += 2 * c * int(lv["up"].shape[0]) * int(lv["up"].shape[1])
    leaves = jax.tree_util.tree_leaves(prep)
    nbytes = 4 * (2 * int(x2d.size) + sum(int(l.size) for l in leaves))
    return pl.CostEstimate(flops=int(flops), transcendentals=0,
                           bytes_accessed=int(nbytes))


def light_unet_backbone(x_nchw, blocks_params, downscale=2):
    """Fused forward of the nested (enter ... Ignore ... exit) structure.
    Accepts / returns NCHW like the PyTorch module."""
    B, C0, H, W = x_nchw.shape

    level_dims, prep = [], []
    h, w = H, W
    for p in blocks_params:
        level_dims.append((B, h, w))
        prep.append(_prepare_level(p, B, h, w, downscale))
        if downscale != 1:
            h, w = h // downscale, w // downscale

    flat, treedef = jax.tree_util.tree_flatten(prep)
    M0 = B * H * W
    # internal layout: (channels, B*H*W) -> pixels on the 128-lane axis.
    x2d = jnp.transpose(x_nchw, (1, 0, 2, 3)).reshape(C0, M0)

    # NOTE: gridless on purpose -- the whole problem is a few hundred KiB, so a
    # single fully fused kernel beats any pipelining.  For large B/H/W, tile
    # rows/batch with a "parallel" grid axis (engages v7x's 2nd TensorCore) and
    # size blocks for its 64 MiB VMEM.
    out2d = pl.pallas_call(
        functools.partial(_unet_kernel, treedef, tuple(level_dims)),
        out_shape=jax.ShapeDtypeStruct((C0, M0), x_nchw.dtype),
        in_specs=[VMEM_SPEC] * (1 + len(flat)),
        out_specs=VMEM_SPEC,
        cost_estimate=_estimate_cost(x2d, prep, level_dims),
    )(x2d, *flat)

    return jnp.transpose(out2d.reshape(C0, B, H, W), (1, 0, 2, 3))


# ----------------------------------- main -----------------------------------

if __name__ == "__main__":
    key = jax.random.PRNGKey(0)
    kparam, kx = jax.random.split(key)

    base_size = 8
    size_factors = [1, 2, 2]   # two nested LightResUNetBlocks
    hidden_size = 8
    depth = 2
    downscale = 2

    block_keys = jax.random.split(kparam, len(size_factors) - 1)
    params = [
        init_block(bk, base_size * fi, base_size * fo, hidden_size, depth)
        for bk, fi, fo in zip(block_keys, size_factors[:-1], size_factors[1:])
    ]

    # NCHW input like the PyTorch module: (batch, base_size*size_factors[0], H, W)
    x = jax.random.normal(kx, (2, base_size * size_factors[0], 16, 16), jnp.float32)

    fwd = jax.jit(lambda xin: light_unet_backbone(xin, params, downscale))
    out = fwd(x)
    jax.block_until_ready(out)

    assert out.shape == x.shape, out.shape
    assert out.dtype == jnp.float32
    print("KERNEL_OK")
</pallas_src>

<mosaic_0001>
module attributes {stable_mosaic.version = 11 : i64} {
  func.func @_unet_kernel(%arg0: memref<8x512xf32, #tpu.memory_space<vmem>>, %arg1: memref<8x1xf32, #tpu.memory_space<vmem>>, %arg2: memref<8x1xf32, #tpu.memory_space<vmem>>, %arg3: memref<8x1xf32, #tpu.memory_space<vmem>>, %arg4: memref<8x1xf32, #tpu.memory_space<vmem>>, %arg5: memref<16x1xf32, #tpu.memory_space<vmem>>, %arg6: memref<16x8xf32, #tpu.memory_space<vmem>>, %arg7: memref<8x1xf32, #tpu.memory_space<vmem>>, %arg8: memref<8x8xf32, #tpu.memory_space<vmem>>, %arg9: memref<8x72xf32, #tpu.memory_space<vmem>>, %arg10: memref<8x72xf32, #tpu.memory_space<vmem>>, %arg11: memref<9x1x512xf32, #tpu.memory_space<vmem>>, %arg12: memref<8x1xf32, #tpu.memory_space<vmem>>, %arg13: memref<8x1xf32, #tpu.memory_space<vmem>>, %arg14: memref<8x1xf32, #tpu.memory_space<vmem>>, %arg15: memref<8x1xf32, #tpu.memory_space<vmem>>, %arg16: memref<8x1xf32, #tpu.memory_space<vmem>>, %arg17: memref<8x8xf32, #tpu.memory_space<vmem>>, %arg18: memref<8x1xf32, #tpu.memory_space<vmem>>, %arg19: memref<8x8xf32, #tpu.memory_space<vmem>>, %arg20: memref<8x16xf32, #tpu.memory_space<vmem>>, %arg21: memref<8x72xf32, #tpu.memory_space<vmem>>, %arg22: memref<8x72xf32, #tpu.memory_space<vmem>>, %arg23: memref<512x128xf32, #tpu.memory_space<vmem>>, %arg24: memref<128x512xf32, #tpu.memory_space<vmem>>, %arg25: memref<8x1xf32, #tpu.memory_space<vmem>>, %arg26: memref<8x1xf32, #tpu.memory_space<vmem>>, %arg27: memref<8x1xf32, #tpu.memory_space<vmem>>, %arg28: memref<8x1xf32, #tpu.memory_space<vmem>>, %arg29: memref<16x1xf32, #tpu.memory_space<vmem>>, %arg30: memref<16x8xf32, #tpu.memory_space<vmem>>, %arg31: memref<8x1xf32, #tpu.memory_space<vmem>>, %arg32: memref<8x16xf32, #tpu.memory_space<vmem>>, %arg33: memref<8x72xf32, #tpu.memory_space<vmem>>, %arg34: memref<8x72xf32, #tpu.memory_space<vmem>>, %arg35: memref<9x1x128xf32, #tpu.memory_space<vmem>>, %arg36: memref<8x1xf32, #tpu.memory_space<vmem>>, %arg37: memref<8x1xf32, #tpu.memory_space<vmem>>, %arg38: memref<8x1xf32, #tpu.memory_space<vmem>>, %arg39: memref<8x1xf32, #tpu.memory_space<vmem>>, %arg40: memref<16x1xf32, #tpu.memory_space<vmem>>, %arg41: memref<16x8xf32, #tpu.memory_space<vmem>>, %arg42: memref<8x1xf32, #tpu.memory_space<vmem>>, %arg43: memref<8x8xf32, #tpu.memory_space<vmem>>, %arg44: memref<8x16xf32, #tpu.memory_space<vmem>>, %arg45: memref<8x72xf32, #tpu.memory_space<vmem>>, %arg46: memref<8x72xf32, #tpu.memory_space<vmem>>, %arg47: memref<128x32xf32, #tpu.memory_space<vmem>>, %arg48: memref<32x128xf32, #tpu.memory_space<vmem>>, %arg49: memref<8x512xf32, #tpu.memory_space<vmem>>) attributes {dimension_semantics = [], scalar_prefetch = 0 : i64, scratch_operands = 0 : i64, tpu.core_type = #tpu.core_type<tc>} {
    %c0 = arith.constant 0 : index
    %c0_0 = arith.constant 0 : index
    %0 = vector.load %arg0[%c0, %c0_0] : memref<8x512xf32, #tpu.memory_space<vmem>>, vector<8x512xf32>
    %c0_1 = arith.constant 0 : index
    %c0_2 = arith.constant 0 : index
    %1 = vector.load %arg8[%c0_1, %c0_2] : memref<8x8xf32, #tpu.memory_space<vmem>>, vector<8x8xf32>
    %cst = arith.constant dense<0.000000e+00> : vector<8x512xf32>
    %2 = tpu.matmul %1, %0, %cst {dimension_numbers = #tpu.dot_dimension_numbers<[1], [0], [0], [1], [0, 0, 1, 1], [], []>} : vector<8x8xf32>, vector<8x512xf32>, vector<8x512xf32> -> vector<8x512xf32>
    %c0_3 = arith.constant 0 : index
    %c0_4 = arith.constant 0 : index
    %3 = vector.load %arg7[%c0_3, %c0_4] : memref<8x1xf32, #tpu.memory_space<vmem>>, vector<8x1xf32>
    %4 = vector.broadcast %3 : vector<8x1xf32> to vector<8x512xf32>
    %5 = arith.addf %2, %4 : vector<8x512xf32>
    %cst_5 = arith.constant 0.000000e+00 : f32
    %6 = vector.broadcast %cst_5 : f32 to vector<8x512xf32>
    %7 = arith.maximumf %5, %6 : vector<8x512xf32>
    %c17_i32 = arith.constant 17 : i32
    %8 = tpu.dynamic_rotate %7 by %c17_i32 dim 1 : vector<8x512xf32>, i32 -> vector<8x512xf32>
    %c0_6 = arith.constant 0 : index
    %c0_7 = arith.constant 0 : index
    %c0_8 = arith.constant 0 : index
    %9 = vector.load %arg11[%c0_6, %c0_7, %c0_8] : memref<9x1x512xf32, #tpu.memory_space<vmem>>, vector<1x1x512xf32>
    %10 = vector.shape_cast %9 : vector<1x1x512xf32> to vector<1x512xf32>
    %11 = vector.broadcast %10 : vector<1x512xf32> to vector<8x512xf32>
    %12 = arith.mulf %8, %11 : vector<8x512xf32>
    %c16_i32 = arith.constant 16 : i32
    %13 = tpu.dynamic_rotate %7 by %c16_i32 dim 1 : vector<8x512xf32>, i32 -> vector<8x512xf32>
    %c1 = arith.constant 1 : index
    %c0_9 = arith.constant 0 : index
    %c0_10 = arith.constant 0 : index
    %14 = vector.load %arg11[%c1, %c0_9, %c0_10] : memref<9x1x512xf32, #tpu.memory_space<vmem>>, vector<1x1x512xf32>
    %15 = vector.shape_cast %14 : vector<1x1x512xf32> to vector<1x512xf32>
    %16 = vector.broadcast %15 : vector<1x512xf32> to vector<8x512xf32>
    %17 = arith.mulf %13, %16 : vector<8x512xf32>
    %c15_i32 = arith.constant 15 : i32
    %18 = tpu.dynamic_rotate %7 by %c15_i32 dim 1 : vector<8x512xf32>, i32 -> vector<8x512xf32>
    %c2 = arith.constant 2 : index
    %c0_11 = arith.constant 0 : index
    %c0_12 = arith.constant 0 : index
    %19 = vector.load %arg11[%c2, %c0_11, %c0_12] : memref<9x1x512xf32, #tpu.memory_space<vmem>>, vector<1x1x512xf32>
    %20 = vector.shape_cast %19 : vector<1x1x512xf32> to vector<1x512xf32>
    %21 = vector.broadcast %20 : vector<1x512xf32> to vector<8x512xf32>
    %22 = arith.mulf %18, %21 : vector<8x512xf32>
    %c1_i32 = arith.constant 1 : i32
    %23 = tpu.dynamic_rotate %7 by %c1_i32 dim 1 : vector<8x512xf32>, i32 -> vector<8x512xf32>
    %c3 = arith.constant 3 : index
    %c0_13 = arith.constant 0 : index
    %c0_14 = arith.constant 0 : index
    %24 = vector.load %arg11[%c3, %c0_13, %c0_14] : memref<9x1x512xf32, #tpu.memory_space<vmem>>, vector<1x1x512xf32>
    %25 = vector.shape_cast %24 : vector<1x1x512xf32> to vector<1x512xf32>
    %26 = vector.broadcast %25 : vector<1x512xf32> to vector<8x512xf32>
    %27 = arith.mulf %23, %26 : vector<8x512xf32>
    %c4 = arith.constant 4 : index
    %c0_15 = arith.constant 0 : index
    %c0_16 = arith.constant 0 : index
    %28 = vector.load %arg11[%c4, %c0_15, %c0_16] : memref<9x1x512xf32, #tpu.memory_space<vmem>>, vector<1x1x512xf32>
    %29 = vector.shape_cast %28 : vector<1x1x512xf32> to vector<1x512xf32>
    %30 = vector.broadcast %29 : vector<1x512xf32> to vector<8x512xf32>
    %31 = arith.mulf %7, %30 : vector<8x512xf32>
    %c511_i32 = arith.constant 511 : i32
    %32 = tpu.dynamic_rotate %7 by %c511_i32 dim 1 : vector<8x512xf32>, i32 -> vector<8x512xf32>
    %c5 = arith.constant 5 : index
    %c0_17 = arith.constant 0 : index
    %c0_18 = arith.constant 0 : index
    %33 = vector.load %arg11[%c5, %c0_17, %c0_18] : memref<9x1x512xf32, #tpu.memory_space<vmem>>, vector<1x1x512xf32>
    %34 = vector.shape_cast %33 : vector<1x1x512xf32> to vector<1x512xf32>
    %35 = vector.broadcast %34 : vector<1x512xf32> to vector<8x512xf32>
    %36 = arith.mulf %32, %35 : vector<8x512xf32>
    %c497_i32 = arith.constant 497 : i32
    %37 = tpu.dynamic_rotate %7 by %c497_i32 dim 1 : vector<8x512xf32>, i32 -> vector<8x512xf32>
    %c6 = arith.constant 6 : index
    %c0_19 = arith.constant 0 : index
    %c0_20 = arith.constant 0 : index
    %38 = vector.load %arg11[%c6, %c0_19, %c0_20] : memref<9x1x512xf32, #tpu.memory_space<vmem>>, vector<1x1x512xf32>
    %39 = vector.shape_cast %38 : vector<1x1x512xf32> to vector<1x512xf32>
    %40 = vector.broadcast %39 : vector<1x512xf32> to vector<8x512xf32>
    %41 = arith.mulf %37, %40 : vector<8x512xf32>
    %c496_i32 = arith.constant 496 : i32
    %42 = tpu.dynamic_rotate %7 by %c496_i32 dim 1 : vector<8x512xf32>, i32 -> vector<8x512xf32>
    %c7 = arith.constant 7 : index
    %c0_21 = arith.constant 0 : index
    %c0_22 = arith.constant 0 : index
    %43 = vector.load %arg11[%c7, %c0_21, %c0_22] : memref<9x1x512xf32, #tpu.memory_space<vmem>>, vector<1x1x512xf32>
    %44 = vector.shape_cast %43 : vector<1x1x512xf32> to vector<1x512xf32>
    %45 = vector.broadcast %44 : vector<1x512xf32> to vector<8x512xf32>
    %46 = arith.mulf %42, %45 : vector<8x512xf32>
    %c495_i32 = arith.constant 495 : i32
    %47 = tpu.dynamic_rotate %7 by %c495_i32 dim 1 : vector<8x512xf32>, i32 -> vector<8x512xf32>
    %c8 = arith.constant 8 : index
    %c0_23 = arith.constant 0 : index
    %c0_24 = arith.constant 0 : index
    %48 = vector.load %arg11[%c8, %c0_23, %c0_24] : memref<9x1x512xf32, #tpu.memory_space<vmem>>, vector<1x1x512xf32>
    %49 = vector.shape_cast %48 : vector<1x1x512xf32> to vector<1x512xf32>
    %50 = vector.broadcast %49 : vector<1x512xf32> to vector<8x512xf32>
    %51 = arith.mulf %47, %50 : vector<8x512xf32>
    %52 = tpu.concatenate %12, %17, %22, %27, %31, %36, %41, %46, %51 in 0 : vector<8x512xf32>, vector<8x512xf32>, vector<8x512xf32>, vector<8x512xf32>, vector<8x512xf32>, vector<8x512xf32>, vector<8x512xf32>, vector<8x512xf32>, vector<8x512xf32> -> vector<72x512xf32>
    %c0_25 = arith.constant 0 : index
    %c0_26 = arith.constant 0 : index
    %53 = vector.load %arg9[%c0_25, %c0_26] : memref<8x72xf32, #tpu.memory_space<vmem>>, vector<8x72xf32>
    %cst_27 = arith.constant dense<0.000000e+00> : vector<8x512xf32>
    %54 = tpu.matmul %53, %52, %cst_27 {dimension_numbers = #tpu.dot_dimension_numbers<[1], [0], [0], [1], [0, 0, 1, 1], [], []>} : vector<8x72xf32>, vector<72x512xf32>, vector<8x512xf32> -> vector<8x512xf32>
    %c0_28 = arith.constant 0 : index
    %c0_29 = arith.constant 0 : index
    %55 = vector.load %arg3[%c0_28, %c0_29] : memref<8x1xf32, #tpu.memory_space<vmem>>, vector<8x1xf32>
    %56 = vector.broadcast %55 : vector<8x1xf32> to vector<8x512xf32>
    %57 = arith.addf %54, %56 : vector<8x512xf32>
    %cst_30 = arith.constant 0.000000e+00 : f32
    %58 = vector.broadcast %cst_30 : f32 to vector<8x512xf32>
    %59 = arith.maximumf %57, %58 : vector<8x512xf32>
    %c0_31 = arith.constant 0 : index
    %c0_32 = arith.constant 0 : index
    %60 = vector.load %arg1[%c0_31, %c0_32] : memref<8x1xf32, #tpu.memory_space<vmem>>, vector<8x1xf32>
    %61 = vector.broadcast %60 : vector<8x1xf32> to vector<8x512xf32>
    %62 = arith.mulf %61, %59 : vector<8x512xf32>
    %63 = arith.addf %7, %62 : vector<8x512xf32>
    %c17_i32_33 = arith.constant 17 : i32
    %64 = tpu.dynamic_rotate %63 by %c17_i32_33 dim 1 : vector<8x512xf32>, i32 -> vector<8x512xf32>
    %c0_34 = arith.constant 0 : index
    %c0_35 = arith.constant 0 : index
    %c0_36 = arith.constant 0 : index
    %65 = vector.load %arg11[%c0_34, %c0_35, %c0_36] : memref<9x1x512xf32, #tpu.memory_space<vmem>>, vector<1x1x512xf32>
    %66 = vector.shape_cast %65 : vector<1x1x512xf32> to vector<1x512xf32>
    %67 = vector.broadcast %66 : vector<1x512xf32> to vector<8x512xf32>
    %68 = arith.mulf %64, %67 : vector<8x512xf32>
    %c16_i32_37 = arith.constant 16 : i32
    %69 = tpu.dynamic_rotate %63 by %c16_i32_37 dim 1 : vector<8x512xf32>, i32 -> vector<8x512xf32>
    %c1_38 = arith.constant 1 : index
    %c0_39 = arith.constant 0 : index
    %c0_40 = arith.constant 0 : index
    %70 = vector.load %arg11[%c1_38, %c0_39, %c0_40] : memref<9x1x512xf32, #tpu.memory_space<vmem>>, vector<1x1x512xf32>
    %71 = vector.shape_cast %70 : vector<1x1x512xf32> to vector<1x512xf32>
    %72 = vector.broadcast %71 : vector<1x512xf32> to vector<8x512xf32>
    %73 = arith.mulf %69, %72 : vector<8x512xf32>
    %c15_i32_41 = arith.constant 15 : i32
    %74 = tpu.dynamic_rotate %63 by %c15_i32_41 dim 1 : vector<8x512xf32>, i32 -> vector<8x512xf32>
    %c2_42 = arith.constant 2 : index
    %c0_43 = arith.constant 0 : index
    %c0_44 = arith.constant 0 : index
    %75 = vector.load %arg11[%c2_42, %c0_43, %c0_44] : memref<9x1x512xf32, #tpu.memory_space<vmem>>, vector<1x1x512xf32>
    %76 = vector.shape_cast %75 : vector<1x1x512xf32> to vector<1x512xf32>
    %77 = vector.broadcast %76 : vector<1x512xf32> to vector<8x512xf32>
    %78 = arith.mulf %74, %77 : vector<8x512xf32>
    %c1_i32_45 = arith.constant 1 : i32
    %79 = tpu.dynamic_rotate %63 by %c1_i32_45 dim 1 : vector<8x512xf32>, i32 -> vector<8x512xf32>
    %c3_46 = arith.constant 3 : index
    %c0_47 = arith.constant 0 : index
    %c0_48 = arith.constant 0 : index
    %80 = vector.load %arg11[%c3_46, %c0_47, %c0_48] : memref<9x1x512xf32, #tpu.memory_space<vmem>>, vector<1x1x512xf32>
    %81 = vector.shape_cast %80 : vector<1x1x512xf32> to vector<1x512xf32>
    %82 = vector.broadcast %81 : vector<1x512xf32> to vector<8x512xf32>
    %83 = arith.mulf %79, %82 : vector<8x512xf32>
    %c4_49 = arith.constant 4 : index
    %c0_50 = arith.constant 0 : index
    %c0_51 = arith.constant 0 : index
    %84 = vector.load %arg11[%c4_49, %c0_50, %c0_51] : memref<9x1x512xf32, #tpu.memory_space<vmem>>, vector<1x1x512xf32>
    %85 = vector.shape_cast %84 : vector<1x1x512xf32> to vector<1x512xf32>
    %86 = vector.broadcast %85 : vector<1x512xf32> to vector<8x512xf32>
    %87 = arith.mulf %63, %86 : vector<8x512xf32>
    %c511_i32_52 = arith.constant 511 : i32
    %88 = tpu.dynamic_rotate %63 by %c511_i32_52 dim 1 : vector<8x512xf32>, i32 -> vector<8x512xf32>
    %c5_53 = arith.constant 5 : index
    %c0_54 = arith.constant 0 : index
    %c0_55 = arith.constant 0 : index
    %89 = vector.load %arg11[%c5_53, %c0_54, %c0_55] : memref<9x1x512xf32, #tpu.memory_space<vmem>>, vector<1x1x512xf32>
    %90 = vector.shape_cast %89 : vector<1x1x512xf32> to vector<1x512xf32>
    %91 = vector.broadcast %90 : vector<1x512xf32> to vector<8x512xf32>
    %92 = arith.mulf %88, %91 : vector<8x512xf32>
    %c497_i32_56 = arith.constant 497 : i32
    %93 = tpu.dynamic_rotate %63 by %c497_i32_56 dim 1 : vector<8x512xf32>, i32 -> vector<8x512xf32>
    %c6_57 = arith.constant 6 : index
    %c0_58 = arith.constant 0 : index
    %c0_59 = arith.constant 0 : index
    %94 = vector.load %arg11[%c6_57, %c0_58, %c0_59] : memref<9x1x512xf32, #tpu.memory_space<vmem>>, vector<1x1x512xf32>
    %95 = vector.shape_cast %94 : vector<1x1x512xf32> to vector<1x512xf32>
    %96 = vector.broadcast %95 : vector<1x512xf32> to vector<8x512xf32>
    %97 = arith.mulf %93, %96 : vector<8x512xf32>
    %c496_i32_60 = arith.constant 496 : i32
    %98 = tpu.dynamic_rotate %63 by %c496_i32_60 dim 1 : vector<8x512xf32>, i32 -> vector<8x512xf32>
    %c7_61 = arith.constant 7 : index
    %c0_62 = arith.constant 0 : index
    %c0_63 = arith.constant 0 : index
    %99 = vector.load %arg11[%c7_61, %c0_62, %c0_63] : memref<9x1x512xf32, #tpu.memory_space<vmem>>, vector<1x1x512xf32>
    %100 = vector.shape_cast %99 : vector<1x1x512xf32> to vector<1x512xf32>
    %101 = vector.broadcast %100 : vector<1x512xf32> to vector<8x512xf32>
    %102 = arith.mulf %98, %101 : vector<8x512xf32>
    %c495_i32_64 = arith.constant 495 : i32
    %103 = tpu.dynamic_rotate %63 by %c495_i32_64 dim 1 : vector<8x512xf32>, i32 -> vector<8x512xf32>
    %c8_65 = arith.constant 8 : index
    %c0_66 = arith.constant 0 : index
    %c0_67 = arith.constant 0 : index
    %104 = vector.load %arg11[%c8_65, %c0_66, %c0_67] : memref<9x1x512xf32, #tpu.memory_space<vmem>>, vector<1x1x512xf32>
    %105 = vector.shape_cast %104 : vector<1x1x512xf32> to vector<1x512xf32>
    %106 = vector.broadcast %105 : vector<1x512xf32> to vector<8x512xf32>
    %107 = arith.mulf %103, %106 : vector<8x512xf32>
    %108 = tpu.concatenate %68, %73, %78, %83, %87, %92, %97, %102, %107 in 0 : vector<8x512xf32>, vector<8x512xf32>, vector<8x512xf32>, vector<8x512xf32>, vector<8x512xf32>, vector<8x512xf32>, vector<8x512xf32>, vector<8x512xf32>, vector<8x512xf32> -> vector<72x512xf32>
    %c0_68 = arith.constant 0 : index
    %c0_69 = arith.constant 0 : index
    %109 = vector.load %arg10[%c0_68, %c0_69] : memref<8x72xf32, #tpu.memory_space<vmem>>, vector<8x72xf32>
    %cst_70 = arith.constant dense<0.000000e+00> : vector<8x512xf32>
    %110 = tpu.matmul %109, %108, %cst_70 {dimension_numbers = #tpu.dot_dimension_numbers<[1], [0], [0], [1], [0, 0, 1, 1], [], []>} : vector<8x72xf32>, vector<72x512xf32>, vector<8x512xf32> -> vector<8x512xf32>
    %c0_71 = arith.constant 0 : index
    %c0_72 = arith.constant 0 : index
    %111 = vector.load %arg4[%c0_71, %c0_72] : memref<8x1xf32, #tpu.memory_space<vmem>>, vector<8x1xf32>
    %112 = vector.broadcast %111 : vector<8x1xf32> to vector<8x512xf32>
    %113 = arith.addf %110, %112 : vector<8x512xf32>
    %cst_73 = arith.constant 0.000000e+00 : f32
    %114 = vector.broadcast %cst_73 : f32 to vector<8x512xf32>
    %115 = arith.maximumf %113, %114 : vector<8x512xf32>
    %c0_74 = arith.constant 0 : index
    %c0_75 = arith.constant 0 : index
    %116 = vector.load %arg2[%c0_74, %c0_75] : memref<8x1xf32, #tpu.memory_space<vmem>>, vector<8x1xf32>
    %117 = vector.broadcast %116 : vector<8x1xf32> to vector<8x512xf32>
    %118 = arith.mulf %117, %115 : vector<8x512xf32>
    %119 = arith.addf %63, %118 : vector<8x512xf32>
    %c0_76 = arith.constant 0 : index
    %c0_77 = arith.constant 0 : index
    %120 = vector.load %arg6[%c0_76, %c0_77] : memref<16x8xf32, #tpu.memory_space<vmem>>, vector<16x8xf32>
    %cst_78 = arith.constant dense<0.000000e+00> : vector<16x512xf32>
    %121 = tpu.matmul %120, %119, %cst_78 {dimension_numbers = #tpu.dot_dimension_numbers<[1], [0], [0], [1], [0, 0, 1, 1], [], []>} : vector<16x8xf32>, vector<8x512xf32>, vector<16x512xf32> -> vector<16x512xf32>
    %c0_79 = arith.constant 0 : index
    %c0_80 = arith.constant 0 : index
    %122 = vector.load %arg5[%c0_79, %c0_80] : memref<16x1xf32, #tpu.memory_space<vmem>>, vector<16x1xf32>
    %123 = vector.broadcast %122 : vector<16x1xf32> to vector<16x512xf32>
    %124 = arith.addf %121, %123 : vector<16x512xf32>
    %c0_81 = arith.constant 0 : index
    %c0_82 = arith.constant 0 : index
    %125 = vector.load %arg23[%c0_81, %c0_82] : memref<512x128xf32, #tpu.memory_space<vmem>>, vector<512x128xf32>
    %cst_83 = arith.constant dense<0.000000e+00> : vector<16x128xf32>
    %126 = tpu.matmul %124, %125, %cst_83 {dimension_numbers = #tpu.dot_dimension_numbers<[1], [0], [0], [1], [0, 0, 1, 1], [], []>} : vector<16x512xf32>, vector<512x128xf32>, vector<16x128xf32> -> vector<16x128xf32>
    %c0_84 = arith.constant 0 : index
    %c0_85 = arith.constant 0 : index
    %127 = vector.load %arg32[%c0_84, %c0_85] : memref<8x16xf32, #tpu.memory_space<vmem>>, vector<8x16xf32>
    %cst_86 = arith.constant dense<0.000000e+00> : vector<8x128xf32>
    %128 = tpu.matmul %127, %126, %cst_86 {dimension_numbers = #tpu.dot_dimension_numbers<[1], [0], [0], [1], [0, 0, 1, 1], [], []>} : vector<8x16xf32>, vector<16x128xf32>, vector<8x128xf32> -> vector<8x128xf32>
    %c0_87 = arith.constant 0 : index
    %c0_88 = arith.constant 0 : index
    %129 = vector.load %arg31[%c0_87, %c0_88] : memref<8x1xf32, #tpu.memory_space<vmem>>, vector<8x1xf32>
    %130 = vector.broadcast %129 : vector<8x1xf32> to vector<8x128xf32>
    %131 = arith.addf %128, %130 : vector<8x128xf32>
    %cst_89 = arith.constant 0.000000e+00 : f32
    %132 = vector.broadcast %cst_89 : f32 to vector<8x128xf32>
    %133 = arith.maximumf %131, %132 : vector<8x128xf32>
    %c9_i32 = arith.constant 9 : i32
    %134 = tpu.dynamic_rotate %133 by %c9_i32 dim 1 : vector<8x128xf32>, i32 -> vector<8x128xf32>
    %c0_90 = arith.constant 0 : index
    %c0_91 = arith.constant 0 : index
    %c0_92 = arith.constant 0 : index
    %135 = vector.load %arg35[%c0_90, %c0_91, %c0_92] : memref<9x1x128xf32, #tpu.memory_space<vmem>>, vector<1x1x128xf32>
    %136 = vector.shape_cast %135 : vector<1x1x128xf32> to vector<1x128xf32>
    %137 = vector.broadcast %136 : vector<1x128xf32> to vector<8x128xf32>
    %138 = arith.mulf %134, %137 : vector<8x128xf32>
    %c8_i32 = arith.constant 8 : i32
    %139 = tpu.dynamic_rotate %133 by %c8_i32 dim 1 : vector<8x128xf32>, i32 -> vector<8x128xf32>
    %c1_93 = arith.constant 1 : index
    %c0_94 = arith.constant 0 : index
    %c0_95 = arith.constant 0 : index
    %140 = vector.load %arg35[%c1_93, %c0_94, %c0_95] : memref<9x1x128xf32, #tpu.memory_space<vmem>>, vector<1x1x128xf32>
    %141 = vector.shape_cast %140 : vector<1x1x128xf32> to vector<1x128xf32>
    %142 = vector.broadcast %141 : vector<1x128xf32> to vector<8x128xf32>
    %143 = arith.mulf %139, %142 : vector<8x128xf32>
    %c7_i32 = arith.constant 7 : i32
    %144 = tpu.dynamic_rotate %133 by %c7_i32 dim 1 : vector<8x128xf32>, i32 -> vector<8x128xf32>
    %c2_96 = arith.constant 2 : index
    %c0_97 = arith.constant 0 : index
    %c0_98 = arith.constant 0 : index
    %145 = vector.load %arg35[%c2_96, %c0_97, %c0_98] : memref<9x1x128xf32, #tpu.memory_space<vmem>>, vector<1x1x128xf32>
    %146 = vector.shape_cast %145 : vector<1x1x128xf32> to vector<1x128xf32>
    %147 = vector.broadcast %146 : vector<1x128xf32> to vector<8x128xf32>
    %148 = arith.mulf %144, %147 : vector<8x128xf32>
    %c1_i32_99 = arith.constant 1 : i32
    %149 = tpu.dynamic_rotate %133 by %c1_i32_99 dim 1 : vector<8x128xf32>, i32 -> vector<8x128xf32>
    %c3_100 = arith.constant 3 : index
    %c0_101 = arith.constant 0 : index
    %c0_102 = arith.constant 0 : index
    %150 = vector.load %arg35[%c3_100, %c0_101, %c0_102] : memref<9x1x128xf32, #tpu.memory_space<vmem>>, vector<1x1x128xf32>
    %151 = vector.shape_cast %150 : vector<1x1x128xf32> to vector<1x128xf32>
    %152 = vector.broadcast %151 : vector<1x128xf32> to vector<8x128xf32>
    %153 = arith.mulf %149, %152 : vector<8x128xf32>
    %c4_103 = arith.constant 4 : index
    %c0_104 = arith.constant 0 : index
    %c0_105 = arith.constant 0 : index
    %154 = vector.load %arg35[%c4_103, %c0_104, %c0_105] : memref<9x1x128xf32, #tpu.memory_space<vmem>>, vector<1x1x128xf32>
    %155 = vector.shape_cast %154 : vector<1x1x128xf32> to vector<1x128xf32>
    %156 = vector.broadcast %155 : vector<1x128xf32> to vector<8x128xf32>
    %157 = arith.mulf %133, %156 : vector<8x128xf32>
    %c127_i32 = arith.constant 127 : i32
    %158 = tpu.dynamic_rotate %133 by %c127_i32 dim 1 : vector<8x128xf32>, i32 -> vector<8x128xf32>
    %c5_106 = arith.constant 5 : index
    %c0_107 = arith.constant 0 : index
    %c0_108 = arith.constant 0 : index
    %159 = vector.load %arg35[%c5_106, %c0_107, %c0_108] : memref<9x1x128xf32, #tpu.memory_space<vmem>>, vector<1x1x128xf32>
    %160 = vector.shape_cast %159 : vector<1x1x128xf32> to vector<1x128xf32>
    %161 = vector.broadcast %160 : vector<1x128xf32> to vector<8x128xf32>
    %162 = arith.mulf %158, %161 : vector<8x128xf32>
    %c121_i32 = arith.constant 121 : i32
    %163 = tpu.dynamic_rotate %133 by %c121_i32 dim 1 : vector<8x128xf32>, i32 -> vector<8x128xf32>
    %c6_109 = arith.constant 6 : index
    %c0_110 = arith.constant 0 : index
    %c0_111 = arith.constant 0 : index
    %164 = vector.load %arg35[%c6_109, %c0_110, %c0_111] : memref<9x1x128xf32, #tpu.memory_space<vmem>>, vector<1x1x128xf32>
    %165 = vector.shape_cast %164 : vector<1x1x128xf32> to vector<1x128xf32>
    %166 = vector.broadcast %165 : vector<1x128xf32> to vector<8x128xf32>
    %167 = arith.mulf %163, %166 : vector<8x128xf32>
    %c120_i32 = arith.constant 120 : i32
    %168 = tpu.dynamic_rotate %133 by %c120_i32 dim 1 : vector<8x128xf32>, i32 -> vector<8x128xf32>
    %c7_112 = arith.constant 7 : index
    %c0_113 = arith.constant 0 : index
    %c0_114 = arith.constant 0 : index
    %169 = vector.load %arg35[%c7_112, %c0_113, %c0_114] : memref<9x1x128xf32, #tpu.memory_space<vmem>>, vector<1x1x128xf32>
    %170 = vector.shape_cast %169 : vector<1x1x128xf32> to vector<1x128xf32>
    %171 = vector.broadcast %170 : vector<1x128xf32> to vector<8x128xf32>
    %172 = arith.mulf %168, %171 : vector<8x128xf32>
    %c119_i32 = arith.constant 119 : i32
    %173 = tpu.dynamic_rotate %133 by %c119_i32 dim 1 : vector<8x128xf32>, i32 -> vector<8x128xf32>
    %c8_115 = arith.constant 8 : index
    %c0_116 = arith.constant 0 : index
    %c0_117 = arith.constant 0 : index
    %174 = vector.load %arg35[%c8_115, %c0_116, %c0_117] : memref<9x1x128xf32, #tpu.memory_space<vmem>>, vector<1x1x128xf32>
    %175 = vector.shape_cast %174 : vector<1x1x128xf32> to vector<1x128xf32>
    %176 = vector.broadcast %175 : vector<1x128xf32> to vector<8x128xf32>
    %177 = arith.mulf %173, %176 : vector<8x128xf32>
    %178 = tpu.concatenate %138, %143, %148, %153, %157, %162, %167, %172, %177 in 0 : vector<8x128xf32>, vector<8x128xf32>, vector<8x128xf32>, vector<8x128xf32>, vector<8x128xf32>, vector<8x128xf32>, vector<8x128xf32>, vector<8x128xf32>, vector<8x128xf32> -> vector<72x128xf32>
    %c0_118 = arith.constant 0 : index
    %c0_119 = arith.constant 0 : index
    %179 = vector.load %arg33[%c0_118, %c0_119] : memref<8x72xf32, #tpu.memory_space<vmem>>, vector<8x72xf32>
    %cst_120 = arith.constant dense<0.000000e+00> : vector<8x128xf32>
    %180 = tpu.matmul %179, %178, %cst_120 {dimension_numbers = #tpu.dot_dimension_numbers<[1], [0], [0], [1], [0, 0, 1, 1], [], []>} : vector<8x72xf32>, vector<72x128xf32>, vector<8x128xf32> -> vector<8x128xf32>
    %c0_121 = arith.constant 0 : index
    %c0_122 = arith.constant 0 : index
    %181 = vector.load %arg27[%c0_121, %c0_122] : memref<8x1xf32, #tpu.memory_space<vmem>>, vector<8x1xf32>
    %182 = vector.broadcast %181 : vector<8x1xf32> to vector<8x128xf32>
    %183 = arith.addf %180, %182 : vector<8x128xf32>
    %cst_123 = arith.constant 0.000000e+00 : f32
    %184 = vector.broadcast %cst_123 : f32 to vector<8x128xf32>
    %185 = arith.maximumf %183, %184 : vector<8x128xf32>
    %c0_124 = arith.constant 0 : index
    %c0_125 = arith.constant 0 : index
    %186 = vector.load %arg25[%c0_124, %c0_125] : memref<8x1xf32, #tpu.memory_space<vmem>>, vector<8x1xf32>
    %187 = vector.broadcast %186 : vector<8x1xf32> to vector<8x128xf32>
    %188 = arith.mulf %187, %185 : vector<8x128xf32>
    %189 = arith.addf %133, %188 : vector<8x128xf32>
    %c9_i32_126 = arith.constant 9 : i32
    %190 = tpu.dynamic_rotate %189 by %c9_i32_126 dim 1 : vector<8x128xf32>, i32 -> vector<8x128xf32>
    %c0_127 = arith.constant 0 : index
    %c0_128 = arith.constant 0 : index
    %c0_129 = arith.constant 0 : index
    %191 = vector.load %arg35[%c0_127, %c0_128, %c0_129] : memref<9x1x128xf32, #tpu.memory_space<vmem>>, vector<1x1x128xf32>
    %192 = vector.shape_cast %191 : vector<1x1x128xf32> to vector<1x128xf32>
    %193 = vector.broadcast %192 : vector<1x128xf32> to vector<8x128xf32>
    %194 = arith.mulf %190, %193 : vector<8x128xf32>
    %c8_i32_130 = arith.constant 8 : i32
    %195 = tpu.dynamic_rotate %189 by %c8_i32_130 dim 1 : vector<8x128xf32>, i32 -> vector<8x128xf32>
    %c1_131 = arith.constant 1 : index
    %c0_132 = arith.constant 0 : index
    %c0_133 = arith.constant 0 : index
    %196 = vector.load %arg35[%c1_131, %c0_132, %c0_133] : memref<9x1x128xf32, #tpu.memory_space<vmem>>, vector<1x1x128xf32>
    %197 = vector.shape_cast %196 : vector<1x1x128xf32> to vector<1x128xf32>
    %198 = vector.broadcast %197 : vector<1x128xf32> to vector<8x128xf32>
    %199 = arith.mulf %195, %198 : vector<8x128xf32>
    %c7_i32_134 = arith.constant 7 : i32
    %200 = tpu.dynamic_rotate %189 by %c7_i32_134 dim 1 : vector<8x128xf32>, i32 -> vector<8x128xf32>
    %c2_135 = arith.constant 2 : index
    %c0_136 = arith.constant 0 : index
    %c0_137 = arith.constant 0 : index
    %201 = vector.load %arg35[%c2_135, %c0_136, %c0_137] : memref<9x1x128xf32, #tpu.memory_space<vmem>>, vector<1x1x128xf32>
    %202 = vector.shape_cast %201 : vector<1x1x128xf32> to vector<1x128xf32>
    %203 = vector.broadcast %202 : vector<1x128xf32> to vector<8x128xf32>
    %204 = arith.mulf %200, %203 : vector<8x128xf32>
    %c1_i32_138 = arith.constant 1 : i32
    %205 = tpu.dynamic_rotate %189 by %c1_i32_138 dim 1 : vector<8x128xf32>, i32 -> vector<8x128xf32>
    %c3_139 = arith.constant 3 : index
    %c0_140 = arith.constant 0 : index
    %c0_141 = arith.constant 0 : index
    %206 = vector.load %arg35[%c3_139, %c0_140, %c0_141] : memref<9x1x128xf32, #tpu.memory_space<vmem>>, vector<1x1x128xf32>
    %207 = vector.shape_cast %206 : vector<1x1x128xf32> to vector<1x128xf32>
    %208 = vector.broadcast %207 : vector<1x128xf32> to vector<8x128xf32>
    %209 = arith.mulf %205, %208 : vector<8x128xf32>
    %c4_142 = arith.constant 4 : index
    %c0_143 = arith.constant 0 : index
    %c0_144 = arith.constant 0 : index
    %210 = vector.load %arg35[%c4_142, %c0_143, %c0_144] : memref<9x1x128xf32, #tpu.memory_space<vmem>>, vector<1x1x128xf32>
    %211 = vector.shape_cast %210 : vector<1x1x128xf32> to vector<1x128xf32>
    %212 = vector.broadcast %211 : vector<1x128xf32> to vector<8x128xf32>
    %213 = arith.mulf %189, %212 : vector<8x128xf32>
    %c127_i32_145 = arith.constant 127 : i32
    %214 = tpu.dynamic_rotate %189 by %c127_i32_145 dim 1 : vector<8x128xf32>, i32 -> vector<8x128xf32>
    %c5_146 = arith.constant 5 : index
    %c0_147 = arith.constant 0 : index
    %c0_148 = arith.constant 0 : index
    %215 = vector.load %arg35[%c5_146, %c0_147, %c0_148] : memref<9x1x128xf32, #tpu.memory_space<vmem>>, vector<1x1x128xf32>
    %216 = vector.shape_cast %215 : vector<1x1x128xf32> to vector<1x128xf32>
    %217 = vector.broadcast %216 : vector<1x128xf32> to vector<8x128xf32>
    %218 = arith.mulf %214, %217 : vector<8x128xf32>
    %c121_i32_149 = arith.constant 121 : i32
    %219 = tpu.dynamic_rotate %189 by %c121_i32_149 dim 1 : vector<8x128xf32>, i32 -> vector<8x128xf32>
    %c6_150 = arith.constant 6 : index
    %c0_151 = arith.constant 0 : index
    %c0_152 = arith.constant 0 : index
    %220 = vector.load %arg35[%c6_150, %c0_151, %c0_152] : memref<9x1x128xf32, #tpu.memory_space<vmem>>, vector<1x1x128xf32>
    %221 = vector.shape_cast %220 : vector<1x1x128xf32> to vector<1x128xf32>
    %222 = vector.broadcast %221 : vector<1x128xf32> to vector<8x128xf32>
    %223 = arith.mulf %219, %222 : vector<8x128xf32>
    %c120_i32_153 = arith.constant 120 : i32
    %224 = tpu.dynamic_rotate %189 by %c120_i32_153 dim 1 : vector<8x128xf32>, i32 -> vector<8x128xf32>
    %c7_154 = arith.constant 7 : index
    %c0_155 = arith.constant 0 : index
    %c0_156 = arith.constant 0 : index
    %225 = vector.load %arg35[%c7_154, %c0_155, %c0_156] : memref<9x1x128xf32, #tpu.memory_space<vmem>>, vector<1x1x128xf32>
    %226 = vector.shape_cast %225 : vector<1x1x128xf32> to vector<1x128xf32>
    %227 = vector.broadcast %226 : vector<1x128xf32> to vector<8x128xf32>
    %228 = arith.mulf %224, %227 : vector<8x128xf32>
    %c119_i32_157 = arith.constant 119 : i32
    %229 = tpu.dynamic_rotate %189 by %c119_i32_157 dim 1 : vector<8x128xf32>, i32 -> vector<8x128xf32>
    %c8_158 = arith.constant 8 : index
    %c0_159 = arith.constant 0 : index
    %c0_160 = arith.constant 0 : index
    %230 = vector.load %arg35[%c8_158, %c0_159, %c0_160] : memref<9x1x128xf32, #tpu.memory_space<vmem>>, vector<1x1x128xf32>
    %231 = vector.shape_cast %230 : vector<1x1x128xf32> to vector<1x128xf32>
    %232 = vector.broadcast %231 : vector<1x128xf32> to vector<8x128xf32>
    %233 = arith.mulf %229, %232 : vector<8x128xf32>
    %234 = tpu.concatenate %194, %199, %204, %209, %213, %218, %223, %228, %233 in 0 : vector<8x128xf32>, vector<8x128xf32>, vector<8x128xf32>, vector<8x128xf32>, vector<8x128xf32>, vector<8x128xf32>, vector<8x128xf32>, vector<8x128xf32>, vector<8x128xf32> -> vector<72x128xf32>
    %c0_161 = arith.constant 0 : index
    %c0_162 = arith.constant 0 : index
    %235 = vector.load %arg34[%c0_161, %c0_162] : memref<8x72xf32, #tpu.memory_space<vmem>>, vector<8x72xf32>
    %cst_163 = arith.constant dense<0.000000e+00> : vector<8x128xf32>
    %236 = tpu.matmul %235, %234, %cst_163 {dimension_numbers = #tpu.dot_dimension_numbers<[1], [0], [0], [1], [0, 0, 1, 1], [], []>} : vector<8x72xf32>, vector<72x128xf32>, vector<8x128xf32> -> vector<8x128xf32>
    %c0_164 = arith.constant 0 : index
    %c0_165 = arith.constant 0 : index
    %237 = vector.load %arg28[%c0_164, %c0_165] : memref<8x1xf32, #tpu.memory_space<vmem>>, vector<8x1xf32>
    %238 = vector.broadcast %237 : vector<8x1xf32> to vector<8x128xf32>
    %239 = arith.addf %236, %238 : vector<8x128xf32>
    %cst_166 = arith.constant 0.000000e+00 : f32
    %240 = vector.broadcast %cst_166 : f32 to vector<8x128xf32>
    %241 = arith.maximumf %239, %240 : vector<8x128xf32>
    %c0_167 = arith.constant 0 : index
    %c0_168 = arith.constant 0 : index
    %242 = vector.load %arg26[%c0_167, %c0_168] : memref<8x1xf32, #tpu.memory_space<vmem>>, vector<8x1xf32>
    %243 = vector.broadcast %242 : vector<8x1xf32> to vector<8x128xf32>
    %244 = arith.mulf %243, %241 : vector<8x128xf32>
    %245 = arith.addf %189, %244 : vector<8x128xf32>
    %c0_169 = arith.constant 0 : index
    %c0_170 = arith.constant 0 : index
    %246 = vector.load %arg30[%c0_169, %c0_170] : memref<16x8xf32, #tpu.memory_space<vmem>>, vector<16x8xf32>
    %cst_171 = arith.constant dense<0.000000e+00> : vector<16x128xf32>
    %247 = tpu.matmul %246, %245, %cst_171 {dimension_numbers = #tpu.dot_dimension_numbers<[1], [0], [0], [1], [0, 0, 1, 1], [], []>} : vector<16x8xf32>, vector<8x128xf32>, vector<16x128xf32> -> vector<16x128xf32>
    %c0_172 = arith.constant 0 : index
    %c0_173 = arith.constant 0 : index
    %248 = vector.load %arg29[%c0_172, %c0_173] : memref<16x1xf32, #tpu.memory_space<vmem>>, vector<16x1xf32>
    %249 = vector.broadcast %248 : vector<16x1xf32> to vector<16x128xf32>
    %250 = arith.addf %247, %249 : vector<16x128xf32>
    %c0_174 = arith.constant 0 : index
    %c0_175 = arith.constant 0 : index
    %251 = vector.load %arg47[%c0_174, %c0_175] : memref<128x32xf32, #tpu.memory_space<vmem>>, vector<128x32xf32>
    %cst_176 = arith.constant dense<0.000000e+00> : vector<16x32xf32>
    %252 = tpu.matmul %250, %251, %cst_176 {dimension_numbers = #tpu.dot_dimension_numbers<[1], [0], [0], [1], [0, 0, 1, 1], [], []>} : vector<16x128xf32>, vector<128x32xf32>, vector<16x32xf32> -> vector<16x32xf32>
    %c0_177 = arith.constant 0 : index
    %c0_178 = arith.constant 0 : index
    %253 = vector.load %arg48[%c0_177, %c0_178] : memref<32x128xf32, #tpu.memory_space<vmem>>, vector<32x128xf32>
    %cst_179 = arith.constant dense<0.000000e+00> : vector<16x128xf32>
    %254 = tpu.matmul %252, %253, %cst_179 {dimension_numbers = #tpu.dot_dimension_numbers<[1], [0], [0], [1], [0, 0, 1, 1], [], []>} : vector<16x32xf32>, vector<32x128xf32>, vector<16x128xf32> -> vector<16x128xf32>
    %c0_180 = arith.constant 0 : index
    %c0_181 = arith.constant 0 : index
    %255 = vector.load %arg44[%c0_180, %c0_181] : memref<8x16xf32, #tpu.memory_space<vmem>>, vector<8x16xf32>
    %cst_182 = arith.constant dense<0.000000e+00> : vector<8x128xf32>
    %256 = tpu.matmul %255, %254, %cst_182 {dimension_numbers = #tpu.dot_dimension_numbers<[1], [0], [0], [1], [0, 0, 1, 1], [], []>} : vector<8x16xf32>, vector<16x128xf32>, vector<8x128xf32> -> vector<8x128xf32>
    %c0_183 = arith.constant 0 : index
    %c0_184 = arith.constant 0 : index
    %257 = vector.load %arg43[%c0_183, %c0_184] : memref<8x8xf32, #tpu.memory_space<vmem>>, vector<8x8xf32>
    %cst_185 = arith.constant dense<0.000000e+00> : vector<8x128xf32>
    %258 = tpu.matmul %257, %245, %cst_185 {dimension_numbers = #tpu.dot_dimension_numbers<[1], [0], [0], [1], [0, 0, 1, 1], [], []>} : vector<8x8xf32>, vector<8x128xf32>, vector<8x128xf32> -> vector<8x128xf32>
    %259 = arith.addf %256, %258 : vector<8x128xf32>
    %c0_186 = arith.constant 0 : index
    %c0_187 = arith.constant 0 : index
    %260 = vector.load %arg42[%c0_186, %c0_187] : memref<8x1xf32, #tpu.memory_space<vmem>>, vector<8x1xf32>
    %261 = vector.broadcast %260 : vector<8x1xf32> to vector<8x128xf32>
    %262 = arith.addf %259, %261 : vector<8x128xf32>
    %cst_188 = arith.constant 0.000000e+00 : f32
    %263 = vector.broadcast %cst_188 : f32 to vector<8x128xf32>
    %264 = arith.maximumf %262, %263 : vector<8x128xf32>
    %c9_i32_189 = arith.constant 9 : i32
    %265 = tpu.dynamic_rotate %264 by %c9_i32_189 dim 1 : vector<8x128xf32>, i32 -> vector<8x128xf32>
    %c0_190 = arith.constant 0 : index
    %c0_191 = arith.constant 0 : index
    %c0_192 = arith.constant 0 : index
    %266 = vector.load %arg35[%c0_190, %c0_191, %c0_192] : memref<9x1x128xf32, #tpu.memory_space<vmem>>, vector<1x1x128xf32>
    %267 = vector.shape_cast %266 : vector<1x1x128xf32> to vector<1x128xf32>
    %268 = vector.broadcast %267 : vector<1x128xf32> to vector<8x128xf32>
    %269 = arith.mulf %265, %268 : vector<8x128xf32>
    %c8_i32_193 = arith.constant 8 : i32
    %270 = tpu.dynamic_rotate %264 by %c8_i32_193 dim 1 : vector<8x128xf32>, i32 -> vector<8x128xf32>
    %c1_194 = arith.constant 1 : index
    %c0_195 = arith.constant 0 : index
    %c0_196 = arith.constant 0 : index
    %271 = vector.load %arg35[%c1_194, %c0_195, %c0_196] : memref<9x1x128xf32, #tpu.memory_space<vmem>>, vector<1x1x128xf32>
    %272 = vector.shape_cast %271 : vector<1x1x128xf32> to vector<1x128xf32>
    %273 = vector.broadcast %272 : vector<1x128xf32> to vector<8x128xf32>
    %274 = arith.mulf %270, %273 : vector<8x128xf32>
    %c7_i32_197 = arith.constant 7 : i32
    %275 = tpu.dynamic_rotate %264 by %c7_i32_197 dim 1 : vector<8x128xf32>, i32 -> vector<8x128xf32>
    %c2_198 = arith.constant 2 : index
    %c0_199 = arith.constant 0 : index
    %c0_200 = arith.constant 0 : index
    %276 = vector.load %arg35[%c2_198, %c0_199, %c0_200] : memref<9x1x128xf32, #tpu.memory_space<vmem>>, vector<1x1x128xf32>
    %277 = vector.shape_cast %276 : vector<1x1x128xf32> to vector<1x128xf32>
    %278 = vector.broadcast %277 : vector<1x128xf32> to vector<8x128xf32>
    %279 = arith.mulf %275, %278 : vector<8x128xf32>
    %c1_i32_201 = arith.constant 1 : i32
    %280 = tpu.dynamic_rotate %264 by %c1_i32_201 dim 1 : vector<8x128xf32>, i32 -> vector<8x128xf32>
    %c3_202 = arith.constant 3 : index
    %c0_203 = arith.constant 0 : index
    %c0_204 = arith.constant 0 : index
    %281 = vector.load %arg35[%c3_202, %c0_203, %c0_204] : memref<9x1x128xf32, #tpu.memory_space<vmem>>, vector<1x1x128xf32>
    %282 = vector.shape_cast %281 : vector<1x1x128xf32> to vector<1x128xf32>
    %283 = vector.broadcast %282 : vector<1x128xf32> to vector<8x128xf32>
    %284 = arith.mulf %280, %283 : vector<8x128xf32>
    %c4_205 = arith.constant 4 : index
    %c0_206 = arith.constant 0 : index
    %c0_207 = arith.constant 0 : index
    %285 = vector.load %arg35[%c4_205, %c0_206, %c0_207] : memref<9x1x128xf32, #tpu.memory_space<vmem>>, vector<1x1x128xf32>
    %286 = vector.shape_cast %285 : vector<1x1x128xf32> to vector<1x128xf32>
    %287 = vector.broadcast %286 : vector<1x128xf32> to vector<8x128xf32>
    %288 = arith.mulf %264, %287 : vector<8x128xf32>
    %c127_i32_208 = arith.constant 127 : i32
    %289 = tpu.dynamic_rotate %264 by %c127_i32_208 dim 1 : vector<8x128xf32>, i32 -> vector<8x128xf32>
    %c5_209 = arith.constant 5 : index
    %c0_210 = arith.constant 0 : index
    %c0_211 = arith.constant 0 : index
    %290 = vector.load %arg35[%c5_209, %c0_210, %c0_211] : memref<9x1x128xf32, #tpu.memory_space<vmem>>, vector<1x1x128xf32>
    %291 = vector.shape_cast %290 : vector<1x1x128xf32> to vector<1x128xf32>
    %292 = vector.broadcast %291 : vector<1x128xf32> to vector<8x128xf32>
    %293 = arith.mulf %289, %292 : vector<8x128xf32>
    %c121_i32_212 = arith.constant 121 : i32
    %294 = tpu.dynamic_rotate %264 by %c121_i32_212 dim 1 : vector<8x128xf32>, i32 -> vector<8x128xf32>
    %c6_213 = arith.constant 6 : index
    %c0_214 = arith.constant 0 : index
    %c0_215 = arith.constant 0 : index
    %295 = vector.load %arg35[%c6_213, %c0_214, %c0_215] : memref<9x1x128xf32, #tpu.memory_space<vmem>>, vector<1x1x128xf32>
    %296 = vector.shape_cast %295 : vector<1x1x128xf32> to vector<1x128xf32>
    %297 = vector.broadcast %296 : vector<1x128xf32> to vector<8x128xf32>
    %298 = arith.mulf %294, %297 : vector<8x128xf32>
    %c120_i32_216 = arith.constant 120 : i32
    %299 = tpu.dynamic_rotate %264 by %c120_i32_216 dim 1 : vector<8x128xf32>, i32 -> vector<8x128xf32>
    %c7_217 = arith.constant 7 : index
    %c0_218 = arith.constant 0 : index
    %c0_219 = arith.constant 0 : index
    %300 = vector.load %arg35[%c7_217, %c0_218, %c0_219] : memref<9x1x128xf32, #tpu.memory_space<vmem>>, vector<1x1x128xf32>
    %301 = vector.shape_cast %300 : vector<1x1x128xf32> to vector<1x128xf32>
    %302 = vector.broadcast %301 : vector<1x128xf32> to vector<8x128xf32>
    %303 = arith.mulf %299, %302 : vector<8x128xf32>
    %c119_i32_220 = arith.constant 119 : i32
    %304 = tpu.dynamic_rotate %264 by %c119_i32_220 dim 1 : vector<8x128xf32>, i32 -> vector<8x128xf32>
    %c8_221 = arith.constant 8 : index
    %c0_222 = arith.constant 0 : index
    %c0_223 = arith.constant 0 : index
    %305 = vector.load %arg35[%c8_221, %c0_222, %c0_223] : memref<9x1x128xf32, #tpu.memory_space<vmem>>, vector<1x1x128xf32>
    %306 = vector.shape_cast %305 : vector<1x1x128xf32> to vector<1x128xf32>
    %307 = vector.broadcast %306 : vector<1x128xf32> to vector<8x128xf32>
    %308 = arith.mulf %304, %307 : vector<8x128xf32>
    %309 = tpu.concatenate %269, %274, %279, %284, %288, %293, %298, %303, %308 in 0 : vector<8x128xf32>, vector<8x128xf32>, vector<8x128xf32>, vector<8x128xf32>, vector<8x128xf32>, vector<8x128xf32>, vector<8x128xf32>, vector<8x128xf32>, vector<8x128xf32> -> vector<72x128xf32>
    %c0_224 = arith.constant 0 : index
    %c0_225 = arith.constant 0 : index
    %310 = vector.load %arg45[%c0_224, %c0_225] : memref<8x72xf32, #tpu.memory_space<vmem>>, vector<8x72xf32>
    %cst_226 = arith.constant dense<0.000000e+00> : vector<8x128xf32>
    %311 = tpu.matmul %310, %309, %cst_226 {dimension_numbers = #tpu.dot_dimension_numbers<[1], [0], [0], [1], [0, 0, 1, 1], [], []>} : vector<8x72xf32>, vector<72x128xf32>, vector<8x128xf32> -> vector<8x128xf32>
    %c0_227 = arith.constant 0 : index
    %c0_228 = arith.constant 0 : index
    %312 = vector.load %arg38[%c0_227, %c0_228] : memref<8x1xf32, #tpu.memory_space<vmem>>, vector<8x1xf32>
    %313 = vector.broadcast %312 : vector<8x1xf32> to vector<8x128xf32>
    %314 = arith.addf %311, %313 : vector<8x128xf32>
    %cst_229 = arith.constant 0.000000e+00 : f32
    %315 = vector.broadcast %cst_229 : f32 to vector<8x128xf32>
    %316 = arith.maximumf %314, %315 : vector<8x128xf32>
    %c0_230 = arith.constant 0 : index
    %c0_231 = arith.constant 0 : index
    %317 = vector.load %arg36[%c0_230, %c0_231] : memref<8x1xf32, #tpu.memory_space<vmem>>, vector<8x1xf32>
    %318 = vector.broadcast %317 : vector<8x1xf32> to vector<8x128xf32>
    %319 = arith.mulf %318, %316 : vector<8x128xf32>
    %320 = arith.addf %264, %319 : vector<8x128xf32>
    %c9_i32_232 = arith.constant 9 : i32
    %321 = tpu.dynamic_rotate %320 by %c9_i32_232 dim 1 : vector<8x128xf32>, i32 -> vector<8x128xf32>
    %c0_233 = arith.constant 0 : index
    %c0_234 = arith.constant 0 : index
    %c0_235 = arith.constant 0 : index
    %322 = vector.load %arg35[%c0_233, %c0_234, %c0_235] : memref<9x1x128xf32, #tpu.memory_space<vmem>>, vector<1x1x128xf32>
    %323 = vector.shape_cast %322 : vector<1x1x128xf32> to vector<1x128xf32>
    %324 = vector.broadcast %323 : vector<1x128xf32> to vector<8x128xf32>
    %325 = arith.mulf %321, %324 : vector<8x128xf32>
    %c8_i32_236 = arith.constant 8 : i32
    %326 = tpu.dynamic_rotate %320 by %c8_i32_236 dim 1 : vector<8x128xf32>, i32 -> vector<8x128xf32>
    %c1_237 = arith.constant 1 : index
    %c0_238 = arith.constant 0 : index
    %c0_239 = arith.constant 0 : index
    %327 = vector.load %arg35[%c1_237, %c0_238, %c0_239] : memref<9x1x128xf32, #tpu.memory_space<vmem>>, vector<1x1x128xf32>
    %328 = vector.shape_cast %327 : vector<1x1x128xf32> to vector<1x128xf32>
    %329 = vector.broadcast %328 : vector<1x128xf32> to vector<8x128xf32>
    %330 = arith.mulf %326, %329 : vector<8x128xf32>
    %c7_i32_240 = arith.constant 7 : i32
    %331 = tpu.dynamic_rotate %320 by %c7_i32_240 dim 1 : vector<8x128xf32>, i32 -> vector<8x128xf32>
    %c2_241 = arith.constant 2 : index
    %c0_242 = arith.constant 0 : index
    %c0_243 = arith.constant 0 : index
    %332 = vector.load %arg35[%c2_241, %c0_242, %c0_243] : memref<9x1x128xf32, #tpu.memory_space<vmem>>, vector<1x1x128xf32>
    %333 = vector.shape_cast %332 : vector<1x1x128xf32> to vector<1x128xf32>
    %334 = vector.broadcast %333 : vector<1x128xf32> to vector<8x128xf32>
    %335 = arith.mulf %331, %334 : vector<8x128xf32>
    %c1_i32_244 = arith.constant 1 : i32
    %336 = tpu.dynamic_rotate %320 by %c1_i32_244 dim 1 : vector<8x128xf32>, i32 -> vector<8x128xf32>
    %c3_245 = arith.constant 3 : index
    %c0_246 = arith.constant 0 : index
    %c0_247 = arith.constant 0 : index
    %337 = vector.load %arg35[%c3_245, %c0_246, %c0_247] : memref<9x1x128xf32, #tpu.memory_space<vmem>>, vector<1x1x128xf32>
    %338 = vector.shape_cast %337 : vector<1x1x128xf32> to vector<1x128xf32>
    %339 = vector.broadcast %338 : vector<1x128xf32> to vector<8x128xf32>
    %340 = arith.mulf %336, %339 : vector<8x128xf32>
    %c4_248 = arith.constant 4 : index
    %c0_249 = arith.constant 0 : index
    %c0_250 = arith.constant 0 : index
    %341 = vector.load %arg35[%c4_248, %c0_249, %c0_250] : memref<9x1x128xf32, #tpu.memory_space<vmem>>, vector<1x1x128xf32>
    %342 = vector.shape_cast %341 : vector<1x1x128xf32> to vector<1x128xf32>
    %343 = vector.broadcast %342 : vector<1x128xf32> to vector<8x128xf32>
    %344 = arith.mulf %320, %343 : vector<8x128xf32>
    %c127_i32_251 = arith.constant 127 : i32
    %345 = tpu.dynamic_rotate %320 by %c127_i32_251 dim 1 : vector<8x128xf32>, i32 -> vector<8x128xf32>
    %c5_252 = arith.constant 5 : index
    %c0_253 = arith.constant 0 : index
    %c0_254 = arith.constant 0 : index
    %346 = vector.load %arg35[%c5_252, %c0_253, %c0_254] : memref<9x1x128xf32, #tpu.memory_space<vmem>>, vector<1x1x128xf32>
    %347 = vector.shape_cast %346 : vector<1x1x128xf32> to vector<1x128xf32>
    %348 = vector.broadcast %347 : vector<1x128xf32> to vector<8x128xf32>
    %349 = arith.mulf %345, %348 : vector<8x128xf32>
    %c121_i32_255 = arith.constant 121 : i32
    %350 = tpu.dynamic_rotate %320 by %c121_i32_255 dim 1 : vector<8x128xf32>, i32 -> vector<8x128xf32>
    %c6_256 = arith.constant 6 : index
    %c0_257 = arith.constant 0 : index
    %c0_258 = arith.constant 0 : index
    %351 = vector.load %arg35[%c6_256, %c0_257, %c0_258] : memref<9x1x128xf32, #tpu.memory_space<vmem>>, vector<1x1x128xf32>
    %352 = vector.shape_cast %351 : vector<1x1x128xf32> to vector<1x128xf32>
    %353 = vector.broadcast %352 : vector<1x128xf32> to vector<8x128xf32>
    %354 = arith.mulf %350, %353 : vector<8x128xf32>
    %c120_i32_259 = arith.constant 120 : i32
    %355 = tpu.dynamic_rotate %320 by %c120_i32_259 dim 1 : vector<8x128xf32>, i32 -> vector<8x128xf32>
    %c7_260 = arith.constant 7 : index
    %c0_261 = arith.constant 0 : index
    %c0_262 = arith.constant 0 : index
    %356 = vector.load %arg35[%c7_260, %c0_261, %c0_262] : memref<9x1x128xf32, #tpu.memory_space<vmem>>, vector<1x1x128xf32>
    %357 = vector.shape_cast %356 : vector<1x1x128xf32> to vector<1x128xf32>
    %358 = vector.broadcast %357 : vector<1x128xf32> to vector<8x128xf32>
    %359 = arith.mulf %355, %358 : vector<8x128xf32>
    %c119_i32_263 = arith.constant 119 : i32
    %360 = tpu.dynamic_rotate %320 by %c119_i32_263 dim 1 : vector<8x128xf32>, i32 -> vector<8x128xf32>
    %c8_264 = arith.constant 8 : index
    %c0_265 = arith.constant 0 : index
    %c0_266 = arith.constant 0 : index
    %361 = vector.load %arg35[%c8_264, %c0_265, %c0_266] : memref<9x1x128xf32, #tpu.memory_space<vmem>>, vector<1x1x128xf32>
    %362 = vector.shape_cast %361 : vector<1x1x128xf32> to vector<1x128xf32>
    %363 = vector.broadcast %362 : vector<1x128xf32> to vector<8x128xf32>
    %364 = arith.mulf %360, %363 : vector<8x128xf32>
    %365 = tpu.concatenate %325, %330, %335, %340, %344, %349, %354, %359, %364 in 0 : vector<8x128xf32>, vector<8x128xf32>, vector<8x128xf32>, vector<8x128xf32>, vector<8x128xf32>, vector<8x128xf32>, vector<8x128xf32>, vector<8x128xf32>, vector<8x128xf32> -> vector<72x128xf32>
    %c0_267 = arith.constant 0 : index
    %c0_268 = arith.constant 0 : index
    %366 = vector.load %arg46[%c0_267, %c0_268] : memref<8x72xf32, #tpu.memory_space<vmem>>, vector<8x72xf32>
    %cst_269 = arith.constant dense<0.000000e+00> : vector<8x128xf32>
    %367 = tpu.matmul %366, %365, %cst_269 {dimension_numbers = #tpu.dot_dimension_numbers<[1], [0], [0], [1], [0, 0, 1, 1], [], []>} : vector<8x72xf32>, vector<72x128xf32>, vector<8x128xf32> -> vector<8x128xf32>
    %c0_270 = arith.constant 0 : index
    %c0_271 = arith.constant 0 : index
    %368 = vector.load %arg39[%c0_270, %c0_271] : memref<8x1xf32, #tpu.memory_space<vmem>>, vector<8x1xf32>
    %369 = vector.broadcast %368 : vector<8x1xf32> to vector<8x128xf32>
    %370 = arith.addf %367, %369 : vector<8x128xf32>
    %cst_272 = arith.constant 0.000000e+00 : f32
    %371 = vector.broadcast %cst_272 : f32 to vector<8x128xf32>
    %372 = arith.maximumf %370, %371 : vector<8x128xf32>
    %c0_273 = arith.constant 0 : index
    %c0_274 = arith.constant 0 : index
    %373 = vector.load %arg37[%c0_273, %c0_274] : memref<8x1xf32, #tpu.memory_space<vmem>>, vector<8x1xf32>
    %374 = vector.broadcast %373 : vector<8x1xf32> to vector<8x128xf32>
    %375 = arith.mulf %374, %372 : vector<8x128xf32>
    %376 = arith.addf %320, %375 : vector<8x128xf32>
    %c0_275 = arith.constant 0 : index
    %c0_276 = arith.constant 0 : index
    %377 = vector.load %arg41[%c0_275, %c0_276] : memref<16x8xf32, #tpu.memory_space<vmem>>, vector<16x8xf32>
    %cst_277 = arith.constant dense<0.000000e+00> : vector<16x128xf32>
    %378 = tpu.matmul %377, %376, %cst_277 {dimension_numbers = #tpu.dot_dimension_numbers<[1], [0], [0], [1], [0, 0, 1, 1], [], []>} : vector<16x8xf32>, vector<8x128xf32>, vector<16x128xf32> -> vector<16x128xf32>
    %c0_278 = arith.constant 0 : index
    %c0_279 = arith.constant 0 : index
    %379 = vector.load %arg40[%c0_278, %c0_279] : memref<16x1xf32, #tpu.memory_space<vmem>>, vector<16x1xf32>
    %380 = vector.broadcast %379 : vector<16x1xf32> to vector<16x128xf32>
    %381 = arith.addf %378, %380 : vector<16x128xf32>
    %c0_280 = arith.constant 0 : index
    %c0_281 = arith.constant 0 : index
    %382 = vector.load %arg24[%c0_280, %c0_281] : memref<128x512xf32, #tpu.memory_space<vmem>>, vector<128x512xf32>
    %cst_282 = arith.constant dense<0.000000e+00> : vector<16x512xf32>
    %383 = tpu.matmul %381, %382, %cst_282 {dimension_numbers = #tpu.dot_dimension_numbers<[1], [0], [0], [1], [0, 0, 1, 1], [], []>} : vector<16x128xf32>, vector<128x512xf32>, vector<16x512xf32> -> vector<16x512xf32>
    %c0_283 = arith.constant 0 : index
    %c0_284 = arith.constant 0 : index
    %384 = vector.load %arg20[%c0_283, %c0_284] : memref<8x16xf32, #tpu.memory_space<vmem>>, vector<8x16xf32>
    %cst_285 = arith.constant dense<0.000000e+00> : vector<8x512xf32>
    %385 = tpu.matmul %384, %383, %cst_285 {dimension_numbers = #tpu.dot_dimension_numbers<[1], [0], [0], [1], [0, 0, 1, 1], [], []>} : vector<8x16xf32>, vector<16x512xf32>, vector<8x512xf32> -> vector<8x512xf32>
    %c0_286 = arith.constant 0 : index
    %c0_287 = arith.constant 0 : index
    %386 = vector.load %arg19[%c0_286, %c0_287] : memref<8x8xf32, #tpu.memory_space<vmem>>, vector<8x8xf32>
    %cst_288 = arith.constant dense<0.000000e+00> : vector<8x512xf32>
    %387 = tpu.matmul %386, %119, %cst_288 {dimension_numbers = #tpu.dot_dimension_numbers<[1], [0], [0], [1], [0, 0, 1, 1], [], []>} : vector<8x8xf32>, vector<8x512xf32>, vector<8x512xf32> -> vector<8x512xf32>
    %388 = arith.addf %385, %387 : vector<8x512xf32>
    %c0_289 = arith.constant 0 : index
    %c0_290 = arith.constant 0 : index
    %389 = vector.load %arg18[%c0_289, %c0_290] : memref<8x1xf32, #tpu.memory_space<vmem>>, vector<8x1xf32>
    %390 = vector.broadcast %389 : vector<8x1xf32> to vector<8x512xf32>
    %391 = arith.addf %388, %390 : vector<8x512xf32>
    %cst_291 = arith.constant 0.000000e+00 : f32
    %392 = vector.broadcast %cst_291 : f32 to vector<8x512xf32>
    %393 = arith.maximumf %391, %392 : vector<8x512xf32>
    %c17_i32_292 = arith.constant 17 : i32
    %394 = tpu.dynamic_rotate %393 by %c17_i32_292 dim 1 : vector<8x512xf32>, i32 -> vector<8x512xf32>
    %c0_293 = arith.constant 0 : index
    %c0_294 = arith.constant 0 : index
    %c0_295 = arith.constant 0 : index
    %395 = vector.load %arg11[%c0_293, %c0_294, %c0_295] : memref<9x1x512xf32, #tpu.memory_space<vmem>>, vector<1x1x512xf32>
    %396 = vector.shape_cast %395 : vector<1x1x512xf32> to vector<1x512xf32>
    %397 = vector.broadcast %396 : vector<1x512xf32> to vector<8x512xf32>
    %398 = arith.mulf %394, %397 : vector<8x512xf32>
    %c16_i32_296 = arith.constant 16 : i32
    %399 = tpu.dynamic_rotate %393 by %c16_i32_296 dim 1 : vector<8x512xf32>, i32 -> vector<8x512xf32>
    %c1_297 = arith.constant 1 : index
    %c0_298 = arith.constant 0 : index
    %c0_299 = arith.constant 0 : index
    %400 = vector.load %arg11[%c1_297, %c0_298, %c0_299] : memref<9x1x512xf32, #tpu.memory_space<vmem>>, vector<1x1x512xf32>
    %401 = vector.shape_cast %400 : vector<1x1x512xf32> to vector<1x512xf32>
    %402 = vector.broadcast %401 : vector<1x512xf32> to vector<8x512xf32>
    %403 = arith.mulf %399, %402 : vector<8x512xf32>
    %c15_i32_300 = arith.constant 15 : i32
    %404 = tpu.dynamic_rotate %393 by %c15_i32_300 dim 1 : vector<8x512xf32>, i32 -> vector<8x512xf32>
    %c2_301 = arith.constant 2 : index
    %c0_302 = arith.constant 0 : index
    %c0_303 = arith.constant 0 : index
    %405 = vector.load %arg11[%c2_301, %c0_302, %c0_303] : memref<9x1x512xf32, #tpu.memory_space<vmem>>, vector<1x1x512xf32>
    %406 = vector.shape_cast %405 : vector<1x1x512xf32> to vector<1x512xf32>
    %407 = vector.broadcast %406 : vector<1x512xf32> to vector<8x512xf32>
    %408 = arith.mulf %404, %407 : vector<8x512xf32>
    %c1_i32_304 = arith.constant 1 : i32
    %409 = tpu.dynamic_rotate %393 by %c1_i32_304 dim 1 : vector<8x512xf32>, i32 -> vector<8x512xf32>
    %c3_305 = arith.constant 3 : index
    %c0_306 = arith.constant 0 : index
    %c0_307 = arith.constant 0 : index
    %410 = vector.load %arg11[%c3_305, %c0_306, %c0_307] : memref<9x1x512xf32, #tpu.memory_space<vmem>>, vector<1x1x512xf32>
    %411 = vector.shape_cast %410 : vector<1x1x512xf32> to vector<1x512xf32>
    %412 = vector.broadcast %411 : vector<1x512xf32> to vector<8x512xf32>
    %413 = arith.mulf %409, %412 : vector<8x512xf32>
    %c4_308 = arith.constant 4 : index
    %c0_309 = arith.constant 0 : index
    %c0_310 = arith.constant 0 : index
    %414 = vector.load %arg11[%c4_308, %c0_309, %c0_310] : memref<9x1x512xf32, #tpu.memory_space<vmem>>, vector<1x1x512xf32>
    %415 = vector.shape_cast %414 : vector<1x1x512xf32> to vector<1x512xf32>
    %416 = vector.broadcast %415 : vector<1x512xf32> to vector<8x512xf32>
    %417 = arith.mulf %393, %416 : vector<8x512xf32>
    %c511_i32_311 = arith.constant 511 : i32
    %418 = tpu.dynamic_rotate %393 by %c511_i32_311 dim 1 : vector<8x512xf32>, i32 -> vector<8x512xf32>
    %c5_312 = arith.constant 5 : index
    %c0_313 = arith.constant 0 : index
    %c0_314 = arith.constant 0 : index
    %419 = vector.load %arg11[%c5_312, %c0_313, %c0_314] : memref<9x1x512xf32, #tpu.memory_space<vmem>>, vector<1x1x512xf32>
    %420 = vector.shape_cast %419 : vector<1x1x512xf32> to vector<1x512xf32>
    %421 = vector.broadcast %420 : vector<1x512xf32> to vector<8x512xf32>
    %422 = arith.mulf %418, %421 : vector<8x512xf32>
    %c497_i32_315 = arith.constant 497 : i32
    %423 = tpu.dynamic_rotate %393 by %c497_i32_315 dim 1 : vector<8x512xf32>, i32 -> vector<8x512xf32>
    %c6_316 = arith.constant 6 : index
    %c0_317 = arith.constant 0 : index
    %c0_318 = arith.constant 0 : index
    %424 = vector.load %arg11[%c6_316, %c0_317, %c0_318] : memref<9x1x512xf32, #tpu.memory_space<vmem>>, vector<1x1x512xf32>
    %425 = vector.shape_cast %424 : vector<1x1x512xf32> to vector<1x512xf32>
    %426 = vector.broadcast %425 : vector<1x512xf32> to vector<8x512xf32>
    %427 = arith.mulf %423, %426 : vector<8x512xf32>
    %c496_i32_319 = arith.constant 496 : i32
    %428 = tpu.dynamic_rotate %393 by %c496_i32_319 dim 1 : vector<8x512xf32>, i32 -> vector<8x512xf32>
    %c7_320 = arith.constant 7 : index
    %c0_321 = arith.constant 0 : index
    %c0_322 = arith.constant 0 : index
    %429 = vector.load %arg11[%c7_320, %c0_321, %c0_322] : memref<9x1x512xf32, #tpu.memory_space<vmem>>, vector<1x1x512xf32>
    %430 = vector.shape_cast %429 : vector<1x1x512xf32> to vector<1x512xf32>
    %431 = vector.broadcast %430 : vector<1x512xf32> to vector<8x512xf32>
    %432 = arith.mulf %428, %431 : vector<8x512xf32>
    %c495_i32_323 = arith.constant 495 : i32
    %433 = tpu.dynamic_rotate %393 by %c495_i32_323 dim 1 : vector<8x512xf32>, i32 -> vector<8x512xf32>
    %c8_324 = arith.constant 8 : index
    %c0_325 = arith.constant 0 : index
    %c0_326 = arith.constant 0 : index
    %434 = vector.load %arg11[%c8_324, %c0_325, %c0_326] : memref<9x1x512xf32, #tpu.memory_space<vmem>>, vector<1x1x512xf32>
    %435 = vector.shape_cast %434 : vector<1x1x512xf32> to vector<1x512xf32>
    %436 = vector.broadcast %435 : vector<1x512xf32> to vector<8x512xf32>
    %437 = arith.mulf %433, %436 : vector<8x512xf32>
    %438 = tpu.concatenate %398, %403, %408, %413, %417, %422, %427, %432, %437 in 0 : vector<8x512xf32>, vector<8x512xf32>, vector<8x512xf32>, vector<8x512xf32>, vector<8x512xf32>, vector<8x512xf32>, vector<8x512xf32>, vector<8x512xf32>, vector<8x512xf32> -> vector<72x512xf32>
    %c0_327 = arith.constant 0 : index
    %c0_328 = arith.constant 0 : index
    %439 = vector.load %arg21[%c0_327, %c0_328] : memref<8x72xf32, #tpu.memory_space<vmem>>, vector<8x72xf32>
    %cst_329 = arith.constant dense<0.000000e+00> : vector<8x512xf32>
    %440 = tpu.matmul %439, %438, %cst_329 {dimension_numbers = #tpu.dot_dimension_numbers<[1], [0], [0], [1], [0, 0, 1, 1], [], []>} : vector<8x72xf32>, vector<72x512xf32>, vector<8x512xf32> -> vector<8x512xf32>
    %c0_330 = arith.constant 0 : index
    %c0_331 = arith.constant 0 : index
    %441 = vector.load %arg14[%c0_330, %c0_331] : memref<8x1xf32, #tpu.memory_space<vmem>>, vector<8x1xf32>
    %442 = vector.broadcast %441 : vector<8x1xf32> to vector<8x512xf32>
    %443 = arith.addf %440, %442 : vector<8x512xf32>
    %cst_332 = arith.constant 0.000000e+00 : f32
    %444 = vector.broadcast %cst_332 : f32 to vector<8x512xf32>
    %445 = arith.maximumf %443, %444 : vector<8x512xf32>
    %c0_333 = arith.constant 0 : index
    %c0_334 = arith.constant 0 : index
    %446 = vector.load %arg12[%c0_333, %c0_334] : memref<8x1xf32, #tpu.memory_space<vmem>>, vector<8x1xf32>
    %447 = vector.broadcast %446 : vector<8x1xf32> to vector<8x512xf32>
    %448 = arith.mulf %447, %445 : vector<8x512xf32>
    %449 = arith.addf %393, %448 : vector<8x512xf32>
    %c17_i32_335 = arith.constant 17 : i32
    %450 = tpu.dynamic_rotate %449 by %c17_i32_335 dim 1 : vector<8x512xf32>, i32 -> vector<8x512xf32>
    %c0_336 = arith.constant 0 : index
    %c0_337 = arith.constant 0 : index
    %c0_338 = arith.constant 0 : index
    %451 = vector.load %arg11[%c0_336, %c0_337, %c0_338] : memref<9x1x512xf32, #tpu.memory_space<vmem>>, vector<1x1x512xf32>
    %452 = vector.shape_cast %451 : vector<1x1x512xf32> to vector<1x512xf32>
    %453 = vector.broadcast %452 : vector<1x512xf32> to vector<8x512xf32>
    %454 = arith.mulf %450, %453 : vector<8x512xf32>
    %c16_i32_339 = arith.constant 16 : i32
    %455 = tpu.dynamic_rotate %449 by %c16_i32_339 dim 1 : vector<8x512xf32>, i32 -> vector<8x512xf32>
    %c1_340 = arith.constant 1 : index
    %c0_341 = arith.constant 0 : index
    %c0_342 = arith.constant 0 : index
    %456 = vector.load %arg11[%c1_340, %c0_341, %c0_342] : memref<9x1x512xf32, #tpu.memory_space<vmem>>, vector<1x1x512xf32>
    %457 = vector.shape_cast %456 : vector<1x1x512xf32> to vector<1x512xf32>
    %458 = vector.broadcast %457 : vector<1x512xf32> to vector<8x512xf32>
    %459 = arith.mulf %455, %458 : vector<8x512xf32>
    %c15_i32_343 = arith.constant 15 : i32
    %460 = tpu.dynamic_rotate %449 by %c15_i32_343 dim 1 : vector<8x512xf32>, i32 -> vector<8x512xf32>
    %c2_344 = arith.constant 2 : index
    %c0_345 = arith.constant 0 : index
    %c0_346 = arith.constant 0 : index
    %461 = vector.load %arg11[%c2_344, %c0_345, %c0_346] : memref<9x1x512xf32, #tpu.memory_space<vmem>>, vector<1x1x512xf32>
    %462 = vector.shape_cast %461 : vector<1x1x512xf32> to vector<1x512xf32>
    %463 = vector.broadcast %462 : vector<1x512xf32> to vector<8x512xf32>
    %464 = arith.mulf %460, %463 : vector<8x512xf32>
    %c1_i32_347 = arith.constant 1 : i32
    %465 = tpu.dynamic_rotate %449 by %c1_i32_347 dim 1 : vector<8x512xf32>, i32 -> vector<8x512xf32>
    %c3_348 = arith.constant 3 : index
    %c0_349 = arith.constant 0 : index
    %c0_350 = arith.constant 0 : index
    %466 = vector.load %arg11[%c3_348, %c0_349, %c0_350] : memref<9x1x512xf32, #tpu.memory_space<vmem>>, vector<1x1x512xf32>
    %467 = vector.shape_cast %466 : vector<1x1x512xf32> to vector<1x512xf32>
    %468 = vector.broadcast %467 : vector<1x512xf32> to vector<8x512xf32>
    %469 = arith.mulf %465, %468 : vector<8x512xf32>
    %c4_351 = arith.constant 4 : index
    %c0_352 = arith.constant 0 : index
    %c0_353 = arith.constant 0 : index
    %470 = vector.load %arg11[%c4_351, %c0_352, %c0_353] : memref<9x1x512xf32, #tpu.memory_space<vmem>>, vector<1x1x512xf32>
    %471 = vector.shape_cast %470 : vector<1x1x512xf32> to vector<1x512xf32>
    %472 = vector.broadcast %471 : vector<1x512xf32> to vector<8x512xf32>
    %473 = arith.mulf %449, %472 : vector<8x512xf32>
    %c511_i32_354 = arith.constant 511 : i32
    %474 = tpu.dynamic_rotate %449 by %c511_i32_354 dim 1 : vector<8x512xf32>, i32 -> vector<8x512xf32>
    %c5_355 = arith.constant 5 : index
    %c0_356 = arith.constant 0 : index
    %c0_357 = arith.constant 0 : index
    %475 = vector.load %arg11[%c5_355, %c0_356, %c0_357] : memref<9x1x512xf32, #tpu.memory_space<vmem>>, vector<1x1x512xf32>
    %476 = vector.shape_cast %475 : vector<1x1x512xf32> to vector<1x512xf32>
    %477 = vector.broadcast %476 : vector<1x512xf32> to vector<8x512xf32>
    %478 = arith.mulf %474, %477 : vector<8x512xf32>
    %c497_i32_358 = arith.constant 497 : i32
    %479 = tpu.dynamic_rotate %449 by %c497_i32_358 dim 1 : vector<8x512xf32>, i32 -> vector<8x512xf32>
    %c6_359 = arith.constant 6 : index
    %c0_360 = arith.constant 0 : index
    %c0_361 = arith.constant 0 : index
    %480 = vector.load %arg11[%c6_359, %c0_360, %c0_361] : memref<9x1x512xf32, #tpu.memory_space<vmem>>, vector<1x1x512xf32>
    %481 = vector.shape_cast %480 : vector<1x1x512xf32> to vector<1x512xf32>
    %482 = vector.broadcast %481 : vector<1x512xf32> to vector<8x512xf32>
    %483 = arith.mulf %479, %482 : vector<8x512xf32>
    %c496_i32_362 = arith.constant 496 : i32
    %484 = tpu.dynamic_rotate %449 by %c496_i32_362 dim 1 : vector<8x512xf32>, i32 -> vector<8x512xf32>
    %c7_363 = arith.constant 7 : index
    %c0_364 = arith.constant 0 : index
    %c0_365 = arith.constant 0 : index
    %485 = vector.load %arg11[%c7_363, %c0_364, %c0_365] : memref<9x1x512xf32, #tpu.memory_space<vmem>>, vector<1x1x512xf32>
    %486 = vector.shape_cast %485 : vector<1x1x512xf32> to vector<1x512xf32>
    %487 = vector.broadcast %486 : vector<1x512xf32> to vector<8x512xf32>
    %488 = arith.mulf %484, %487 : vector<8x512xf32>
    %c495_i32_366 = arith.constant 495 : i32
    %489 = tpu.dynamic_rotate %449 by %c495_i32_366 dim 1 : vector<8x512xf32>, i32 -> vector<8x512xf32>
    %c8_367 = arith.constant 8 : index
    %c0_368 = arith.constant 0 : index
    %c0_369 = arith.constant 0 : index
    %490 = vector.load %arg11[%c8_367, %c0_368, %c0_369] : memref<9x1x512xf32, #tpu.memory_space<vmem>>, vector<1x1x512xf32>
    %491 = vector.shape_cast %490 : vector<1x1x512xf32> to vector<1x512xf32>
    %492 = vector.broadcast %491 : vector<1x512xf32> to vector<8x512xf32>
    %493 = arith.mulf %489, %492 : vector<8x512xf32>
    %494 = tpu.concatenate %454, %459, %464, %469, %473, %478, %483, %488, %493 in 0 : vector<8x512xf32>, vector<8x512xf32>, vector<8x512xf32>, vector<8x512xf32>, vector<8x512xf32>, vector<8x512xf32>, vector<8x512xf32>, vector<8x512xf32>, vector<8x512xf32> -> vector<72x512xf32>
    %c0_370 = arith.constant 0 : index
    %c0_371 = arith.constant 0 : index
    %495 = vector.load %arg22[%c0_370, %c0_371] : memref<8x72xf32, #tpu.memory_space<vmem>>, vector<8x72xf32>
    %cst_372 = arith.constant dense<0.000000e+00> : vector<8x512xf32>
    %496 = tpu.matmul %495, %494, %cst_372 {dimension_numbers = #tpu.dot_dimension_numbers<[1], [0], [0], [1], [0, 0, 1, 1], [], []>} : vector<8x72xf32>, vector<72x512xf32>, vector<8x512xf32> -> vector<8x512xf32>
    %c0_373 = arith.constant 0 : index
    %c0_374 = arith.constant 0 : index
    %497 = vector.load %arg15[%c0_373, %c0_374] : memref<8x1xf32, #tpu.memory_space<vmem>>, vector<8x1xf32>
    %498 = vector.broadcast %497 : vector<8x1xf32> to vector<8x512xf32>
    %499 = arith.addf %496, %498 : vector<8x512xf32>
    %cst_375 = arith.constant 0.000000e+00 : f32
    %500 = vector.broadcast %cst_375 : f32 to vector<8x512xf32>
    %501 = arith.maximumf %499, %500 : vector<8x512xf32>
    %c0_376 = arith.constant 0 : index
    %c0_377 = arith.constant 0 : index
    %502 = vector.load %arg13[%c0_376, %c0_377] : memref<8x1xf32, #tpu.memory_space<vmem>>, vector<8x1xf32>
    %503 = vector.broadcast %502 : vector<8x1xf32> to vector<8x512xf32>
    %504 = arith.mulf %503, %501 : vector<8x512xf32>
    %505 = arith.addf %449, %504 : vector<8x512xf32>
    %c0_378 = arith.constant 0 : index
    %c0_379 = arith.constant 0 : index
    %506 = vector.load %arg17[%c0_378, %c0_379] : memref<8x8xf32, #tpu.memory_space<vmem>>, vector<8x8xf32>
    %cst_380 = arith.constant dense<0.000000e+00> : vector<8x512xf32>
    %507 = tpu.matmul %506, %505, %cst_380 {dimension_numbers = #tpu.dot_dimension_numbers<[1], [0], [0], [1], [0, 0, 1, 1], [], []>} : vector<8x8xf32>, vector<8x512xf32>, vector<8x512xf32> -> vector<8x512xf32>
    %c0_381 = arith.constant 0 : index
    %c0_382 = arith.constant 0 : index
    %508 = vector.load %arg16[%c0_381, %c0_382] : memref<8x1xf32, #tpu.memory_space<vmem>>, vector<8x1xf32>
    %509 = vector.broadcast %508 : vector<8x1xf32> to vector<8x512xf32>
    %510 = arith.addf %507, %509 : vector<8x512xf32>
    %c0_383 = arith.constant 0 : index
    %c0_384 = arith.constant 0 : index
    %511 = vector.load %arg49[%c0_383, %c0_384] : memref<8x512xf32, #tpu.memory_space<vmem>>, vector<8x512xf32>
    tpu.vector_store %arg49[%c0_383, %c0_384], %510 {strides = array<i32>} : memref<8x512xf32, #tpu.memory_space<vmem>>, vector<8x512xf32>,
    return
  }
}

</mosaic_0001>

<bundles_post_ra>
// kernel: _lambda_.1
= control target key start
LH: loop header
LB: loop body
LE: loop exit
PB: predicated region body
PF: predicated region fallthrough
CT: control target
= control target key end

     0   :  { %s5676_s6 = smov 1   ;;  %s5677_s10 = smov 2   ;;  %s7442_s0 = inlined_call_operand.smem [shape: u32[50], index: -1, kind: input, shape index: {}] }
   0x1   :  { %s5775_s5 = sld [smem:[%s7442_s0]]   ;;  %s5678_s14 = smov 3  }
   0x2   :  { %s5780_s9 = sld [smem:[%s7442_s0 + %s5676_s6]]   ;;  %s5679_s18 = smov 4  }
   0x3   :  { %s5785_s13 = sld [smem:[%s7442_s0 + %s5677_s10]]   ;;  %s5680_s22 = smov 5  }
   0x4   :  { %s5790_s17 = sld [smem:[%s7442_s0 + %s5678_s14]]   ;;  %s5681_s26 = smov 6  }
   0x5   :  { %s5795_s21 = sld [smem:[%s7442_s0 + %s5679_s18]]   ;;  %s5682_s30 = smov 7  }
   0x6   :  { %s5800_s25 = sld [smem:[%s7442_s0 + %s5680_s22]]   ;;  %s5683_s4 = smov 8  }
   0x7   :  { %7496 = sst [smem:[#allocation49_spill]] %s5775_s5  ;;  %s5684_s10 = smov 9  }
   0x8   :  { %s5805_s29 = sld [smem:[%s7442_s0 + %s5681_s26]]   ;;  %s5685_s15 = smov 10  }
   0x9   :  { %s5810_s3 = sld [smem:[%s7442_s0 + %s5682_s30]]   ;;  %s5686_s20 = smov 11  }
   0xa   :  { %s5815_s8 = sld [smem:[%s7442_s0 + %s5683_s4]]   ;;  %s5687_s26 = smov 12  }
   0xb   :  { %s5820_s14 = sld [smem:[%s7442_s0 + %s5684_s10]]   ;;  %s5688_s1 = smov 13  }
   0xc   :  { %7497 = sst [smem:[#allocation50_spill]] %s5800_s25  ;;  %s5689_s7 = smov 14  }
   0xd   :  { %s5825_s19 = sld [smem:[%s7442_s0 + %s5685_s15]]   ;;  %s5690_s15 = smov 15  }
   0xe   :  { %7498 = sst [smem:[#allocation51_spill]] %s5805_s29  ;;  %s5691_s22 = smov 16  }
   0xf   :  { %s5830_s24 = sld [smem:[%s7442_s0 + %s5686_s20]]   ;;  %s5692_s28 = smov 17  }
  0x10   :  { %s5835_s30 = sld [smem:[%s7442_s0 + %s5687_s26]]  }
  0x11   :  { %7499 = sst [smem:[#allocation52_spill]] %s5820_s14 }
  0x12   :  { %s5840_s6 = sld [smem:[%s7442_s0 + %s5688_s1]]  }
  0x13   :  { %s5845_s12 = sld [smem:[%s7442_s0 + %s5689_s7]]   ;;  %s5693_s7 = smov 18  }
  0x14   :  { %s5850_s20 = sld [smem:[%s7442_s0 + %s5690_s15]]   ;;  %s5694_s15 = smov 19  }
  0x15   :  { %7500 = sst [smem:[#allocation53_spill]] %s5830_s24 }
  0x16   :  { %7501 = sst [smem:[#allocation54_spill]] %s5835_s30 }
  0x17   :  { %s5855_s27 = sld [smem:[%s7442_s0 + %s5691_s22]]   ;;  %s5695_s22 = smov 20  }
  0x18   :  { %s5860_s4 = sld [smem:[%s7442_s0 + %s5692_s28]]   ;;  %s5696_s28 = smov 21  }
  0x19   :  { %7502 = sst [smem:[#allocation55_spill]] %s5845_s12 }
  0x1a   :  { %s5865_s29 = sld [smem:[%s7442_s0 + %s5693_s7]]   ;;  %s5697_s7 = smov 22  }
  0x1b   :  { %s5870_s25 = sld [smem:[%s7442_s0 + %s5694_s15]]   ;;  %s5698_s15 = smov 23  }
  0x1c   :  { %s5875_s24 = sld [smem:[%s7442_s0 + %s5695_s22]]   ;;  %s5699_s22 = smov 24  }
  0x1d   :  { %7503 = sst [smem:[#allocation56_spill]] %s5855_s27 }
  0x1e   :  { %s5880_s5 = sld [smem:[%s7442_s0 + %s5696_s28]]   ;;  %s5700_s28 = smov 25  }
  0x1f   :  { %s5890_s27 = sld [smem:[%s7442_s0 + %s5698_s15]]   ;;  %s5702_s15 = smov 27  }
  0x20   :  { %7504 = sst [smem:[#allocation57_spill]] %s5865_s29 }
  0x21   :  { %s5885_s29 = sld [smem:[%s7442_s0 + %s5697_s7]]   ;;  %s5701_s7 = smov 26  }
  0x22   :  { %7505 = sst [smem:[#allocation58_spill]] %s5875_s24 }
  0x23   :  { %s5895_s24 = sld [smem:[%s7442_s0 + %s5699_s22]]   ;;  %s5703_s22 = smov 28  }
  0x24   :  { %s5900_s12 = sld [smem:[%s7442_s0 + %s5700_s28]]   ;;  %s5704_s28 = smov 29  }
  0x25   :  { %s5910_s30 = sld [smem:[%s7442_s0 + %s5702_s15]]   ;;  %s5706_s15 = smov 31  }
  0x27   :  { %7506 = sst [smem:[#allocation59_spill]] %s5885_s29 }
  0x28   :  { %s5905_s29 = sld [smem:[%s7442_s0 + %s5701_s7]]   ;;  %s5705_s7 = smov 30  }
  0x29   :  { %7507 = sst [smem:[#allocation60_spill]] %s5895_s24 }
  0x2a   :  { %7508 = sst [smem:[#allocation61_spill]] %s5900_s12 }
  0x2b   :  { %7510 = sst [smem:[#allocation63_spill]] %s5910_s30 }
  0x2c   :  { %s5915_s24 = sld [smem:[%s7442_s0 + %s5703_s22]]   ;;  %s5707_s22 = smov 32  }
  0x2d   :  { %s5920_s12 = sld [smem:[%s7442_s0 + %s5704_s28]]   ;;  %s5708_s28 = smov 33  }
  0x2e   :  { %7509 = sst [smem:[#allocation62_spill]] %s5905_s29 }
  0x2f   :  { %s5925_s29 = sld [smem:[%s7442_s0 + %s5705_s7]]   ;;  %s5709_s7 = smov 34  }
  0x30   :  { %s5930_s30 = sld [smem:[%s7442_s0 + %s5706_s15]]   ;;  %s5710_s15 = smov 35  }
  0x32   :  { %7511 = sst [smem:[#allocation64_spill]] %s5915_s24 }
  0x33   :  { %7512 = sst [smem:[#allocation65_spill]] %s5920_s12 }
  0x34   :  { %s5935_s24 = sld [smem:[%s7442_s0 + %s5707_s22]]   ;;  %s5711_s22 = smov 36  }
  0x35   :  { %7513 = sst [smem:[#allocation66_spill]] %s5925_s29 }
  0x36   :  { %7514 = sst [smem:[#allocation67_spill]] %s5930_s30 }
  0x37   :  { %s5940_s12 = sld [smem:[%s7442_s0 + %s5708_s28]]   ;;  %s5712_s28 = smov 37  }
  0x38   :  { %s5945_s29 = sld [smem:[%s7442_s0 + %s5709_s7]]   ;;  %s5713_s7 = smov 38  }
  0x39   :  { %s5950_s30 = sld [smem:[%s7442_s0 + %s5710_s15]]   ;;  %s5714_s15 = smov 39  }
  0x3a   :  { %s5955_s14 = sld [smem:[%s7442_s0 + %s5711_s22]]   ;;  %s5715_s22 = smov 40  }
  0x3d   :  { %7515 = sst [smem:[#allocation68_spill]] %s5940_s12 }
  0x3e   :  { %7516 = sst [smem:[#allocation69_spill]] %s5945_s29 }
  0x3f   :  { %7517 = sst [smem:[#allocation70_spill]] %s5950_s30 }
  0x40   :  { %7518 = sst [smem:[#allocation71_spill]] %s5955_s14 }
  0x41   :  { %s5960_s12 = sld [smem:[%s7442_s0 + %s5712_s28]]   ;;  %s5716_s28 = smov 41  }
  0x42   :  { %s5965_s29 = sld [smem:[%s7442_s0 + %s5713_s7]]   ;;  %s5717_s7 = smov 42  }
  0x43   :  { %s5970_s30 = sld [smem:[%s7442_s0 + %s5714_s15]]   ;;  %s5718_s15 = smov 43  }
  0x44   :  { %s5975_s14 = sld [smem:[%s7442_s0 + %s5715_s22]]   ;;  %s5719_s22 = smov 44  }
  0x47   :  { %7519 = sst [smem:[#allocation72_spill]] %s5960_s12 }
  0x48   :  { %7520 = sst [smem:[#allocation73_spill]] %s5965_s29 }
  0x49   :  { %7521 = sst [smem:[#allocation74_spill]] %s5970_s30 }
  0x4a   :  { %7522 = sst [smem:[#allocation75_spill]] %s5975_s14 }
  0x4b   :  { %s5980_s12 = sld [smem:[%s7442_s0 + %s5716_s28]]   ;;  %s5720_s28 = smov 45  }
  0x4c   :  { %s5985_s29 = sld [smem:[%s7442_s0 + %s5717_s7]]   ;;  %s5721_s7 = smov 46  }
  0x4d   :  { %s5990_s30 = sld [smem:[%s7442_s0 + %s5718_s15]]   ;;  %s5722_s15 = smov 47  }
  0x4e   :  { %s5995_s14 = sld [smem:[%s7442_s0 + %s5719_s22]]   ;;  %s5723_s22 = smov 48  }
  0x51   :  { %7523 = sst [smem:[#allocation76_spill]] %s5980_s12 }
  0x52   :  { %7524 = sst [smem:[#allocation77_spill]] %s5985_s29 }
  0x53   :  { %7525 = sst [smem:[#allocation78_spill]] %s5990_s30 }
  0x54   :  { %7526 = sst [smem:[#allocation79_spill]] %s5995_s14 }
  0x55   :  { %s6000_s12 = sld [smem:[%s7442_s0 + %s5720_s28]]   ;;  %s5724_s28 = smov 49  }
  0x56   :  { %s6005_s29 = sld [smem:[%s7442_s0 + %s5721_s7]]  }
  0x57   :  { %s6010_s30 = sld [smem:[%s7442_s0 + %s5722_s15]]  }
  0x58   :  { %s6015_s14 = sld [smem:[%s7442_s0 + %s5723_s22]]  }
  0x5b   :  { %7527 = sst [smem:[#allocation80_spill]] %s6000_s12 }
  0x5c   :  { %s6020_s12 = sld [smem:[%s7442_s0 + %s5724_s28]]  }
  0x5d   :  { %104 = vsyncpa [#allocation3], 0 }
  0x5e   :  { %105 = vsyncpa [#allocation5], 0 }
  0x5f   :  { %106 = vsyncpa [#allocation8], 0 }
  0x60   :  { %107 = vsyncpa [#allocation11], 0 }
  0x61   :  { %108 = vsyncpa [#allocation14], 0 }
  0x62   :  { %109 = vsyncpa [#allocation17], 0 }
  0x63   :  { %110 = vsyncpa [#allocation20], 0 }
  0x64   :  { %111 = vsyncpa [#allocation23], 0 }
  0x65   :  { %112 = vsyncpa [#allocation26], 0 }
  0x66   :  { %113 = vsyncpa [#allocation29], 0 }
  0x67   :  { %114 = vsyncpa [#allocation32], 0 }
  0x68   :  { %115 = vsyncpa [#allocation35], 0  ;;  %s5725_s7 = smov [#allocation4]   ;;  %s5726_s11 = smov [#allocation7]  }
  0x69   :  { %s134_s10 = sshll.u32 %s5725_s7, 4  ;;  %s154_s0 = sshll.u32 %s5726_s11, 4  ;;  %s135_s10 = int_to_ptr.vmem [resolvable:$true] %s134_s10  ;;  %s155_s0 = int_to_ptr.vmem [resolvable:$true] %s154_s0 }
  0x6a   :  { %s5146_s15 = scalar_lea.hbm %s5785_s13, 128 }
  0x6b   :  { %p5147_p0 = scmp.ne.s32.totalorder %s5785_s13, %s5146_s15  ;;  %p5150_p1 = scmp.lt.u32.totalorder %s5146_s15, %s5785_s13 }
  0x6d   :  { %p5152_p2 = pnand %p5150_p1, %p5147_p0 }
  0x6f   :  { %5155 = shalt.err (!%p5152_p2)
}
  0x70   :  { %s5156_s16 = scalar_lea.vmem %s135_s10, 128  ;;  %p5161_p4 = scmp.lt.s32.totalorder %s135_s10, %s135_s10 }
  0x71   :  { %p5157_p3 = scmp.ne.s32.totalorder %s135_s10, %s5156_s16  ;;  %p5162_p5 = scmp.lt.s32.totalorder %s5156_s16, %s5156_s16 }
  0x73   :  { %p5163_p6 = por %p5162_p5, %p5161_p4 }
  0x75   :  { %p5164_p7 = pnand %p5163_p6, %p5157_p3 }
  0x77   :  { %5167 = shalt.err (!%p5164_p7)
}
  0x78   :  { %137 = dma.hbm_to_vmem [thread:$0]  %s5785_s13, 128, %s135_s10, [#allocation5]  }
  0x79   :  { %s5168_s18 = scalar_lea.hbm %s5795_s21, 128 }
  0x7a   :  { %p5169_p8 = scmp.ne.s32.totalorder %s5795_s21, %s5168_s18  ;;  %p5172_p9 = scmp.lt.u32.totalorder %s5168_s18, %s5795_s21 }
  0x7c   :  { %p5174_p10 = pnand %p5172_p9, %p5169_p8 }
  0x7e   :  { %5177 = shalt.err (!%p5174_p10)
}
  0x7f   :  { %s5178_s22 = scalar_lea.vmem %s155_s0, 128  ;;  %p5183_p12 = scmp.lt.s32.totalorder %s155_s0, %s155_s0 }
  0x80   :  { %p5179_p11 = scmp.ne.s32.totalorder %s155_s0, %s5178_s22  ;;  %p5184_p13 = scmp.lt.s32.totalorder %s5178_s22, %s5178_s22 }
  0x82   :  { %p5185_p0 = por %p5184_p13, %p5183_p12 }
  0x84   :  { %p5186_p1 = pnand %p5185_p0, %p5179_p11 }
  0x86   :  { %5189 = shalt.err (!%p5186_p1)
}
  0x87   :  { %157 = dma.hbm_to_vmem [thread:$0]  %s5795_s21, 128, %s155_s0, [#allocation8]  }
  0x88   :  { %s5727_s23 = smov [#allocation10]   ;;  %s5728_s13 = smov [#allocation13]  }
  0x89   :  { %s178_s26 = sshll.u32 %s5727_s23, 4  ;;  %s198_s28 = sshll.u32 %s5728_s13, 4  ;;  %s179_s26 = int_to_ptr.vmem [resolvable:$true] %s178_s26  ;;  %s199_s28 = int_to_ptr.vmem [resolvable:$true] %s198_s28 }
  0x8a   :  { %s5190_s1 = scalar_lea.hbm %s5815_s8, 128 }
  0x8b   :  { %p5191_p2 = scmp.ne.s32.totalorder %s5815_s8, %s5190_s1  ;;  %p5194_p3 = scmp.lt.u32.totalorder %s5190_s1, %s5815_s8 }
  0x8d   :  { %p5196_p4 = pnand %p5194_p3, %p5191_p2 }
  0x8f   :  { %5199 = shalt.err (!%p5196_p4)
}
  0x90   :  { %s5200_s2 = scalar_lea.vmem %s179_s26, 128  ;;  %p5205_p6 = scmp.lt.s32.totalorder %s179_s26, %s179_s26 }
  0x91   :  { %p5201_p5 = scmp.ne.s32.totalorder %s179_s26, %s5200_s2  ;;  %p5206_p7 = scmp.lt.s32.totalorder %s5200_s2, %s5200_s2 }
  0x93   :  { %p5207_p8 = por %p5206_p7, %p5205_p6 }
  0x95   :  { %p5208_p9 = pnand %p5207_p8, %p5201_p5 }
  0x97   :  { %5211 = shalt.err (!%p5208_p9)
}
  0x98   :  { %181 = dma.hbm_to_vmem [thread:$0]  %s5815_s8, 128, %s179_s26, [#allocation11]  }
  0x99   :  { %s5212_s21 = scalar_lea.hbm %s5825_s19, 128 }
  0x9a   :  { %p5213_p10 = scmp.ne.s32.totalorder %s5825_s19, %s5212_s21  ;;  %p5216_p11 = scmp.lt.u32.totalorder %s5212_s21, %s5825_s19 }
  0x9c   :  { %p5218_p12 = pnand %p5216_p11, %p5213_p10 }
  0x9e   :  { %5221 = shalt.err (!%p5218_p12)
}
  0x9f   :  { %s5222_s7 = scalar_lea.vmem %s199_s28, 128  ;;  %p5227_p0 = scmp.lt.s32.totalorder %s199_s28, %s199_s28 }
  0xa0   :  { %p5223_p13 = scmp.ne.s32.totalorder %s199_s28, %s5222_s7  ;;  %p5228_p1 = scmp.lt.s32.totalorder %s5222_s7, %s5222_s7 }
  0xa2   :  { %p5229_p2 = por %p5228_p1, %p5227_p0 }
  0xa4   :  { %p5230_p3 = pnand %p5229_p2, %p5223_p13 }
  0xa6   :  { %5233 = shalt.err (!%p5230_p3)
}
  0xa7   :  { %201 = dma.hbm_to_vmem [thread:$0]  %s5825_s19, 128, %s199_s28, [#allocation14]  }
  0xa8   :  { %s5729_s10 = smov [#allocation16]   ;;  %s5730_s8 = smov [#allocation19]  }
  0xa9   :  { %s220_s11 = sshll.u32 %s5729_s10, 4  ;;  %s240_s0 = sshll.u32 %s5730_s8, 4  ;;  %s221_s11 = int_to_ptr.vmem [resolvable:$true] %s220_s11  ;;  %s241_s0 = int_to_ptr.vmem [resolvable:$true] %s240_s0 }
  0xaa   :  { %s5234_s15 = scalar_lea.hbm %s5840_s6, 128 }
  0xab   :  { %p5235_p4 = scmp.ne.s32.totalorder %s5840_s6, %s5234_s15  ;;  %p5238_p5 = scmp.lt.u32.totalorder %s5234_s15, %s5840_s6 }
  0xad   :  { %p5240_p6 = pnand %p5238_p5, %p5235_p4 }
  0xaf   :  { %5243 = shalt.err (!%p5240_p6)
}
  0xb0   :  { %s5244_s16 = scalar_lea.vmem %s221_s11, 128  ;;  %p5249_p8 = scmp.lt.s32.totalorder %s221_s11, %s221_s11 }
  0xb1   :  { %p5245_p7 = scmp.ne.s32.totalorder %s221_s11, %s5244_s16  ;;  %p5250_p9 = scmp.lt.s32.totalorder %s5244_s16, %s5244_s16 }
  0xb3   :  { %p5251_p10 = por %p5250_p9, %p5249_p8 }
  0xb5   :  { %p5252_p11 = pnand %p5251_p10, %p5245_p7 }
  0xb7   :  { %5255 = shalt.err (!%p5252_p11)
}
  0xb8   :  { %223 = dma.hbm_to_vmem [thread:$0]  %s5840_s6, 128, %s221_s11, [#allocation17]  }
  0xb9   :  { %s5256_s19 = scalar_lea.hbm %s5850_s20, 128 }
  0xba   :  { %p5257_p12 = scmp.ne.s32.totalorder %s5850_s20, %s5256_s19  ;;  %p5260_p13 = scmp.lt.u32.totalorder %s5256_s19, %s5850_s20 }
  0xbc   :  { %p5262_p0 = pnand %p5260_p13, %p5257_p12 }
  0xbe   :  { %5265 = shalt.err (!%p5262_p0)
}
  0xbf   :  { %s5266_s18 = scalar_lea.vmem %s241_s0, 128  ;;  %p5271_p2 = scmp.lt.s32.totalorder %s241_s0, %s241_s0 }
  0xc0   :  { %p5267_p1 = scmp.ne.s32.totalorder %s241_s0, %s5266_s18  ;;  %p5272_p3 = scmp.lt.s32.totalorder %s5266_s18, %s5266_s18 }
  0xc2   :  { %p5273_p4 = por %p5272_p3, %p5271_p2 }
  0xc4   :  { %p5274_p5 = pnand %p5273_p4, %p5267_p1 }
  0xc6   :  { %5277 = shalt.err (!%p5274_p5)
}
  0xc7   :  { %243 = dma.hbm_to_vmem [thread:$0]  %s5850_s20, 128, %s241_s0, [#allocation20]  }
  0xc8   :  { %s5731_s22 = smov [#allocation22]   ;;  %s5732_s6 = smov [#allocation25]  }
  0xc9   :  { %s260_s23 = sshll.u32 %s5731_s22, 4  ;;  %s280_s26 = sshll.u32 %s5732_s6, 4  ;;  %s261_s23 = int_to_ptr.vmem [resolvable:$true] %s260_s23  ;;  %s281_s26 = int_to_ptr.vmem [resolvable:$true] %s280_s26 }
  0xca   :  { %s5278_s13 = scalar_lea.hbm %s5860_s4, 128 }
  0xcb   :  { %p5279_p6 = scmp.ne.s32.totalorder %s5860_s4, %s5278_s13  ;;  %p5282_p7 = scmp.lt.u32.totalorder %s5278_s13, %s5860_s4 }
  0xcd   :  { %p5284_p8 = pnand %p5282_p7, %p5279_p6 }
  0xcf   :  { %5287 = shalt.err (!%p5284_p8)
}
  0xd0   :  { %s5288_s28 = scalar_lea.vmem %s261_s23, 128  ;;  %p5293_p10 = scmp.lt.s32.totalorder %s261_s23, %s261_s23 }
  0xd1   :  { %p5289_p9 = scmp.ne.s32.totalorder %s261_s23, %s5288_s28  ;;  %p5294_p11 = scmp.lt.s32.totalorder %s5288_s28, %s5288_s28 }
  0xd3   :  { %p5295_p12 = por %p5294_p11, %p5293_p10 }
  0xd5   :  { %p5296_p13 = pnand %p5295_p12, %p5289_p9 }
  0xd7   :  { %5299 = shalt.err (!%p5296_p13)
}
  0xd8   :  { %263 = dma.hbm_to_vmem [thread:$0]  %s5860_s4, 128, %s261_s23, [#allocation23]  }
  0xd9   :  { %s5300_s20 = scalar_lea.hbm %s5870_s25, 128 }
  0xda   :  { %p5301_p0 = scmp.ne.s32.totalorder %s5870_s25, %s5300_s20  ;;  %p5304_p1 = scmp.lt.u32.totalorder %s5300_s20, %s5870_s25 }
  0xdc   :  { %p5306_p2 = pnand %p5304_p1, %p5301_p0 }
  0xde   :  { %5309 = shalt.err (!%p5306_p2)
}
  0xdf   :  { %s5310_s1 = scalar_lea.vmem %s281_s26, 128  ;;  %p5315_p4 = scmp.lt.s32.totalorder %s281_s26, %s281_s26 }
  0xe0   :  { %p5311_p3 = scmp.ne.s32.totalorder %s281_s26, %s5310_s1  ;;  %p5316_p5 = scmp.lt.s32.totalorder %s5310_s1, %s5310_s1 }
  0xe2   :  { %p5317_p6 = por %p5316_p5, %p5315_p4 }
  0xe4   :  { %p5318_p7 = pnand %p5317_p6, %p5311_p3 }
  0xe6   :  { %5321 = shalt.err (!%p5318_p7)
}
  0xe7   :  { %283 = dma.hbm_to_vmem [thread:$0]  %s5870_s25, 128, %s281_s26, [#allocation26]  }
  0xe8   :  { %s5733_s2 = smov [#allocation28]   ;;  %s5734_s4 = smov [#allocation31]  }
  0xe9   :  { %s300_s21 = sshll.u32 %s5733_s2, 4  ;;  %s319_s7 = sshll.u32 %s5734_s4, 4  ;;  %s301_s21 = int_to_ptr.vmem [resolvable:$true] %s300_s21  ;;  %s6054_s7 = int_to_ptr.vmem [resolvable:$true] %s319_s7 }
  0xea   :  { %s5322_s10 = scalar_lea.hbm %s5880_s5, 128 }
  0xeb   :  { %p5323_p8 = scmp.ne.s32.totalorder %s5880_s5, %s5322_s10  ;;  %p5326_p9 = scmp.lt.u32.totalorder %s5322_s10, %s5880_s5 }
  0xed   :  { %p5328_p10 = pnand %p5326_p9, %p5323_p8 }
  0xef   :  { %5331 = shalt.err (!%p5328_p10)
}
  0xf0   :  { %s5332_s11 = scalar_lea.vmem %s301_s21, 128  ;;  %p5337_p12 = scmp.lt.s32.totalorder %s301_s21, %s301_s21 }
  0xf1   :  { %p5333_p11 = scmp.ne.s32.totalorder %s301_s21, %s5332_s11  ;;  %p5338_p13 = scmp.lt.s32.totalorder %s5332_s11, %s5332_s11 }
  0xf3   :  { %p5339_p0 = por %p5338_p13, %p5337_p12 }
  0xf5   :  { %p5340_p1 = pnand %p5339_p0, %p5333_p11 }
  0xf7   :  { %5343 = shalt.err (!%p5340_p1)
}
  0xf8   :  { %303 = dma.hbm_to_vmem [thread:$0]  %s5880_s5, 128, %s301_s21, [#allocation29]  }
  0xf9   :  { %s5344_s25 = scalar_lea.hbm %s5890_s27, 8192 }
  0xfa   :  { %p5345_p2 = scmp.ne.s32.totalorder %s5890_s27, %s5344_s25  ;;  %p5348_p3 = scmp.lt.u32.totalorder %s5344_s25, %s5890_s27 }
  0xfc   :  { %p5350_p4 = pnand %p5348_p3, %p5345_p2 }
  0xfe   :  { %5353 = shalt.err (!%p5350_p4)
}
  0xff   :  { %s5354_s8 = scalar_lea.vmem %s6054_s7, 8192  ;;  %p5359_p6 = scmp.lt.s32.totalorder %s6054_s7, %s6054_s7 }
 0x100   :  { %p5355_p5 = scmp.ne.s32.totalorder %s6054_s7, %s5354_s8  ;;  %p5360_p7 = scmp.lt.s32.totalorder %s5354_s8, %s5354_s8 }
 0x102   :  { %p5361_p8 = por %p5360_p7, %p5359_p6 }
 0x104   :  { %p5362_p9 = pnand %p5361_p8, %p5355_p5 }
 0x106   :  { %5365 = shalt.err (!%p5362_p9)
}
 0x107   :  { %s5735_s0 = smov 128   ;;  %s5736_s5 = smov 8  }
 0x108   :  { %325 = dma.hbm_to_vmem [thread:$0]  %s5890_s27, 8192, %s6054_s7, [#allocation32], %s5735_s0, %s5735_s0, %s5736_s5  }
 0x109   :  { %s5737_s15 = smov [#allocation34]   ;;  %s5738_s19 = smov [#allocation2]  }
 0x10a   :  { %s356_s16 = sshll.u32 %s5737_s15, 4  ;;  %s124_s18 = sshll.u32 %s5738_s19, 4  ;;  %s357_s16 = int_to_ptr.vmem [resolvable:$true] %s356_s16  ;;  %s125_s18 = int_to_ptr.vmem [resolvable:$true] %s124_s18 }
 0x10b   :  { %s5366_s22 = scalar_lea.hbm %s5935_s24, 128 }
 0x10c   :  { %p5367_p10 = scmp.ne.s32.totalorder %s5935_s24, %s5366_s22  ;;  %p5370_p11 = scmp.lt.u32.totalorder %s5366_s22, %s5935_s24 }
 0x10e   :  { %p5372_p12 = pnand %p5370_p11, %p5367_p10 }
 0x110   :  { %5375 = shalt.err (!%p5372_p12)
}
 0x111   :  { %s5376_s23 = scalar_lea.vmem %s357_s16, 128  ;;  %p5381_p0 = scmp.lt.s32.totalorder %s357_s16, %s357_s16 }
 0x112   :  { %p5377_p13 = scmp.ne.s32.totalorder %s357_s16, %s5376_s23  ;;  %p5382_p1 = scmp.lt.s32.totalorder %s5376_s23, %s5376_s23 }
 0x114   :  { %p5383_p2 = por %p5382_p1, %p5381_p0 }
 0x116   :  { %p5384_p3 = pnand %p5383_p2, %p5377_p13 }
 0x118   :  { %5387 = shalt.err (!%p5384_p3)
}
 0x119   :  { %359 = dma.hbm_to_vmem [thread:$0]  %s5935_s24, 128, %s357_s16, [#allocation35]  }
 0x11a   :  { %s5388_s27 = scalar_lea.hbm %s5780_s9, 128 }
 0x11b   :  { %p5389_p4 = scmp.ne.s32.totalorder %s5780_s9, %s5388_s27  ;;  %p5392_p5 = scmp.lt.u32.totalorder %s5388_s27, %s5780_s9 }
 0x11d   :  { %p5394_p6 = pnand %p5392_p5, %p5389_p4 }
 0x11f   :  { %5397 = shalt.err (!%p5394_p6)
}
 0x120   :  { %s5398_s6 = scalar_lea.vmem %s125_s18, 128  ;;  %p5403_p8 = scmp.lt.s32.totalorder %s125_s18, %s125_s18 }
 0x121   :  { %p5399_p7 = scmp.ne.s32.totalorder %s125_s18, %s5398_s6  ;;  %p5404_p9 = scmp.lt.s32.totalorder %s5398_s6, %s5398_s6 }
 0x123   :  { %p5405_p10 = por %p5404_p9, %p5403_p8 }
 0x125   :  { %p5406_p11 = pnand %p5405_p10, %p5399_p7 }
 0x127   :  { %5409 = shalt.err (!%p5406_p11)
}
 0x128   :  { %127 = dma.hbm_to_vmem [thread:$0]  %s5780_s9, 128, %s125_s18, [#allocation3]  }
 0x129   :  { %s5739_s26 = smov [#allocation6]   ;;  %s5740_s24 = smov [#allocation9]  }
 0x12a   :  { %s144_s13 = sshll.u32 %s5739_s26, 4  ;;  %s168_s28 = sshll.u32 %s5740_s24, 4  ;;  %s145_s13 = int_to_ptr.vmem [resolvable:$true] %s144_s13  ;;  %s169_s28 = int_to_ptr.vmem [resolvable:$true] %s168_s28 }
 0x12b   :  { %s5410_s20 = scalar_lea.hbm %s5790_s17, 128 }
 0x12c   :  { %p5411_p12 = scmp.ne.s32.totalorder %s5790_s17, %s5410_s20  ;;  %p5414_p13 = scmp.lt.u32.totalorder %s5410_s20, %s5790_s17 }
 0x12e   :  { %p5416_p0 = pnand %p5414_p13, %p5411_p12 }
 0x130   :  { %5419 = shalt.err (!%p5416_p0)
}
 0x131   :  { %s5420_s1 = scalar_lea.vmem %s145_s13, 128  ;;  %p5425_p2 = scmp.lt.s32.totalorder %s145_s13, %s145_s13 }
 0x132   :  { %p5421_p1 = scmp.ne.s32.totalorder %s145_s13, %s5420_s1  ;;  %p5426_p3 = scmp.lt.s32.totalorder %s5420_s1, %s5420_s1 }
 0x134   :  { %p5427_p4 = por %p5426_p3, %p5425_p2 }
 0x136   :  { %p5428_p5 = pnand %p5427_p4, %p5421_p1 }
 0x138   :  { %5431 = shalt.err (!%p5428_p5)
}
 0x139   :  { %147 = dma.hbm_to_vmem [thread:$0]  %s5790_s17, 128, %s145_s13, [#allocation5]  }
 0x13a   :  { %s5432_s9 = scalar_lea.hbm %s5810_s3, 128 }
 0x13b   :  { %p5433_p6 = scmp.ne.s32.totalorder %s5810_s3, %s5432_s9  ;;  %p5436_p7 = scmp.lt.u32.totalorder %s5432_s9, %s5810_s3 }
 0x13d   :  { %p5438_p8 = pnand %p5436_p7, %p5433_p6 }
 0x13f   :  { %5441 = shalt.err (!%p5438_p8)
}
 0x140   :  { %s5442_s2 = scalar_lea.vmem %s169_s28, 128  ;;  %p5447_p10 = scmp.lt.s32.totalorder %s169_s28, %s169_s28 }
 0x141   :  { %p5443_p9 = scmp.ne.s32.totalorder %s169_s28, %s5442_s2  ;;  %p5448_p11 = scmp.lt.s32.totalorder %s5442_s2, %s5442_s2 }
 0x143   :  { %p5449_p12 = por %p5448_p11, %p5447_p10 }
 0x145   :  { %p5450_p13 = pnand %p5449_p12, %p5443_p9 }
 0x147   :  { %5453 = shalt.err (!%p5450_p13)
}
 0x148   :  { %s7528_s21 = sld [smem:[#allocation52_spill]]  ;;  %s5741_s4 = smov [#allocation12]  }
 0x149   :  { %171 = dma.hbm_to_vmem [thread:$0]  %s5810_s3, 128, %s169_s28, [#allocation8]  }
 0x14a   :  { %s188_s7 = sshll.u32 %s5741_s4, 4  ;;  %s5742_s17 = smov [#allocation15]   ;;  %s189_s7 = int_to_ptr.vmem [resolvable:$true] %s188_s7 }
 0x14b   :  { %s210_s10 = sshll.u32 %s5742_s17, 4  ;;  %s211_s10 = int_to_ptr.vmem [resolvable:$true] %s210_s10 }
 0x14e   :  { %s5454_s11 = scalar_lea.hbm %s7528_s21, 128 }
 0x14f   :  { %p5455_p0 = scmp.ne.s32.totalorder %s7528_s21, %s5454_s11  ;;  %p5458_p1 = scmp.lt.u32.totalorder %s5454_s11, %s7528_s21 }
 0x151   :  { %p5460_p2 = pnand %p5458_p1, %p5455_p0 }
 0x153   :  { %5463 = shalt.err (!%p5460_p2)
}
 0x154   :  { %s5464_s25 = scalar_lea.vmem %s189_s7, 128  ;;  %p5469_p4 = scmp.lt.s32.totalorder %s189_s7, %s189_s7 }
 0x155   :  { %p5465_p3 = scmp.ne.s32.totalorder %s189_s7, %s5464_s25  ;;  %p5470_p5 = scmp.lt.s32.totalorder %s5464_s25, %s5464_s25 }
 0x157   :  { %p5471_p6 = por %p5470_p5, %p5469_p4 }
 0x159   :  { %p5472_p7 = pnand %p5471_p6, %p5465_p3 }
 0x15b   :  { %5475 = shalt.err (!%p5472_p7)
}
 0x15c   :  { %s7529_s3 = sld [smem:[#allocation54_spill]] }
 0x15d   :  { %191 = dma.hbm_to_vmem [thread:$0]  %s7528_s21, 128, %s189_s7, [#allocation11]  }
 0x162   :  { %s5476_s8 = scalar_lea.hbm %s7529_s3, 128 }
 0x163   :  { %p5477_p8 = scmp.ne.s32.totalorder %s7529_s3, %s5476_s8  ;;  %p5480_p9 = scmp.lt.u32.totalorder %s5476_s8, %s7529_s3 }
 0x165   :  { %p5482_p10 = pnand %p5480_p9, %p5477_p8 }
 0x167   :  { %5485 = shalt.err (!%p5482_p10)
}
 0x168   :  { %s5486_s0 = scalar_lea.vmem %s211_s10, 128  ;;  %p5491_p12 = scmp.lt.s32.totalorder %s211_s10, %s211_s10 }
 0x169   :  { %p5487_p11 = scmp.ne.s32.totalorder %s211_s10, %s5486_s0  ;;  %p5492_p13 = scmp.lt.s32.totalorder %s5486_s0, %s5486_s0 }
 0x16b   :  { %p5493_p0 = por %p5492_p13, %p5491_p12 }
 0x16d   :  { %p5494_p1 = pnand %p5493_p0, %p5487_p11 }
 0x16f   :  { %5497 = shalt.err (!%p5494_p1)
}
 0x170   :  { %s7530_s15 = sld [smem:[#allocation55_spill]]  ;;  %s5743_s16 = smov [#allocation18]  }
 0x171   :  { %213 = dma.hbm_to_vmem [thread:$0]  %s7529_s3, 128, %s211_s10, [#allocation14]  }
 0x172   :  { %s230_s19 = sshll.u32 %s5743_s16, 4  ;;  %s5744_s18 = smov [#allocation21]   ;;  %s231_s19 = int_to_ptr.vmem [resolvable:$true] %s230_s19 }
 0x173   :  { %s250_s22 = sshll.u32 %s5744_s18, 4  ;;  %s251_s22 = int_to_ptr.vmem [resolvable:$true] %s250_s22 }
 0x176   :  { %s5498_s23 = scalar_lea.hbm %s7530_s15, 128 }
 0x177   :  { %p5499_p2 = scmp.ne.s32.totalorder %s7530_s15, %s5498_s23  ;;  %p5502_p3 = scmp.lt.u32.totalorder %s5498_s23, %s7530_s15 }
 0x179   :  { %p5504_p4 = pnand %p5502_p3, %p5499_p2 }
 0x17b   :  { %5507 = shalt.err (!%p5504_p4)
}
 0x17c   :  { %s5508_s27 = scalar_lea.vmem %s231_s19, 128  ;;  %p5513_p6 = scmp.lt.s32.totalorder %s231_s19, %s231_s19 }
 0x17d   :  { %p5509_p5 = scmp.ne.s32.totalorder %s231_s19, %s5508_s27  ;;  %p5514_p7 = scmp.lt.s32.totalorder %s5508_s27, %s5508_s27 }
 0x17f   :  { %p5515_p8 = por %p5514_p7, %p5513_p6 }
 0x181   :  { %p5516_p9 = pnand %p5515_p8, %p5509_p5 }
 0x183   :  { %5519 = shalt.err (!%p5516_p9)
}
 0x184   :  { %s7531_s6 = sld [smem:[#allocation56_spill]] }
 0x185   :  { %233 = dma.hbm_to_vmem [thread:$0]  %s7530_s15, 128, %s231_s19, [#allocation17]  }
 0x18a   :  { %s5520_s26 = scalar_lea.hbm %s7531_s6, 128 }
 0x18b   :  { %p5521_p10 = scmp.ne.s32.totalorder %s7531_s6, %s5520_s26  ;;  %p5524_p11 = scmp.lt.u32.totalorder %s5520_s26, %s7531_s6 }
 0x18d   :  { %p5526_p12 = pnand %p5524_p11, %p5521_p10 }
 0x18f   :  { %5529 = shalt.err (!%p5526_p12)
}
 0x190   :  { %s5530_s13 = scalar_lea.vmem %s251_s22, 128  ;;  %p5535_p0 = scmp.lt.s32.totalorder %s251_s22, %s251_s22 }
 0x191   :  { %p5531_p13 = scmp.ne.s32.totalorder %s251_s22, %s5530_s13  ;;  %p5536_p1 = scmp.lt.s32.totalorder %s5530_s13, %s5530_s13 }
 0x193   :  { %p5537_p2 = por %p5536_p1, %p5535_p0 }
 0x195   :  { %p5538_p3 = pnand %p5537_p2, %p5531_p13 }
 0x197   :  { %5541 = shalt.err (!%p5538_p3)
}
 0x198   :  { %s7532_s24 = sld [smem:[#allocation57_spill]]  ;;  %s5745_s28 = smov [#allocation24]  }
 0x199   :  { %253 = dma.hbm_to_vmem [thread:$0]  %s7531_s6, 128, %s251_s22, [#allocation20]  }
 0x19a   :  { %s270_s20 = sshll.u32 %s5745_s28, 4  ;;  %s5746_s1 = smov [#allocation27]   ;;  %s271_s20 = int_to_ptr.vmem [resolvable:$true] %s270_s20 }
 0x19b   :  { %s290_s9 = sshll.u32 %s5746_s1, 4  ;;  %s291_s9 = int_to_ptr.vmem [resolvable:$true] %s290_s9 }
 0x19e   :  { %s5542_s2 = scalar_lea.hbm %s7532_s24, 128 }
 0x19f   :  { %p5543_p4 = scmp.ne.s32.totalorder %s7532_s24, %s5542_s2  ;;  %p5546_p5 = scmp.lt.u32.totalorder %s5542_s2, %s7532_s24 }
 0x1a1   :  { %p5548_p6 = pnand %p5546_p5, %p5543_p4 }
 0x1a3   :  { %5551 = shalt.err (!%p5548_p6)
}
 0x1a4   :  { %s5552_s21 = scalar_lea.vmem %s271_s20, 128  ;;  %p5557_p8 = scmp.lt.s32.totalorder %s271_s20, %s271_s20 }
 0x1a5   :  { %p5553_p7 = scmp.ne.s32.totalorder %s271_s20, %s5552_s21  ;;  %p5558_p9 = scmp.lt.s32.totalorder %s5552_s21, %s5552_s21 }
 0x1a7   :  { %p5559_p10 = por %p5558_p9, %p5557_p8 }
 0x1a9   :  { %p5560_p11 = pnand %p5559_p10, %p5553_p7 }
 0x1ab   :  { %5563 = shalt.err (!%p5560_p11)
}
 0x1ac   :  { %s7533_s4 = sld [smem:[#allocation58_spill]] }
 0x1ad   :  { %273 = dma.hbm_to_vmem [thread:$0]  %s7532_s24, 128, %s271_s20, [#allocation23]  }
 0x1b2   :  { %s5564_s7 = scalar_lea.hbm %s7533_s4, 128 }
 0x1b3   :  { %p5565_p12 = scmp.ne.s32.totalorder %s7533_s4, %s5564_s7  ;;  %p5568_p13 = scmp.lt.u32.totalorder %s5564_s7, %s7533_s4 }
 0x1b5   :  { %p5570_p0 = pnand %p5568_p13, %p5565_p12 }
 0x1b7   :  { %5573 = shalt.err (!%p5570_p0)
}
 0x1b8   :  { %s5574_s17 = scalar_lea.vmem %s291_s9, 128  ;;  %p5579_p2 = scmp.lt.s32.totalorder %s291_s9, %s291_s9 }
 0x1b9   :  { %p5575_p1 = scmp.ne.s32.totalorder %s291_s9, %s5574_s17  ;;  %p5580_p3 = scmp.lt.s32.totalorder %s5574_s17, %s5574_s17 }
 0x1bb   :  { %p5581_p4 = por %p5580_p3, %p5579_p2 }
 0x1bd   :  { %p5582_p5 = pnand %p5581_p4, %p5575_p1 }
 0x1bf   :  { %5585 = shalt.err (!%p5582_p5)
}
 0x1c0   :  { %s7534_s10 = sld [smem:[#allocation59_spill]]  ;;  %s5747_s11 = smov [#allocation30]  }
 0x1c1   :  { %293 = dma.hbm_to_vmem [thread:$0]  %s7533_s4, 128, %s291_s9, [#allocation26]  }
 0x1c2   :  { %s310_s25 = sshll.u32 %s5747_s11, 4  ;;  %s5748_s3 = smov [#allocation33]   ;;  %s311_s25 = int_to_ptr.vmem [resolvable:$true] %s310_s25 }
 0x1c3   :  { %s346_s8 = sshll.u32 %s5748_s3, 4  ;;  %s347_s8 = int_to_ptr.vmem [resolvable:$true] %s346_s8 }
 0x1c6   :  { %s5586_s0 = scalar_lea.hbm %s7534_s10, 128 }
 0x1c7   :  { %p5587_p6 = scmp.ne.s32.totalorder %s7534_s10, %s5586_s0  ;;  %p5590_p7 = scmp.lt.u32.totalorder %s5586_s0, %s7534_s10 }
 0x1c9   :  { %p5592_p8 = pnand %p5590_p7, %p5587_p6 }
 0x1cb   :  { %5595 = shalt.err (!%p5592_p8)
}
 0x1cc   :  { %s5596_s15 = scalar_lea.vmem %s311_s25, 128  ;;  %p5601_p10 = scmp.lt.s32.totalorder %s311_s25, %s311_s25 }
 0x1cd   :  { %p5597_p9 = scmp.ne.s32.totalorder %s311_s25, %s5596_s15  ;;  %p5602_p11 = scmp.lt.s32.totalorder %s5596_s15, %s5596_s15 }
 0x1cf   :  { %p5603_p12 = por %p5602_p11, %p5601_p10 }
 0x1d1   :  { %p5604_p13 = pnand %p5603_p12, %p5597_p9 }
 0x1d3   :  { %5607 = shalt.err (!%p5604_p13)
}
 0x1d4   :  { %s7535_s16 = sld [smem:[#allocation67_spill]] }
 0x1d5   :  { %313 = dma.hbm_to_vmem [thread:$0]  %s7534_s10, 128, %s311_s25, [#allocation29]  }
 0x1da   :  { %s5608_s19 = scalar_lea.hbm %s7535_s16, 128 }
 0x1db   :  { %p5609_p0 = scmp.ne.s32.totalorder %s7535_s16, %s5608_s19  ;;  %p5612_p1 = scmp.lt.u32.totalorder %s5608_s19, %s7535_s16 }
 0x1dd   :  { %p5614_p2 = pnand %p5612_p1, %p5609_p0 }
 0x1df   :  { %5617 = shalt.err (!%p5614_p2)
}
 0x1e0   :  { %s5618_s18 = scalar_lea.vmem %s347_s8, 128  ;;  %p5623_p4 = scmp.lt.s32.totalorder %s347_s8, %s347_s8 }
 0x1e1   :  { %p5619_p3 = scmp.ne.s32.totalorder %s347_s8, %s5618_s18  ;;  %p5624_p5 = scmp.lt.s32.totalorder %s5618_s18, %s5618_s18 }
 0x1e3   :  { %p5625_p6 = por %p5624_p5, %p5623_p4 }
 0x1e5   :  { %p5626_p7 = pnand %p5625_p6, %p5619_p3 }
 0x1e7   :  { %5629 = shalt.err (!%p5626_p7)
}
 0x1e8   :  { %s7536_s22 = sld [smem:[#allocation79_spill]]  ;;  %s5749_s23 = smov [#allocation36]  }
 0x1e9   :  { %349 = dma.hbm_to_vmem [thread:$0]  %s7535_s16, 128, %s347_s8, [#allocation32]  }
 0x1ea   :  { %s388_s27 = sshll.u32 %s5749_s23, 4  ;;  %s389_s27 = int_to_ptr.vmem [resolvable:$true] %s388_s27 }
 0x1ee   :  { %s5630_s6 = scalar_lea.hbm %s7536_s22, 128 }
 0x1ef   :  { %p5631_p8 = scmp.ne.s32.totalorder %s7536_s22, %s5630_s6  ;;  %p5634_p9 = scmp.lt.u32.totalorder %s5630_s6, %s7536_s22 }
 0x1f1   :  { %p5636_p10 = pnand %p5634_p9, %p5631_p8 }
 0x1f3   :  { %5639 = shalt.err (!%p5636_p10)
}
 0x1f4   :  { %s5640_s26 = scalar_lea.vmem %s389_s27, 128  ;;  %p5645_p12 = scmp.lt.s32.totalorder %s389_s27, %s389_s27 }
 0x1f5   :  { %p5641_p11 = scmp.ne.s32.totalorder %s389_s27, %s5640_s26  ;;  %p5646_p13 = scmp.lt.s32.totalorder %s5640_s26, %s5640_s26 }
 0x1f7   :  { %p5647_p0 = por %p5646_p13, %p5645_p12 }
 0x1f9   :  { %p5648_p1 = pnand %p5647_p0, %p5641_p11 }
 0x1fb   :  { %5651 = shalt.err (!%p5648_p1)
}
 0x1fc   :  { %391 = dma.hbm_to_vmem [thread:$0]  %s7536_s22, 128, %s389_s27, [#allocation35]  }
 0x1fd   :  { %5652 = dma.done.wait [#allocation3], 128  }
 0x1fe   :  { %5653 = vsyncadd [#allocation3], 4294967168 }
 0x1ff   :  { %5654 = dma.done.wait [#allocation5], 256  }
 0x200   :  { %5655 = vsyncadd [#allocation5], 4294967040 }
 0x201   :  { %5656 = dma.done.wait [#allocation8], 256  }
 0x202   :  { %5657 = vsyncadd [#allocation8], 4294967040 }
 0x203   :  { %5658 = dma.done.wait [#allocation11], 256  }
 0x204   :  { %5659 = vsyncadd [#allocation11], 4294967040 }
 0x205   :  { %5660 = dma.done.wait [#allocation14], 256  }
 0x206   :  { %5661 = vsyncadd [#allocation14], 4294967040 }
 0x207   :  { %5662 = dma.done.wait [#allocation17], 256  }
 0x208   :  { %5663 = vsyncadd [#allocation17], 4294967040 }
 0x209   :  { %5664 = dma.done.wait [#allocation20], 256  }
 0x20a   :  { %5665 = vsyncadd [#allocation20], 4294967040 }
 0x20b   :  { %5666 = dma.done.wait [#allocation23], 256  }
 0x20c   :  { %5667 = vsyncadd [#allocation23], 4294967040 }
 0x20d   :  { %5668 = dma.done.wait [#allocation26], 256  }
 0x20e   :  { %5669 = vsyncadd [#allocation26], 4294967040 }
 0x20f   :  { %5670 = dma.done.wait [#allocation29], 256  }
 0x210   :  { %5671 = vsyncadd [#allocation29], 4294967040 }
 0x211   :  { %5672 = dma.done.wait [#allocation32], 8320  }
 0x212   :  { %5673 = vsyncadd [#allocation32], 4294958976 }
 0x213   :  { %5674 = dma.done.wait [#allocation35], 256  }
 0x214   :  { %5675 = vsyncadd [#allocation35], 4294967040  ;;  %s7537_s13 = sld [smem:[#allocation49_spill]]  ;;  %v7462_v0 = vmov 0.0   ;;  %v5751_v1 = vmov 0   ;;  %vm480_vm0 = vcmask 64512   ;;  %v638_v25 = vlaneseq }
 0x215   :  { %548 = vmatprep.mubr.f32.mxu0 %v7462_v0  ;;  %619 = vmatprep.mubr.f32.mxu1 %v7462_v0  ;;  %v473_v6 = vld [vmem:[#allocation10] sm:$0xff]  ;;  %v474_v7 = vld [vmem:[#allocation9] sm:$0xff]  ;;  %s5752_s24 = smov 17   ;;  %s5753_s28 = smov 16   ;;  %v979_v22 = vld [vmem:[#allocation6] sm:$0xff]  ;;  %vm985_vm9 = vcmask 588800  }
 0x216   :  { %5144 = vset.pattern.permute.xlu0 %v5751_v1  ;;  %5145 = vset.pattern.permute.xlu1 %v5751_v1  ;;  %s5754_s20 = smov 15   ;;  %s5755_s1 = smov 1   ;;  %v1135_v21 = vld [vmem:[#allocation2] sm:$0xff]  ;;  %v6210_v27 = vand.u32 127, %v638_v25  ;;  %v648_v28 = vshrl.u32 %v638_v25, 7  ;;  %vm5761_vm10 = vmmov 0  }
 0x217   :  { %477 = vperm.xlu0 %5144, %v474_v7   ;;  %s5756_s9 = smov 127   ;;  %s5757_s2 = smov 113   ;;  %vm1846_vm11 = vcmask 130048   ;;  %vm2410_vm12 = vcmask 261120  }
 0x218   :  { %s5758_s21 = smov 112   ;;  %s5759_s4 = smov 111   ;;  %vm640_vm1 = vcmp.lt.s32.totalorder %v6210_v27, 17  ;;  %v6216_v31 = vsub.s32 3, %v648_v28  ;;  %vm679_vm2 = vcmp.lt.s32.totalorder %v6210_v27, 16  ;;  %v6244_v48 = vsub.s32 0, %v648_v28 }
 0x219   :  { %s7538_s7 = sld [smem:[#allocation53_spill]]  ;;  %v6246_v49 = vsub.s32 2, %v648_v28  ;;  %v6248_v50 = vsub.s32 1, %v648_v28  ;;  %vm719_vm3 = vcmp.lt.s32.totalorder %v6210_v27, 15  ;;  %vm759_vm4 = vcmp.lt.s32.totalorder %v6210_v27, 1  ;;  %s7556_s17 = sld [smem:[#allocation50_spill]] }
 0x21a   :  { %v470_v2 = vld [vmem:[%s7537_s13 + $0x8] sm:$0xff]  ;;  %v472_v3 = vld [vmem:[%s7537_s13 + $0x18] sm:$0xff]  ;;  %v469_v4 = vld [vmem:[%s7537_s13] sm:$0xff]  ;;  %vm826_vm5 = vcmp.lt.s32.totalorder %v6210_v27, 127  ;;  %vm866_vm6 = vcmp.lt.s32.totalorder %v6210_v27, 113  ;;  %vm906_vm7 = vcmp.lt.s32.totalorder %v6210_v27, 112 }
 0x21b   :  { %484 = vmatprep.subr.mxu0 %v470_v2  ;;  %555 = vmatprep.subr.mxu1 %v472_v3  ;;  %v471_v5 = vld [vmem:[%s7537_s13 + $0x10] sm:$0xff]  ;;  %vm946_vm8 = vcmp.lt.s32.totalorder %v6210_v27, 111  ;;  %s7566_s10 = sld [smem:[#allocation51_spill]]  ;;  %s7567_s11 = sld [smem:[#allocation61_spill]] }
 0x21c   :  { %485 = vmatpush1.msra.mxu0 %v469_v4  ;;  %556 = vmatpush1.msra.mxu1 %v471_v5  ;;  %s7568_s25 = sld [smem:[#allocation63_spill]]  ;;  %s5762_s3 = smov 9  }
 0x21d   :  { %4320 = vmatmul.mubr.msk.f32.vlgmr.msra.gmra.mrb[0].mxu0 %vm480_vm0, %v473_v6  ;;  %4321 = vmatmul.mubr.msk.f32.vlgmr.msra.gmra.mrb[0].mxu1 %vm480_vm0, %v473_v6  ;;  %s7569_s8 = sld [smem:[#allocation70_spill]]  ;;  %s5763_s0 = smov 7  }
 0x21e   :  { %1053 = vmatprep.mubr.f32.mxu0 %v7462_v0  ;;  %1124 = vmatprep.mubr.f32.mxu1 %v7462_v0  ;;  %s5764_s15 = smov 121   ;;  %s5765_s16 = smov 119  }
 0x21f   :  { %v6213_v30 = vld [vmem:[%s7538_s7] sm:$0xf]  ;;  %v4322_v34 = vld [vmem:[%s7538_s7 + $0x4] sm:$0xf]  ;;  %v4325_v53 = vld [vmem:[%s7538_s7 + $0x10] sm:$0xf] }
 0x220   :  { %v6221_v35 = vrot.slane %v6213_v30, %v6216_v31  ;;  %v6224_v36 = vrot.slane %v4322_v34, %v6216_v31  ;;  %v6252_v54 = vrot.slane %v4325_v53, %v6244_v48  ;;  %v6255_v55 = vrot.slane %v4325_v53, %v6246_v49  ;;  %v4323_v62 = vld [vmem:[%s7538_s7 + $0x8] sm:$0xf]  ;;  %v4324_v2 = vld [vmem:[%s7538_s7 + $0xc] sm:$0xf]  ;;  %s5766_s19 = smov 120   ;;  %s7570_s18 = sld [smem:[#allocation68_spill]] }
 0x221   :  { %v6260_v58 = vrot.slane %v4325_v53, %v6216_v31  ;;  %v6263_v59 = vrot.slane %v4325_v53, %v6248_v50  ;;  %v6267_v60 = vrot.slane %v6213_v30, %v6244_v48  ;;  %v6270_v61 = vrot.slane %v4322_v34, %v6248_v50  ;;  %s7571_s22 = sld [smem:[#allocation62_spill]]  ;;  %s7572_s23 = sld [smem:[#allocation64_spill]] }
 0x222   :  { %7539 = vst [vmem:[#allocation81_spill] sm:$0xff] %v6224_v36  ;;  %7540 = vst [vmem:[#allocation82_spill] sm:$0xff] %v6252_v54  ;;  %v6274_v63 = vrot.slane %v4322_v34, %v6246_v49  ;;  %v6277_v1 = vrot.slane %v4322_v34, %v6244_v48  ;;  %v6325_v25 = vrot.slane %v4324_v2, %v6244_v48  ;;  %s7573_s27 = sld [smem:[#allocation65_spill]]  ;;  %s7574_s6 = sld [smem:[#allocation77_spill]] }
 0x223   :  { %7541 = vst [vmem:[#allocation83_spill] sm:$0xff] %v6255_v55  ;;  %7542 = vst [vmem:[#allocation84_spill] sm:$0xff] %v6260_v58  ;;  %v6328_v28 = vrot.slane %v4324_v2, %v6216_v31  ;;  %s7575_s26 = sld [smem:[#allocation69_spill]]  ;;  %s7576_s13 = sld [smem:[#allocation66_spill]] }
 0x224   :  { %7543 = vst [vmem:[#allocation85_spill] sm:$0xff] %v6263_v59  ;;  %7544 = vst [vmem:[#allocation86_spill] sm:$0xff] %v6267_v60 }
 0x225   :  { %7545 = vst [vmem:[#allocation87_spill] sm:$0xff] %v6270_v61  ;;  %7549 = vst [vmem:[#allocation91_spill] sm:$0xff] %v6328_v28 }
 0x296   :  { %v478_v8 = vpop.permute.xlu0 %477 }
 0x2f0   :  { %v550_v9 = vpop.f32.mrb[0].mxu0  ;;  %v621_v10 = vpop.f32.mrb[0].mxu1 }
 0x2f1   :  { %v551_v11 = vadd.f32 %v550_v9, %v478_v8  ;;  %v622_v12 = vadd.f32 %v621_v10, %v478_v8  ;;  %v552_v13 = vpop.f32.mrb[1].mxu0  ;;  %v623_v14 = vpop.f32.mrb[1].mxu1  ;;  %v6301_v10 = vrot.slane %v4323_v62, %v6248_v50 }
 0x2f2   :  { %v624_v17 = vadd.f32 %v623_v14, %v478_v8  ;;  %v553_v18 = vadd.f32 %v552_v13, %v478_v8  ;;  %v6310_v13 = vrot.slane %v4323_v62, %v6216_v31  ;;  %v4326_v14 = vld [vmem:[%s7538_s7 + $0x14] sm:$0xf] }
 0x2f3   :  { %v6132_v15 = vmax.f32 %v551_v11, 0.0  ;;  %v6134_v16 = vmax.f32 %v622_v12, 0.0  ;;  %7546 = vst [vmem:[#allocation88_spill] sm:$0xff] %v6301_v10  ;;  %v6304_v11 = vrot.slane %v4323_v62, %v6246_v49  ;;  %v6307_v12 = vrot.slane %v4323_v62, %v6244_v48 }
 0x2f4   :  { %v6140_v19 = vmax.f32 %v624_v17, 0.0  ;;  %v6146_v20 = vmax.f32 %v553_v18, 0.0  ;;  %7547 = vst [vmem:[#allocation89_spill] sm:$0xff] %v6310_v13  ;;  %v6318_v18 = vrot.slane %v4324_v2, %v6248_v50 }
 0x2f5   :  { %634 = vrot.lane.b32.xlu1 %v6134_v16, %s5752_s24  ;;  %630 = vrot.lane.b32.xlu0 %v6132_v15, %s5752_s24  ;;  %v6282_v3 = vmul.f32 %v6252_v54, %v6132_v15  ;;  %v6286_v4 = vmul.f32 %v6255_v55, %v6134_v16 }
 0x2f6   :  { %v6294_v8 = vmul.f32 %v6260_v58, %v6140_v19  ;;  %v6298_v9 = vmul.f32 %v6263_v59, %v6146_v20  ;;  %7548 = vst [vmem:[#allocation90_spill] sm:$0xff] %v6318_v18 }
 0x2f9   :  { %671 = vrot.lane.b32.xlu1 %v6132_v15, %s5753_s28  ;;  %636 = vrot.lane.b32.xlu0 %v6140_v19, %s5752_s24 }
 0x2fd   :  { %675 = vrot.lane.b32.xlu1 %v6134_v16, %s5753_s28  ;;  %673 = vrot.lane.b32.xlu0 %v6146_v20, %s5753_s28 }
 0x301   :  { %711 = vrot.lane.b32.xlu1 %v6132_v15, %s5754_s20  ;;  %677 = vrot.lane.b32.xlu0 %v6140_v19, %s5753_s28 }
 0x305   :  { %715 = vrot.lane.b32.xlu1 %v6134_v16, %s5754_s20  ;;  %713 = vrot.lane.b32.xlu0 %v6146_v20, %s5754_s20 }
 0x309   :  { %751 = vrot.lane.b32.xlu1 %v6132_v15, %s5755_s1  ;;  %717 = vrot.lane.b32.xlu0 %v6140_v19, %s5754_s20 }
 0x30d   :  { %755 = vrot.lane.b32.xlu1 %v6134_v16, %s5755_s1  ;;  %753 = vrot.lane.b32.xlu0 %v6146_v20, %s5755_s1 }
 0x311   :  { %818 = vrot.lane.b32.xlu1 %v6132_v15, %s5756_s9  ;;  %757 = vrot.lane.b32.xlu0 %v6140_v19, %s5755_s1 }
 0x315   :  { %822 = vrot.lane.b32.xlu1 %v6134_v16, %s5756_s9  ;;  %820 = vrot.lane.b32.xlu0 %v6146_v20, %s5756_s9 }
 0x319   :  { %858 = vrot.lane.b32.xlu1 %v6132_v15, %s5757_s2  ;;  %824 = vrot.lane.b32.xlu0 %v6140_v19, %s5756_s9 }
 0x31d   :  { %632 = vrot.lane.b32.xlu1 %v6146_v20, %s5752_s24  ;;  %860 = vrot.lane.b32.xlu0 %v6146_v20, %s5757_s2 }
 0x321   :  { %862 = vrot.lane.b32.xlu1 %v6134_v16, %s5757_s2  ;;  %864 = vrot.lane.b32.xlu0 %v6140_v19, %s5757_s2 }
 0x325   :  { %898 = vrot.lane.b32.xlu1 %v6132_v15, %s5758_s21  ;;  %900 = vrot.lane.b32.xlu0 %v6146_v20, %s5758_s21 }
 0x329   :  { %902 = vrot.lane.b32.xlu1 %v6134_v16, %s5758_s21  ;;  %904 = vrot.lane.b32.xlu0 %v6140_v19, %s5758_s21 }
 0x32d   :  { %938 = vrot.lane.b32.xlu1 %v6132_v15, %s5759_s4  ;;  %940 = vrot.lane.b32.xlu0 %v6146_v20, %s5759_s4 }
 0x331   :  { %942 = vrot.lane.b32.xlu1 %v6134_v16, %s5759_s4  ;;  %944 = vrot.lane.b32.xlu0 %v6140_v19, %s5759_s4 }
 0x335   :  { %1138 = vperm.xlu0 %5144, %v1135_v21   ;;  %982 = vperm.xlu1 %5145, %v979_v22   ;;  %v6321_v21 = vrot.slane %v4324_v2, %v6246_v49  ;;  %v6365_v2 = vrot.slane %v6213_v30, %v6246_v49 }
 0x367   :  { %v6204_v23 = vpop.permute.xlu1 %634  ;;  %v6206_v24 = vpop.permute.xlu0 %630 }
 0x36b   :  { %v6208_v26 = vpop.permute.xlu1 %671  ;;  %v637_v29 = vpop.permute.xlu0 %636 }
 0x36c   :  { %v641_v37 = vsel %vm640_vm1, %v6204_v23, %v637_v29  ;;  %v644_v17 = vsel %vm640_vm1, %v637_v29, %v6206_v24 }
 0x36d   :  { %v670_v41 = vmul.f32 %v6221_v35, %v641_v37  ;;  %v6337_v37 = vrot.slane %v4326_v14, %v6244_v48 }
 0x36f   :  { %v676_v32 = vpop.permute.xlu1 %675  ;;  %v674_v33 = vpop.permute.xlu0 %673 }
 0x370   :  { %v681_v29 = vsel %vm679_vm2, %v674_v33, %v676_v32  ;;  %v682_v34 = vsel %vm679_vm2, %v6208_v26, %v674_v33  ;;  %v6356_v33 = vld [vmem:[%s7538_s7 + $0x18] sm:$0xf] }
 0x371   :  { %v6375_v58 = vrot.slane %v6356_v33, %v6246_v49 }
 0x373   :  { %v6230_v38 = vpop.permute.xlu1 %711  ;;  %v678_v39 = vpop.permute.xlu0 %677 }
 0x374   :  { %v680_v40 = vsel %vm679_vm2, %v676_v32, %v678_v39  ;;  %v683_v5 = vsel %vm679_vm2, %v678_v39, %v6208_v26  ;;  %v6340_v39 = vrot.slane %v4326_v14, %v6248_v50  ;;  %v6349_v32 = vrot.slane %v4326_v14, %v6216_v31 }
 0x375   :  { %v710_v42 = vmul.f32 %v6224_v36, %v680_v40  ;;  %v707_v22 = vmul.f32 %v6277_v1, %v683_v5  ;;  %v6353_v26 = vrot.slane %v6213_v30, %v6248_v50  ;;  %v6369_v5 = vrot.slane %v6356_v33, %v6248_v50 }
 0x377   :  { %v6236_v43 = vpop.permute.xlu1 %715  ;;  %v6238_v44 = vpop.permute.xlu0 %713  ;;  %v4707_v45 = vpack.c.bf16 %v710_v42, %v670_v41  ;;  %v667_v42 = vmul.f32 %v6267_v60, %v644_v17  ;;  %7550 = vst [vmem:[#allocation92_spill] sm:$0xff] %v6353_v26  ;;  %v709_v17 = vmul.f32 %v6274_v63, %v681_v29 }
 0x378   :  { %v721_v55 = vsel %vm719_vm3, %v6238_v44, %v6236_v43  ;;  %v722_v30 = vsel %vm719_vm3, %v6230_v38, %v6238_v44 }
 0x379   :  { %4708 = vmatprep.subr.bf16.mxu1 %v4707_v45  ;;  %v6346_v45 = vrot.slane %v4326_v14, %v6246_v49  ;;  %v708_v14 = vmul.f32 %v6270_v61, %v682_v34  ;;  %v4693_v0 = vpack.c.bf16 %v707_v22, %v667_v42 }
 0x37b   :  { %v6240_v46 = vpop.permute.xlu1 %751  ;;  %v6242_v47 = vpop.permute.xlu0 %717 }
 0x37c   :  { %v720_v29 = vsel %vm719_vm3, %v6236_v43, %v6242_v47 }
 0x37f   :  { %v756_v51 = vpop.permute.xlu1 %755  ;;  %v754_v52 = vpop.permute.xlu0 %753 }
 0x380   :  { %v762_v53 = vsel %vm759_vm4, %v6240_v46, %v754_v52  ;;  %v761_v22 = vsel %vm759_vm4, %v754_v52, %v756_v51 }
 0x381   :  { %v788_v59 = vmul.f32 %v6318_v18, %v762_v53 }
 0x383   :  { %v6257_v56 = vpop.permute.xlu1 %818  ;;  %v758_v57 = vpop.permute.xlu0 %757 }
 0x384   :  { %v760_v62 = vsel %vm759_vm4, %v756_v51, %v758_v57  ;;  %v763_v43 = vsel %vm759_vm4, %v758_v57, %v6240_v46  ;;  %v789_v57 = vmul.f32 %v6321_v21, %v761_v22 }
 0x385   :  { %v790_v54 = vmul.f32 %v6328_v28, %v760_v62  ;;  %v748_v62 = vmul.f32 %v6301_v10, %v722_v30  ;;  %v787_v18 = vmul.f32 %v6325_v25, %v763_v43  ;;  %v749_v10 = vmul.f32 %v6304_v11, %v721_v55 }
 0x387   :  { %v823_v6 = vpop.permute.xlu1 %822  ;;  %v821_v7 = vpop.permute.xlu0 %820 }
 0x388   :  { %v828_v46 = vsel %vm826_vm5, %v821_v7, %v823_v6 }
 0x389   :  { %v855_v22 = vmul.f32 %v6340_v39, %v828_v46  ;;  %v6458_v46 = vrot.slane %v6356_v33, %v6244_v48 }
 0x38b   :  { %v6342_v40 = vpop.permute.xlu1 %858  ;;  %v825_v41 = vpop.permute.xlu0 %824 }
 0x38c   :  { %v830_v51 = vsel %vm826_vm5, %v825_v41, %v6257_v56 }
 0x38f   :  { %v633_v34 = vpop.permute.xlu1 %632  ;;  %v861_v42 = vpop.permute.xlu0 %860 }
 0x390   :  { %v642_v36 = vsel %vm640_vm1, %v633_v34, %v6204_v23  ;;  %v643_v44 = vsel %vm640_vm1, %v6206_v24, %v633_v34  ;;  %v723_v23 = vsel %vm719_vm3, %v6242_v47, %v6230_v38  ;;  %v750_v24 = vmul.f32 %v6310_v13, %v720_v29  ;;  %v4328_v13 = vld [vmem:[%s7538_s7 + $0x1c] sm:$0xf] }
 0x391   :  { %v668_v52 = vmul.f32 %v6353_v26, %v643_v44  ;;  %v669_v53 = vmul.f32 %v6365_v2, %v642_v36  ;;  %v829_v34 = vsel %vm826_vm5, %v6257_v56, %v821_v7  ;;  %v827_v38 = vsel %vm826_vm5, %v823_v6, %v825_v41 }
 0x392   :  { %v857_v47 = vmul.f32 %v6349_v32, %v830_v51  ;;  %v4711_v29 = vpack.c.bf16 %v790_v54, %v750_v24  ;;  %v4695_v56 = vpack.c.bf16 %v788_v59, %v748_v62  ;;  %v747_v7 = vmul.f32 %v6307_v12, %v723_v23 }
 0x393   :  { %v4709_v44 = vpack.c.bf16 %v709_v17, %v669_v53  ;;  %v863_v36 = vpop.permute.xlu1 %862  ;;  %v865_v28 = vpop.permute.xlu0 %864  ;;  %v4691_v30 = vpack.c.bf16 %v708_v14, %v668_v52  ;;  %v854_v14 = vmul.f32 %v6337_v37, %v829_v34  ;;  %v6431_v6 = vrot.slane %v6356_v33, %v6216_v31 }
 0x394   :  { %v4713_v54 = vpack.c.bf16 %v789_v57, %v749_v10  ;;  %v856_v55 = vmul.f32 %v6346_v45, %v827_v38  ;;  %v6436_v17 = vrot.slane %v4328_v13, %v6244_v48  ;;  %v6439_v43 = vrot.slane %v4328_v13, %v6248_v50 }
 0x395   :  { %4692 = vmatprep.subr.bf16.mxu0 %v4691_v30  ;;  %4710 = vmatpush1.bf16.msra.mxu1 %v4709_v44  ;;  %v4697_v51 = vpack.c.bf16 %v787_v18, %v747_v7  ;;  %v868_v52 = vsel %vm866_vm6, %v861_v42, %v863_v36  ;;  %v4715_v10 = vpack.c.bf16 %v857_v47, %v6294_v8 }
 0x396   :  { %4694 = vmatpush1.bf16.msra.mxu0 %v4693_v0  ;;  %4712 = vmatprep.subr.bf16.mxu1 %v4711_v29  ;;  %v867_v0 = vsel %vm866_vm6, %v863_v36, %v865_v28  ;;  %v4699_v62 = vpack.c.bf16 %v855_v22, %v6298_v9  ;;  %v6450_v23 = vrot.slane %v4328_v13, %v6246_v49 }
 0x397   :  { %v899_v41 = vpop.permute.xlu1 %898  ;;  %4696 = vmatprep.subr.bf16.mxu0 %v4695_v56  ;;  %v901_v59 = vpop.permute.xlu0 %900  ;;  %v6453_v24 = vrot.slane %v4328_v13, %v6216_v31  ;;  %v4701_v18 = vpack.c.bf16 %v854_v14, %v6282_v3  ;;  %v870_v8 = vsel %vm866_vm6, %v865_v28, %v6342_v40  ;;  %v4717_v9 = vpack.c.bf16 %v856_v55, %v6286_v4  ;;  %v4329_v56 = vld [vmem:[%s7538_s7 + $0x20] sm:$0xf]  ;;  %s7579_s7 = sld [smem:[#allocation73_spill]] }
 0x398   :  { %v909_v53 = vsel %vm906_vm7, %v899_v41, %v901_v59  ;;  %v869_v57 = vsel %vm866_vm6, %v6342_v40, %v861_v42  ;;  %v895_v13 = vmul.f32 %v6369_v5, %v868_v52  ;;  %v896_v3 = vmul.f32 %v6375_v58, %v867_v0 }
 0x399   :  { %4714 = vmatpush1.bf16.msra.mxu1 %v4713_v54  ;;  %v934_v44 = vmul.f32 %v6436_v17, %v909_v53  ;;  %v897_v40 = vmul.f32 %v6431_v6, %v870_v8  ;;  %v894_v47 = vmul.f32 %v6458_v46, %v869_v57  ;;  %v6493_v52 = vrot.slane %v4329_v56, %v6244_v48 }
 0x39a   :  { %4698 = vmatpush1.bf16.msra.mxu0 %v4697_v51  ;;  %4716 = vmatprep.subr.bf16.mxu1 %v4715_v10  ;;  %v6490_v51 = vrot.slane %v4329_v56, %v6216_v31  ;;  %v7555_v57 = vmov 0.0  }
 0x39b   :  { %v903_v34 = vpop.permute.xlu1 %902  ;;  %4700 = vmatprep.subr.bf16.mxu0 %v4699_v62  ;;  %v905_v33 = vpop.permute.xlu0 %904  ;;  %v4705_v55 = vpack.c.bf16 %v934_v44, %v894_v47  ;;  %7554 = vst [vmem:[#allocation96_spill] sm:$0xff] %v6493_v52 }
 0x39c   :  { %v908_v28 = vsel %vm906_vm7, %v901_v59, %v903_v34  ;;  %v907_v4 = vsel %vm906_vm7, %v903_v34, %v905_v33  ;;  %v910_v36 = vsel %vm906_vm7, %v905_v33, %v899_v41  ;;  %v6484_v41 = vrot.slane %v4329_v56, %v6246_v49  ;;  %7553 = vst [vmem:[#allocation95_spill] sm:$0xff] %v6490_v51 }
 0x39d   :  { %v935_v42 = vmul.f32 %v6439_v43, %v908_v28  ;;  %v936_v30 = vmul.f32 %v6450_v23, %v907_v4  ;;  %v937_v38 = vmul.f32 %v6453_v24, %v910_v36  ;;  %4718 = vmatpush1.bf16.msra.mxu1 %v4717_v9  ;;  %v6487_v59 = vrot.slane %v4329_v56, %v6248_v50  ;;  %v978_v9 = vld [vmem:[#allocation12] sm:$0xff] }
 0x39e   :  { %4702 = vmatpush1.bf16.msra.mxu0 %v4701_v18  ;;  %7551 = vst [vmem:[#allocation93_spill] sm:$0xff] %v6484_v41 }
 0x39f   :  { %v4721_v29 = vpack.c.bf16 %v936_v30, %v896_v3  ;;  %v939_v22 = vpop.permute.xlu1 %938  ;;  %v941_v7 = vpop.permute.xlu0 %940  ;;  %v4703_v14 = vpack.c.bf16 %v935_v42, %v895_v13  ;;  %v4719_v54 = vpack.c.bf16 %v937_v38, %v897_v40  ;;  %7552 = vst [vmem:[#allocation94_spill] sm:$0xff] %v6487_v59 }
 0x3a0   :  { %v949_v0 = vsel %vm946_vm8, %v939_v22, %v941_v7 }
 0x3a1   :  { %4704 = vmatprep.subr.bf16.mxu0 %v4703_v14  ;;  %4720 = vmatprep.subr.bf16.mxu1 %v4719_v54  ;;  %v974_v8 = vmul.f32 %v6493_v52, %v949_v0 }
 0x3a2   :  { %4706 = vmatpush1.bf16.msra.mxu0 %v4705_v55  ;;  %4722 = vmatpush1.bf16.msra.mxu1 %v4721_v29 }
 0x3a3   :  { %v943_v10 = vpop.permute.xlu1 %942  ;;  %v945_v53 = vpop.permute.xlu0 %944 }
 0x3a4   :  { %v948_v49 = vsel %vm946_vm8, %v941_v7, %v943_v10  ;;  %v947_v50 = vsel %vm946_vm8, %v943_v10, %v945_v53  ;;  %v950_v31 = vsel %vm946_vm8, %v945_v53, %v939_v22  ;;  %v1840_v53 = vld [vmem:[#allocation33] sm:$0xff] }
 0x3a5   :  { %v976_v62 = vmul.f32 %v6484_v41, %v947_v50  ;;  %v975_v48 = vmul.f32 %v6487_v59, %v948_v49  ;;  %v977_v18 = vmul.f32 %v6490_v51, %v950_v31 }
 0x3a7   :  { %1005 = vmatprep.subr.mxu0 %v975_v48  ;;  %1076 = vmatprep.subr.mxu1 %v977_v18 }
 0x3a8   :  { %1006 = vmatpush1.msra.mxu0 %v974_v8  ;;  %1077 = vmatpush1.msra.mxu1 %v976_v62 }
 0x3a9   :  { %4330 = vmatmul.mubr.msk.f32.vlgmr.msra.gmra.mrb[2].mxu0 %vm985_vm9, %v978_v9  ;;  %4331 = vmatmul.mubr.msk.f32.vlgmr.msra.gmra.mrb[2].mxu1 %vm985_vm9, %v978_v9 }
 0x3aa   :  { %1355 = vmatprep.mubr.f32.mxu0 %v7555_v57  ;;  %1426 = vmatprep.mubr.f32.mxu1 %v7555_v57 }
 0x3b4   :  { %v983_v13 = vpop.permute.xlu1 %982  ;;  %v1139_v38 = vpop.permute.xlu0 %1138 }
 0x47c   :  { %v1055_v3 = vpop.f32.mrb[2].mxu0  ;;  %v1126_v34 = vpop.f32.mrb[2].mxu1 }
 0x47d   :  { %v1056_v33 = vadd.f32 %v1055_v3, %v983_v13  ;;  %v1127_v44 = vadd.f32 %v1126_v34, %v983_v13  ;;  %v1057_v28 = vpop.f32.mrb[3].mxu0  ;;  %v1128_v4 = vpop.f32.mrb[3].mxu1 }
 0x47e   :  { %v1058_v36 = vadd.f32 %v1057_v28, %v983_v13  ;;  %v1129_v40 = vadd.f32 %v1128_v4, %v983_v13 }
 0x47f   :  { %v1131_v42 = vmax.f32 %v1056_v33, 0.0  ;;  %v1133_v30 = vmax.f32 %v1127_v44, 0.0 }
 0x480   :  { %v1132_v47 = vmax.f32 %v1058_v36, 0.0  ;;  %v1134_v29 = vmax.f32 %v1129_v40, 0.0 }
 0x481   :  { %v1141_v22 = vmul.f32 %v1139_v38, %v1131_v42  ;;  %v1143_v14 = vmul.f32 %v1139_v38, %v1133_v30 }
 0x482   :  { %v1142_v56 = vmul.f32 %v1139_v38, %v1132_v47  ;;  %v1144_v55 = vmul.f32 %v1139_v38, %v1134_v29 }
 0x483   :  { %v6512_v7 = vadd.f32 %v1141_v22, %v6132_v15  ;;  %v6522_v0 = vadd.f32 %v1143_v14, %v6134_v16  ;;  %v1282_v15 = vld [vmem:[#allocation7] sm:$0xff]  ;;  %v1437_v16 = vld [vmem:[#allocation4] sm:$0xff] }
 0x484   :  { %v6515_v54 = vadd.f32 %v1142_v56, %v6146_v20  ;;  %v6525_v10 = vadd.f32 %v1144_v55, %v6140_v19  ;;  %v1453_v19 = vld [vmem:[%s7556_s17] sm:$0xff]  ;;  %v1454_v20 = vld [vmem:[%s7556_s17 + $0x8] sm:$0xff]  ;;  %v7557_v56 = vld [vmem:[#allocation81_spill] sm:$0xff]  ;;  %s7580_s17 = sld [smem:[#allocation80_spill]] }
 0x485   :  { %1149 = vrot.lane.b32.xlu1 %v6512_v7, %s5752_s24 }
 0x486   :  { %1151 = vrot.lane.b32.xlu0 %v6515_v54, %s5752_s24 }
 0x489   :  { %1153 = vrot.lane.b32.xlu1 %v6522_v0, %s5752_s24 }
 0x48a   :  { %1155 = vrot.lane.b32.xlu0 %v6525_v10, %s5752_s24 }
 0x48d   :  { %1165 = vrot.lane.b32.xlu1 %v6512_v7, %s5753_s28 }
 0x48e   :  { %1167 = vrot.lane.b32.xlu0 %v6515_v54, %s5753_s28 }
 0x491   :  { %1169 = vrot.lane.b32.xlu1 %v6522_v0, %s5753_s28 }
 0x492   :  { %1171 = vrot.lane.b32.xlu0 %v6525_v10, %s5753_s28 }
 0x495   :  { %1181 = vrot.lane.b32.xlu1 %v6512_v7, %s5754_s20 }
 0x496   :  { %1183 = vrot.lane.b32.xlu0 %v6515_v54, %s5754_s20 }
 0x499   :  { %1185 = vrot.lane.b32.xlu1 %v6522_v0, %s5754_s20 }
 0x49a   :  { %1187 = vrot.lane.b32.xlu0 %v6525_v10, %s5754_s20 }
 0x49d   :  { %1197 = vrot.lane.b32.xlu1 %v6512_v7, %s5755_s1 }
 0x49e   :  { %1199 = vrot.lane.b32.xlu0 %v6515_v54, %s5755_s1 }
 0x4a1   :  { %1201 = vrot.lane.b32.xlu1 %v6522_v0, %s5755_s1 }
 0x4a2   :  { %1203 = vrot.lane.b32.xlu0 %v6525_v10, %s5755_s1 }
 0x4a5   :  { %1217 = vrot.lane.b32.xlu1 %v6512_v7, %s5756_s9 }
 0x4a6   :  { %1219 = vrot.lane.b32.xlu0 %v6515_v54, %s5756_s9 }
 0x4a9   :  { %1221 = vrot.lane.b32.xlu1 %v6522_v0, %s5756_s9 }
 0x4aa   :  { %1223 = vrot.lane.b32.xlu0 %v6525_v10, %s5756_s9 }
 0x4ad   :  { %1233 = vrot.lane.b32.xlu1 %v6512_v7, %s5757_s2 }
 0x4ae   :  { %1235 = vrot.lane.b32.xlu0 %v6515_v54, %s5757_s2 }
 0x4b1   :  { %1237 = vrot.lane.b32.xlu1 %v6522_v0, %s5757_s2 }
 0x4b2   :  { %1239 = vrot.lane.b32.xlu0 %v6525_v10, %s5757_s2 }
 0x4b5   :  { %1249 = vrot.lane.b32.xlu1 %v6512_v7, %s5758_s21 }
 0x4b6   :  { %1251 = vrot.lane.b32.xlu0 %v6515_v54, %s5758_s21 }
 0x4b9   :  { %1253 = vrot.lane.b32.xlu1 %v6522_v0, %s5758_s21 }
 0x4ba   :  { %1255 = vrot.lane.b32.xlu0 %v6525_v10, %s5758_s21 }
 0x4bd   :  { %1265 = vrot.lane.b32.xlu1 %v6512_v7, %s5759_s4 }
 0x4be   :  { %1267 = vrot.lane.b32.xlu0 %v6515_v54, %s5759_s4 }
 0x4c1   :  { %1269 = vrot.lane.b32.xlu1 %v6522_v0, %s5759_s4 }
 0x4c2   :  { %1271 = vrot.lane.b32.xlu0 %v6525_v10, %s5759_s4 }
 0x4c5   :  { %1285 = vperm.xlu1 %5145, %v1282_v15  }
 0x4c6   :  { %1440 = vperm.xlu0 %5144, %v1437_v16  }
 0x4c9   :  { %1457 = vperm.xlu1 %5145, %v1453_v19  }
 0x4ca   :  { %1462 = vperm.xlu0 %5144, %v1454_v20  }
 0x4cd   :  { %1843 = vperm.xlu1 %5145, %v1840_v53  }
 0x4f7   :  { %v1150_v49 = vpop.permute.xlu1 %1149 }
 0x4f8   :  { %v1152_v50 = vpop.permute.xlu0 %1151 }
 0x4f9   :  { %v1159_v48 = vsel %vm640_vm1, %v1150_v49, %v1152_v50 }
 0x4fa   :  { %v1162_v13 = vmul.f32 %v1159_v48, %v6353_v26 }
 0x4fb   :  { %v1154_v31 = vpop.permute.xlu1 %1153 }
 0x4fc   :  { %v1156_v62 = vpop.permute.xlu0 %1155  ;;  %v1158_v28 = vsel %vm640_vm1, %v1152_v50, %v1154_v31 }
 0x4fd   :  { %v1157_v34 = vsel %vm640_vm1, %v1154_v31, %v1156_v62  ;;  %v1160_v33 = vsel %vm640_vm1, %v1156_v62, %v1150_v49  ;;  %v1163_v55 = vmul.f32 %v1158_v28, %v6365_v2 }
 0x4fe   :  { %v1161_v47 = vmul.f32 %v1160_v33, %v6267_v60  ;;  %v1164_v29 = vmul.f32 %v1157_v34, %v6221_v35 }
 0x4ff   :  { %v1166_v18 = vpop.permute.xlu1 %1165 }
 0x500   :  { %v1168_v8 = vpop.permute.xlu0 %1167 }
 0x501   :  { %v1175_v9 = vsel %vm679_vm2, %v1166_v18, %v1168_v8 }
 0x502   :  { %v1178_v3 = vmul.f32 %v1175_v9, %v6270_v61 }
 0x503   :  { %v1170_v44 = vpop.permute.xlu1 %1169 }
 0x504   :  { %v1174_v4 = vsel %vm679_vm2, %v1168_v8, %v1170_v44  ;;  %v1172_v36 = vpop.permute.xlu0 %1171  ;;  %v4723_v40 = vpack.c.bf16 %v1178_v3, %v1162_v13  ;;  %v7558_v8 = vld [vmem:[#allocation88_spill] sm:$0xff]  ;;  %v7559_v13 = vld [vmem:[#allocation90_spill] sm:$0xff] }
 0x505   :  { %v1179_v42 = vmul.f32 %v1174_v4, %v6274_v63  ;;  %v1173_v30 = vsel %vm679_vm2, %v1170_v44, %v1172_v36  ;;  %v1176_v38 = vsel %vm679_vm2, %v1172_v36, %v1166_v18 }
 0x506   :  { %v1177_v22 = vmul.f32 %v1176_v38, %v6277_v1  ;;  %v1180_v14 = vmul.f32 %v1173_v30, %v7557_v56  ;;  %4724 = vmatprep.subr.bf16.mxu0 %v4723_v40 }
 0x507   :  { %v1182_v15 = vpop.permute.xlu1 %1181  ;;  %v4741_v53 = vpack.c.bf16 %v1179_v42, %v1163_v55  ;;  %v7561_v55 = vld [vmem:[#allocation91_spill] sm:$0xff] }
 0x508   :  { %v4725_v16 = vpack.c.bf16 %v1177_v22, %v1161_v47  ;;  %v1184_v19 = vpop.permute.xlu0 %1183  ;;  %v4739_v20 = vpack.c.bf16 %v1180_v14, %v1164_v29  ;;  %v7560_v29 = vld [vmem:[#allocation89_spill] sm:$0xff] }
 0x509   :  { %v1191_v31 = vsel %vm719_vm3, %v1182_v15, %v1184_v19 }
 0x50a   :  { %4726 = vmatpush1.bf16.msra.mxu0 %v4725_v16  ;;  %4740 = vmatprep.subr.bf16.mxu1 %v4739_v20  ;;  %v1194_v9 = vmul.f32 %v1191_v31, %v7558_v8 }
 0x50b   :  { %4742 = vmatpush1.bf16.msra.mxu1 %v4741_v53  ;;  %v1186_v49 = vpop.permute.xlu1 %1185 }
 0x50c   :  { %v1188_v50 = vpop.permute.xlu0 %1187  ;;  %v1190_v28 = vsel %vm719_vm3, %v1184_v19, %v1186_v49 }
 0x50d   :  { %v1189_v34 = vsel %vm719_vm3, %v1186_v49, %v1188_v50  ;;  %v1192_v33 = vsel %vm719_vm3, %v1188_v50, %v1182_v15  ;;  %v1195_v16 = vmul.f32 %v1190_v28, %v6304_v11 }
 0x50e   :  { %v1193_v47 = vmul.f32 %v1192_v33, %v6307_v12  ;;  %v1196_v22 = vmul.f32 %v1189_v34, %v7560_v29 }
 0x50f   :  { %v1198_v62 = vpop.permute.xlu1 %1197 }
 0x510   :  { %v1200_v48 = vpop.permute.xlu0 %1199 }
 0x511   :  { %v1207_v18 = vsel %vm759_vm4, %v1198_v62, %v1200_v48 }
 0x512   :  { %v1210_v3 = vmul.f32 %v1207_v18, %v7559_v13 }
 0x513   :  { %v1202_v44 = vpop.permute.xlu1 %1201 }
 0x514   :  { %v1206_v4 = vsel %vm759_vm4, %v1200_v48, %v1202_v44  ;;  %v1204_v36 = vpop.permute.xlu0 %1203  ;;  %v4727_v40 = vpack.c.bf16 %v1210_v3, %v1194_v9  ;;  %v7562_v48 = vld [vmem:[#allocation82_spill] sm:$0xff] }
 0x515   :  { %v1211_v42 = vmul.f32 %v1206_v4, %v6321_v21  ;;  %v1205_v30 = vsel %vm759_vm4, %v1202_v44, %v1204_v36  ;;  %v1208_v38 = vsel %vm759_vm4, %v1204_v36, %v1198_v62  ;;  %v1213_v18 = vmul.f32 %v6512_v7, %v7562_v48  ;;  %v7563_v4 = vld [vmem:[#allocation85_spill] sm:$0xff] }
 0x516   :  { %v1209_v14 = vmul.f32 %v1208_v38, %v6325_v25  ;;  %v1212_v15 = vmul.f32 %v1205_v30, %v7561_v55  ;;  %4728 = vmatprep.subr.bf16.mxu0 %v4727_v40  ;;  %v1214_v36 = vmul.f32 %v6515_v54, %v7563_v4  ;;  %v7564_v40 = vld [vmem:[#allocation83_spill] sm:$0xff] }
 0x517   :  { %v1218_v19 = vpop.permute.xlu1 %1217  ;;  %v4745_v50 = vpack.c.bf16 %v1211_v42, %v1195_v16  ;;  %v1215_v42 = vmul.f32 %v6522_v0, %v7564_v40 }
 0x518   :  { %v4729_v20 = vpack.c.bf16 %v1209_v14, %v1193_v47  ;;  %v1220_v53 = vpop.permute.xlu0 %1219  ;;  %v4743_v49 = vpack.c.bf16 %v1212_v15, %v1196_v22  ;;  %v7565_v47 = vld [vmem:[#allocation84_spill] sm:$0xff] }
 0x519   :  { %v1227_v31 = vsel %vm826_vm5, %v1218_v19, %v1220_v53  ;;  %v1216_v22 = vmul.f32 %v6525_v10, %v7565_v47 }
 0x51a   :  { %4730 = vmatpush1.bf16.msra.mxu0 %v4729_v20  ;;  %4744 = vmatprep.subr.bf16.mxu1 %v4743_v49  ;;  %v1229_v9 = vmul.f32 %v1227_v31, %v6337_v37 }
 0x51b   :  { %4746 = vmatpush1.bf16.msra.mxu1 %v4745_v50  ;;  %v1222_v62 = vpop.permute.xlu1 %1221 }
 0x51c   :  { %v1226_v3 = vsel %vm826_vm5, %v1220_v53, %v1222_v62  ;;  %v1224_v34 = vpop.permute.xlu0 %1223  ;;  %v4733_v16 = vpack.c.bf16 %v1229_v9, %v1213_v18 }
 0x51d   :  { %v1230_v33 = vmul.f32 %v1226_v3, %v6340_v39  ;;  %v1225_v44 = vsel %vm826_vm5, %v1222_v62, %v1224_v34  ;;  %v1228_v28 = vsel %vm826_vm5, %v1224_v34, %v1218_v19 }
 0x51e   :  { %v1231_v30 = vmul.f32 %v1225_v44, %v6346_v45  ;;  %v1232_v38 = vmul.f32 %v1228_v28, %v6349_v32 }
 0x51f   :  { %v1234_v14 = vpop.permute.xlu1 %1233  ;;  %v4731_v15 = vpack.c.bf16 %v1230_v33, %v1214_v36 }
 0x520   :  { %v4749_v20 = vpack.c.bf16 %v1231_v30, %v1215_v42  ;;  %v1236_v53 = vpop.permute.xlu0 %1235  ;;  %v4747_v49 = vpack.c.bf16 %v1232_v38, %v1216_v22 }
 0x521   :  { %4732 = vmatprep.subr.bf16.mxu0 %v4731_v15  ;;  %v1243_v3 = vsel %vm866_vm6, %v1234_v14, %v1236_v53 }
 0x522   :  { %4734 = vmatpush1.bf16.msra.mxu0 %v4733_v16  ;;  %4748 = vmatprep.subr.bf16.mxu1 %v4747_v49  ;;  %v1245_v28 = vmul.f32 %v1243_v3, %v6458_v46 }
 0x523   :  { %4750 = vmatpush1.bf16.msra.mxu1 %v4749_v20  ;;  %v1238_v19 = vpop.permute.xlu1 %1237 }
 0x524   :  { %v1240_v50 = vpop.permute.xlu0 %1239  ;;  %v1242_v18 = vsel %vm866_vm6, %v1236_v53, %v1238_v19 }
 0x525   :  { %v1241_v9 = vsel %vm866_vm6, %v1238_v19, %v1240_v50  ;;  %v1244_v33 = vsel %vm866_vm6, %v1240_v50, %v1234_v14  ;;  %v1246_v38 = vmul.f32 %v1242_v18, %v6369_v5 }
 0x526   :  { %v1247_v14 = vmul.f32 %v1241_v9, %v6375_v58  ;;  %v1248_v20 = vmul.f32 %v1244_v33, %v6431_v6 }
 0x527   :  { %v1250_v31 = vpop.permute.xlu1 %1249 }
 0x528   :  { %v1252_v62 = vpop.permute.xlu0 %1251 }
 0x529   :  { %v1259_v34 = vsel %vm906_vm7, %v1250_v31, %v1252_v62 }
 0x52a   :  { %v1261_v36 = vmul.f32 %v1259_v34, %v6436_v17 }
 0x52b   :  { %v1254_v44 = vpop.permute.xlu1 %1253 }
 0x52c   :  { %v1258_v42 = vsel %vm906_vm7, %v1252_v62, %v1254_v44  ;;  %v1256_v30 = vpop.permute.xlu0 %1255  ;;  %v4737_v62 = vpack.c.bf16 %v1261_v36, %v1245_v28 }
 0x52d   :  { %v1262_v22 = vmul.f32 %v1258_v42, %v6439_v43  ;;  %v1257_v15 = vsel %vm906_vm7, %v1254_v44, %v1256_v30  ;;  %v1260_v16 = vsel %vm906_vm7, %v1256_v30, %v1250_v31 }
 0x52e   :  { %v1263_v53 = vmul.f32 %v1257_v15, %v6450_v23  ;;  %v1264_v49 = vmul.f32 %v1260_v16, %v6453_v24  ;;  %v1281_v15 = vld [vmem:[#allocation13] sm:$0xff] }
 0x52f   :  { %v1266_v19 = vpop.permute.xlu1 %1265  ;;  %v4735_v50 = vpack.c.bf16 %v1262_v22, %v1246_v38 }
 0x530   :  { %v4753_v3 = vpack.c.bf16 %v1263_v53, %v1247_v14  ;;  %v1268_v34 = vpop.permute.xlu0 %1267  ;;  %v4751_v18 = vpack.c.bf16 %v1264_v49, %v1248_v20 }
 0x531   :  { %4736 = vmatprep.subr.bf16.mxu0 %v4735_v50  ;;  %v1275_v31 = vsel %vm946_vm8, %v1266_v19, %v1268_v34 }
 0x532   :  { %4738 = vmatpush1.bf16.msra.mxu0 %v4737_v62  ;;  %4752 = vmatprep.subr.bf16.mxu1 %v4751_v18  ;;  %v1277_v30 = vmul.f32 %v1275_v31, %v6493_v52  ;;  %v1662_v52 = vld [vmem:[#allocation31 + $0x128] sm:$0xff] }
 0x533   :  { %4754 = vmatpush1.bf16.msra.mxu1 %v4753_v3  ;;  %v1270_v9 = vpop.permute.xlu1 %1269 }
 0x534   :  { %v1274_v33 = vsel %vm946_vm8, %v1268_v34, %v1270_v9  ;;  %v1272_v44 = vpop.permute.xlu0 %1271 }
 0x535   :  { %v1273_v42 = vsel %vm946_vm8, %v1270_v9, %v1272_v44  ;;  %v1276_v28 = vsel %vm946_vm8, %v1272_v44, %v1266_v19  ;;  %v1278_v36 = vmul.f32 %v1274_v33, %v6487_v59 }
 0x536   :  { %v1279_v38 = vmul.f32 %v1273_v42, %v6484_v41  ;;  %v1280_v22 = vmul.f32 %v1276_v28, %v6490_v51  ;;  %v1646_v51 = vld [vmem:[#allocation31 + $0xa8] sm:$0xff] }
 0x537   :  { %1307 = vmatprep.subr.mxu0 %v1278_v36  ;;  %v1630_v41 = vld [vmem:[#allocation31 + $0x28] sm:$0xff] }
 0x538   :  { %1308 = vmatpush1.msra.mxu0 %v1277_v30  ;;  %1378 = vmatprep.subr.mxu1 %v1280_v22  ;;  %v1641_v30 = vld [vmem:[#allocation31 + $0x80] sm:$0xff] }
 0x539   :  { %4332 = vmatmul.mubr.msk.f32.vlgmr.msra.gmra.mrb[4].mxu0 %vm985_vm9, %v1281_v15  ;;  %1379 = vmatpush1.msra.mxu1 %v1279_v38  ;;  %v1642_v38 = vld [vmem:[#allocation31 + $0x88] sm:$0xff]  ;;  %v1625_v22 = vld [vmem:[#allocation31] sm:$0xff] }
 0x53a   :  { %4333 = vmatmul.mubr.msk.f32.vlgmr.msra.gmra.mrb[4].mxu1 %vm985_vm9, %v1281_v15  ;;  %1535 = vmatprep.mubr.f32.mxu0 %v7555_v57 }
 0x53b   :  { %1612 = vmatprep.mubr.f32.mxu1 %v7555_v57 }
 0x544   :  { %v1286_v16 = vpop.permute.xlu1 %1285 }
 0x545   :  { %v1441_v18 = vpop.permute.xlu0 %1440 }
 0x60c   :  { %v1357_v14 = vpop.f32.mrb[4].mxu0 }
 0x60d   :  { %v1358_v20 = vadd.f32 %v1357_v14, %v1286_v16  ;;  %v1359_v53 = vpop.f32.mrb[5].mxu0  ;;  %v1428_v49 = vpop.f32.mrb[4].mxu1  ;;  %v1626_v14 = vld [vmem:[#allocation31 + $0x8] sm:$0xff] }
 0x60e   :  { %v1360_v19 = vadd.f32 %v1359_v53, %v1286_v16  ;;  %v1429_v50 = vadd.f32 %v1428_v49, %v1286_v16  ;;  %v1430_v62 = vpop.f32.mrb[5].mxu1  ;;  %v1673_v53 = vld [vmem:[#allocation31 + $0x180] sm:$0xff] }
 0x60f   :  { %v1433_v3 = vmax.f32 %v1358_v20, 0.0  ;;  %v1431_v34 = vadd.f32 %v1430_v62, %v1286_v16  ;;  %v1674_v20 = vld [vmem:[#allocation31 + $0x188] sm:$0xff] }
 0x610   :  { %v1434_v31 = vmax.f32 %v1360_v19, 0.0  ;;  %v1435_v9 = vmax.f32 %v1429_v50, 0.0  ;;  %v1451_v19 = vld [vmem:[%s7566_s10] sm:$0xff]  ;;  %v1657_v50 = vld [vmem:[#allocation31 + $0x100] sm:$0xff] }
 0x611   :  { %v1443_v33 = vmul.f32 %v1441_v18, %v1433_v3  ;;  %v1436_v44 = vmax.f32 %v1431_v34, 0.0  ;;  %v1658_v62 = vld [vmem:[#allocation31 + $0x108] sm:$0xff]  ;;  %v1643_v34 = vld [vmem:[#allocation31 + $0x90] sm:$0xff] }
 0x612   :  { %v1444_v42 = vmul.f32 %v1441_v18, %v1434_v31  ;;  %v1445_v28 = vmul.f32 %v1441_v18, %v1435_v9  ;;  %v4757_v31 = vpack.c.bf16 %v1626_v14, %v1625_v22  ;;  %v4787_v9 = vpack.c.bf16 %v1674_v20, %v1673_v53  ;;  %v1677_v14 = vld [vmem:[#allocation31 + $0x1a0] sm:$0xff]  ;;  %v1678_v53 = vld [vmem:[#allocation31 + $0x1a8] sm:$0xff] }
 0x613   :  { %v1446_v36 = vmul.f32 %v1441_v18, %v1436_v44  ;;  %v6701_v16 = vadd.f32 %v1443_v33, %v6512_v7  ;;  %v1644_v18 = vld [vmem:[#allocation31 + $0x98] sm:$0xff]  ;;  %v1452_v7 = vld [vmem:[%s7566_s10 + $0x8] sm:$0xff]  ;;  %s7581_s10 = sld [smem:[#allocation72_spill]] }
 0x614   :  { %v6698_v15 = vadd.f32 %v1444_v42, %v6515_v54  ;;  %v6708_v3 = vadd.f32 %v1445_v28, %v6522_v0  ;;  %v4755_v54 = vpack.c.bf16 %v1642_v38, %v1641_v30  ;;  %v1676_v33 = vld [vmem:[#allocation31 + $0x198] sm:$0xff]  ;;  %v4789_v0 = vpack.c.bf16 %v1658_v62, %v1657_v50  ;;  %v1627_v44 = vld [vmem:[#allocation31 + $0x10] sm:$0xff]  ;;  %v1645_v38 = vld [vmem:[#allocation31 + $0xa0] sm:$0xff] }
 0x615   :  { %v6704_v49 = vadd.f32 %v1446_v36, %v6525_v10  ;;  %v1675_v10 = vld [vmem:[#allocation31 + $0x190] sm:$0xff]  ;;  %v1628_v42 = vld [vmem:[#allocation31 + $0x18] sm:$0xff]  ;;  %v4759_v36 = vpack.c.bf16 %v1644_v18, %v1643_v34  ;;  %v1629_v62 = vld [vmem:[#allocation31 + $0x20] sm:$0xff]  ;;  %v4795_v18 = vpack.c.bf16 %v1678_v53, %v1677_v14 }
 0x616   :  { %1471 = vmatprep.subr.mxu0 %v6698_v15  ;;  %v1659_v28 = vld [vmem:[#allocation31 + $0x110] sm:$0xff]  ;;  %v1660_v30 = vld [vmem:[#allocation31 + $0x118] sm:$0xff]  ;;  %v4791_v22 = vpack.c.bf16 %v1676_v33, %v1675_v10  ;;  %v4761_v20 = vpack.c.bf16 %v1628_v42, %v1627_v44  ;;  %v1661_v34 = vld [vmem:[#allocation31 + $0x120] sm:$0xff] }
 0x617   :  { %1472 = vmatpush1.msra.mxu0 %v6701_v16  ;;  %1548 = vmatprep.subr.mxu1 %v6704_v49  ;;  %v4793_v50 = vpack.c.bf16 %v1660_v30, %v1659_v28  ;;  %v1648_v10 = vld [vmem:[#allocation31 + $0xb8] sm:$0xff]  ;;  %v1679_v33 = vld [vmem:[#allocation31 + $0x1b0] sm:$0xff]  ;;  %v1681_v14 = vld [vmem:[#allocation31 + $0x1c0] sm:$0xff] }
 0x618   :  { %4334 = vmatmul.mubr.msk.f32.vlgmr.msra.gmra.mrb[6].mxu0 %vm480_vm0, %v1451_v19  ;;  %1549 = vmatpush1.msra.mxu1 %v6708_v3  ;;  %v1632_v42 = vld [vmem:[#allocation31 + $0x38] sm:$0xff]  ;;  %v1663_v28 = vld [vmem:[#allocation31 + $0x130] sm:$0xff]  ;;  %v1682_v53 = vld [vmem:[#allocation31 + $0x1c8] sm:$0xff] }
 0x619   :  { %4336 = vmatmul.mubr.msk.f32.vlgmr.msra.gmra.mrb[6].mxu1 %vm480_vm0, %v1451_v19  ;;  %1541 = vmatprep.mubr.f32.mxu0 %v7555_v57  ;;  %v4763_v19 = vpack.c.bf16 %v1646_v51, %v1645_v38  ;;  %v1631_v51 = vld [vmem:[#allocation31 + $0x30] sm:$0xff]  ;;  %v1650_v38 = vld [vmem:[#allocation31 + $0xc8] sm:$0xff] }
 0x61a   :  { %1618 = vmatprep.mubr.f32.mxu1 %v7555_v57  ;;  %4756 = vmatprep.subr.bf16.mxu0 %v4755_v54  ;;  %v1647_v54 = vld [vmem:[#allocation31 + $0xb0] sm:$0xff] }
 0x61b   :  { %4758 = vmatpush3.bf16.msra.mxu0 %v4757_v31  ;;  %4788 = vmatprep.subr.bf16.mxu1 %v4787_v9  ;;  %v1680_v31 = vld [vmem:[#allocation31 + $0x1b8] sm:$0xff]  ;;  %v4765_v9 = vpack.c.bf16 %v1630_v41, %v1629_v62  ;;  %v4767_v44 = vpack.c.bf16 %v1648_v10, %v1647_v54  ;;  %v4803_v62 = vpack.c.bf16 %v1682_v53, %v1681_v14  ;;  %v1651_v54 = vld [vmem:[#allocation31 + $0xd0] sm:$0xff]  ;;  %v1686_v14 = vld [vmem:[#allocation31 + $0x1e8] sm:$0xff] }
 0x61c   :  { %4335 = vmatmul.mubr.msk.f32.gmra.mrb[8].mxu0 %vm480_vm0, %v1452_v7  ;;  %4790 = vmatpush3.bf16.msra.mxu1 %v4789_v0  ;;  %v4797_v0 = vpack.c.bf16 %v1662_v52, %v1661_v34  ;;  %v4799_v30 = vpack.c.bf16 %v1680_v31, %v1679_v33  ;;  %v1665_v52 = vld [vmem:[#allocation31 + $0x140] sm:$0xff]  ;;  %v1666_v34 = vld [vmem:[#allocation31 + $0x148] sm:$0xff]  ;;  %v1683_v10 = vld [vmem:[#allocation31 + $0x1d0] sm:$0xff] }
 0x61d   :  { %4337 = vmatmul.mubr.msk.f32.gmra.mrb[8].mxu1 %vm480_vm0, %v1452_v7  ;;  %4760 = vmatprep.subr.bf16.mxu0 %v4759_v36  ;;  %v1664_v7 = vld [vmem:[#allocation31 + $0x138] sm:$0xff]  ;;  %v1649_v36 = vld [vmem:[#allocation31 + $0xc0] sm:$0xff] }
 0x61e   :  { %4792 = vmatprep.subr.bf16.mxu1 %v4791_v22  ;;  %v4769_v22 = vpack.c.bf16 %v1632_v42, %v1631_v51  ;;  %v4771_v41 = vpack.c.bf16 %v1650_v38, %v1649_v36  ;;  %v1684_v33 = vld [vmem:[#allocation31 + $0x1d8] sm:$0xff]  ;;  %v1667_v42 = vld [vmem:[#allocation31 + $0x150] sm:$0xff]  ;;  %v1653_v36 = vld [vmem:[#allocation31 + $0xe0] sm:$0xff] }
 0x61f   :  { %4762 = vmatpush3.bf16.msra.mxu0 %v4761_v20  ;;  %v4801_v20 = vpack.c.bf16 %v1664_v7, %v1663_v28  ;;  %v4807_v28 = vpack.c.bf16 %v1684_v33, %v1683_v10  ;;  %v1668_v7 = vld [vmem:[#allocation31 + $0x158] sm:$0xff]  ;;  %v1685_v38 = vld [vmem:[#allocation31 + $0x1e0] sm:$0xff] }
 0x620   :  { %4794 = vmatpush3.bf16.msra.mxu1 %v4793_v50  ;;  %4764 = vmatprep.subr.bf16.mxu0 %v4763_v19  ;;  %v1633_v50 = vld [vmem:[#allocation31 + $0x40] sm:$0xff]  ;;  %v1634_v19 = vld [vmem:[#allocation31 + $0x48] sm:$0xff]  ;;  %v1656_v10 = vld [vmem:[#allocation31 + $0xf8] sm:$0xff] }
 0x621   :  { %4796 = vmatprep.subr.bf16.mxu1 %v4795_v18  ;;  %v1652_v18 = vld [vmem:[#allocation31 + $0xd8] sm:$0xff]  ;;  %v4773_v31 = vpack.c.bf16 %v1634_v19, %v1633_v50  ;;  %v4811_v19 = vpack.c.bf16 %v1686_v14, %v1685_v38 }
 0x622   :  { %v4775_v51 = vpack.c.bf16 %v1652_v18, %v1651_v54  ;;  %v1655_v18 = vld [vmem:[#allocation31 + $0xf0] sm:$0xff] }
 0x623   :  { %4766 = vmatpush3.bf16.msra.mxu0 %v4765_v9  ;;  %v4805_v9 = vpack.c.bf16 %v1666_v34, %v1665_v52  ;;  %v1669_v52 = vld [vmem:[#allocation31 + $0x160] sm:$0xff]  ;;  %v1670_v34 = vld [vmem:[#allocation31 + $0x168] sm:$0xff]  ;;  %v4783_v33 = vpack.c.bf16 %v1656_v10, %v1655_v18 }
 0x624   :  { %4798 = vmatpush3.bf16.msra.mxu1 %v4797_v0  ;;  %4768 = vmatprep.subr.bf16.mxu0 %v4767_v44  ;;  %v1635_v0 = vld [vmem:[#allocation31 + $0x50] sm:$0xff]  ;;  %v1636_v44 = vld [vmem:[#allocation31 + $0x58] sm:$0xff]  ;;  %v4813_v54 = vpack.c.bf16 %v1670_v34, %v1669_v52 }
 0x625   :  { %4800 = vmatprep.subr.bf16.mxu1 %v4799_v30  ;;  %v1654_v30 = vld [vmem:[#allocation31 + $0xe8] sm:$0xff]  ;;  %v4777_v53 = vpack.c.bf16 %v1636_v44, %v1635_v0  ;;  %v1688_v44 = vld [vmem:[#allocation31 + $0x1f8] sm:$0xff] }
 0x626   :  { %v4779_v50 = vpack.c.bf16 %v1654_v30, %v1653_v36  ;;  %v1458_v30 = vpop.permute.xlu1 %1457 }
 0x627   :  { %4770 = vmatpush3.bf16.msra.mxu0 %v4769_v22  ;;  %v4809_v22 = vpack.c.bf16 %v1668_v7, %v1667_v42  ;;  %v1671_v42 = vld [vmem:[#allocation31 + $0x170] sm:$0xff] }
 0x628   :  { %4802 = vmatpush3.bf16.msra.mxu1 %v4801_v20  ;;  %4772 = vmatprep.subr.bf16.mxu0 %v4771_v41  ;;  %v1637_v20 = vld [vmem:[#allocation31 + $0x60] sm:$0xff]  ;;  %v1638_v41 = vld [vmem:[#allocation31 + $0x68] sm:$0xff] }
 0x629   :  { %4804 = vmatprep.subr.bf16.mxu1 %v4803_v62  ;;  %v4781_v62 = vpack.c.bf16 %v1638_v41, %v1637_v20 }
 0x62b   :  { %4774 = vmatpush3.bf16.msra.mxu0 %v4773_v31  ;;  %v1639_v31 = vld [vmem:[#allocation31 + $0x70] sm:$0xff] }
 0x62c   :  { %4806 = vmatpush3.bf16.msra.mxu1 %v4805_v9  ;;  %4776 = vmatprep.subr.bf16.mxu0 %v4775_v51  ;;  %v1640_v9 = vld [vmem:[#allocation31 + $0x78] sm:$0xff]  ;;  %v1687_v51 = vld [vmem:[#allocation31 + $0x1f0] sm:$0xff] }
 0x62d   :  { %4808 = vmatprep.subr.bf16.mxu1 %v4807_v28  ;;  %v4785_v0 = vpack.c.bf16 %v1640_v9, %v1639_v31  ;;  %v1672_v28 = vld [vmem:[#allocation31 + $0x178] sm:$0xff]  ;;  %v4815_v7 = vpack.c.bf16 %v1688_v44, %v1687_v51  ;;  %v5760_v51 = vmov 0.0|0.0  }
 0x62e   :  { %v4817_v36 = vpack.c.bf16 %v1672_v28, %v1671_v42 }
 0x62f   :  { %4778 = vmatpush3.bf16.msra.mxu0 %v4777_v53 }
 0x630   :  { %4810 = vmatpush3.bf16.msra.mxu1 %v4809_v22  ;;  %4780 = vmatprep.subr.bf16.mxu0 %v4779_v50 }
 0x631   :  { %4812 = vmatprep.subr.bf16.mxu1 %v4811_v19  ;;  %v1463_v19 = vpop.permute.xlu0 %1462 }
 0x633   :  { %4782 = vmatpush3.bf16.msra.mxu0 %v4781_v62 }
 0x634   :  { %4814 = vmatpush3.bf16.msra.mxu1 %v4813_v54  ;;  %4784 = vmatprep.subr.bf16.mxu0 %v4783_v33 }
 0x635   :  { %4816 = vmatprep.subr.bf16.mxu1 %v4815_v7 }
 0x637   :  { %4786 = vmatpush3.bf16.msra.mxu0 %v4785_v0 }
 0x638   :  { %4818 = vmatpush3.bf16.msra.mxu1 %v4817_v36  ;;  %4819 = vmatprep.subr.bf16.mxu0 %v5760_v51 }
 0x639   :  { %4822 = vmatprep.subr.bf16.mxu1 %v5760_v51 }
 0x6eb   :  { %v1537_v38 = vpop.f32.mrb[6].mxu0 }
 0x6ec   :  { %v1539_v14 = vpop.f32.mrb[7].mxu0  ;;  %v1614_v53 = vpop.f32.mrb[6].mxu1  ;;  %v1538_v20 = vadd.f32 %v1537_v38, %v1458_v30 }
 0x6ed   :  { %v1540_v22 = vadd.f32 %v1539_v14, %v1458_v30  ;;  %v1616_v50 = vpop.f32.mrb[7].mxu1  ;;  %v1615_v52 = vadd.f32 %v1614_v53, %v1458_v30 }
 0x6ee   :  { %v1617_v41 = vadd.f32 %v1616_v50, %v1458_v30 }
 0x6ef   :  { %v1543_v34 = vpop.f32.mrb[8].mxu0  ;;  %1753 = vmatprep.mubr.f32.mxu0 %v1540_v22 }
 0x6f0   :  { %v1545_v62 = vpop.f32.mrb[9].mxu0  ;;  %v1620_v54 = vpop.f32.mrb[8].mxu1  ;;  %1754 = vmatmul.mubr.f32.vlgmr.msra.gmra.mrb[10].mxu0 %v1538_v20  ;;  %1828 = vmatprep.mubr.f32.mxu1 %v1617_v41  ;;  %v1544_v33 = vadd.f32 %v1543_v34, %v1463_v19 }
 0x6f1   :  { %v1546_v18 = vadd.f32 %v1545_v62, %v1463_v19  ;;  %v1622_v10 = vpop.f32.mrb[9].mxu1  ;;  %1829 = vmatmul.mubr.f32.vlgmr.msra.gmra.mrb[10].mxu1 %v1615_v52  ;;  %v1621_v9 = vadd.f32 %v1620_v54, %v1463_v19  ;;  %v1839_v52 = vld [vmem:[#allocation34] sm:$0xff]  ;;  %v1844_v34 = vpop.permute.xlu1 %1843 }
 0x6f2   :  { %v1623_v31 = vadd.f32 %v1622_v10, %v1463_v19 }
 0x6f3   :  { %1758 = vmatprep.mubr.f32.mxu0 %v1546_v18 }
 0x6f4   :  { %1759 = vmatmul.mubr.f32.gmra.mrb[12].mxu0 %v1544_v33  ;;  %1833 = vmatprep.mubr.f32.mxu1 %v1623_v31  ;;  %v2098_v33 = vld [vmem:[%s7567_s11] sm:$0xff]  ;;  %s7582_s11 = sld [smem:[#allocation74_spill]] }
 0x6f5   :  { %1834 = vmatmul.mubr.f32.gmra.mrb[12].mxu1 %v1621_v9  ;;  %4536 = vmatprep.mubr.msk.f32.mxu0 %vm5761_vm10, %v7555_v57  ;;  %v2018_v31 = vld [vmem:[%s7568_s25] sm:$0xff]  ;;  %s7583_s25 = sld [smem:[#allocation75_spill]] }
 0x6f6   :  { %4557 = vmatprep.mubr.msk.f32.mxu1 %vm5761_vm10, %v7555_v57  ;;  %v6752_v9 = vld [vmem:[%s7569_s8 + $0x1] ss:$0 sm:$0xff] }
 0x7c3   :  { %v4410_v0 = vpop.f32.mrb[10].mxu0 }
 0x7c4   :  { %v4411_v44 = vpop.f32.mrb[11].mxu0  ;;  %v4448_v42 = vpop.f32.mrb[10].mxu1 }
 0x7c5   :  { %v4412_v28 = vadd.f32 %v4411_v44, %v4410_v0  ;;  %v4449_v7 = vpop.f32.mrb[11].mxu1  ;;  %v6755_v0 = vld [vmem:[%s7569_s8] ss:$0 sm:$0xff] }
 0x7c6   :  { %v4450_v36 = vadd.f32 %v4449_v7, %v4448_v42 }
 0x7c7   :  { %v4413_v30 = vpop.f32.mrb[12].mxu0 }
 0x7c8   :  { %v1831_v38 = vadd.f32 %v4450_v36, %v4412_v28  ;;  %v4414_v14 = vpop.f32.mrb[13].mxu0  ;;  %v4451_v53 = vpop.f32.mrb[12].mxu1  ;;  %v6760_v36 = vld [vmem:[%s7569_s8 + $0x3] ss:$0 sm:$0xff] }
 0x7c9   :  { %v4415_v22 = vadd.f32 %v4414_v14, %v4413_v30  ;;  %v4452_v50 = vpop.f32.mrb[13].mxu1  ;;  %v6763_v30 = vld [vmem:[%s7569_s8 + $0x2] ss:$0 sm:$0xff] }
 0x7ca   :  { %v4453_v20 = vadd.f32 %v4452_v50, %v4451_v53 }
 0x7cc   :  { %v1836_v41 = vadd.f32 %v4453_v20, %v4415_v22  ;;  %v6769_v20 = vld [vmem:[%s7569_s8 + $0x4] ss:$0 sm:$0xff] }
 0x7ce   :  { %v4820_v19 = vpack.c.bf16 %v1836_v41, %v1831_v38  ;;  %v6772_v41 = vld [vmem:[%s7569_s8 + $0x5] ss:$0 sm:$0xff] }
 0x7d0   :  { %4821 = vmatpush3.bf16.msra.mxu0 %v4820_v19 }
 0x7d1   :  { %4834 = vmatprep.subr.bf16.mxu0 %v5760_v51 }
 0x7d3   :  { %4537 = vmatmul.mubr.msk.f32.vlgmr.msra.gmra.mrb[14].mxu0 %vm1846_vm11, %v1839_v52 }
 0x7d4   :  { %4578 = vmatprep.mubr.msk.f32.mxu0 %vm5761_vm10, %v7555_v57 }
 0x8a6   :  { %v1916_v62 = vpop.f32.mrb[14].mxu0 }
 0x8a7   :  { %v1917_v54 = vadd.f32 %v1916_v62, %v1844_v34  ;;  %v4538_v18 = vpop.f32.mrb[15].mxu0 }
 0x8a9   :  { %v6731_v10 = vmax.f32 %v1917_v54, 0.0  ;;  %v6778_v54 = vld [vmem:[%s7569_s8 + $0x6] ss:$0 sm:$0xff] }
 0x8ab   :  { %1931 = vrot.lane.b32.xlu1 %v6731_v10, %s5736_s5  ;;  %1921 = vrot.lane.b32.xlu0 %v6731_v10, %s5762_s3  ;;  %v1972_v34 = vmul.f32 %v6769_v20, %v6731_v10 }
 0x8af   :  { %1953 = vrot.lane.b32.xlu1 %v6731_v10, %s5755_s1  ;;  %1942 = vrot.lane.b32.xlu0 %v6731_v10, %s5763_s0 }
 0x8b3   :  { %1984 = vrot.lane.b32.xlu1 %v6731_v10, %s5764_s15  ;;  %1973 = vrot.lane.b32.xlu0 %v6731_v10, %s5756_s9 }
 0x8b7   :  { %2006 = vrot.lane.b32.xlu1 %v6731_v10, %s5765_s16  ;;  %1995 = vrot.lane.b32.xlu0 %v6731_v10, %s5766_s19 }
 0x8bb   :  { %2101 = vperm.xlu1 %5145, %v2098_v33   ;;  %2021 = vperm.xlu0 %5144, %v2018_v31   ;;  %v6782_v33 = vld [vmem:[%s7569_s8 + $0x7] ss:$0 sm:$0xff] }
 0x91d   :  { %v1932_v44 = vpop.permute.xlu1 %1931  ;;  %v1922_v42 = vpop.permute.xlu0 %1921 }
 0x91e   :  { %v1941_v28 = vmul.f32 %v6752_v9, %v1932_v44  ;;  %v1930_v7 = vmul.f32 %v6755_v0, %v1922_v42 }
 0x920   :  { %v4823_v38 = vpack.c.bf16 %v1941_v28, %v1930_v7 }
 0x921   :  { %v1954_v14 = vpop.permute.xlu1 %1953  ;;  %v1943_v53 = vpop.permute.xlu0 %1942 }
 0x922   :  { %v1963_v22 = vmul.f32 %v6760_v36, %v1954_v14  ;;  %v1952_v50 = vmul.f32 %v6763_v30, %v1943_v53  ;;  %4824 = vmatpush3.bf16.msra.mxu1 %v4823_v38  ;;  %v6788_v38 = vld [vmem:[%s7569_s8 + $0x8] ss:$0 sm:$0xff] }
 0x923   :  { %4825 = vmatprep.subr.bf16.mxu1 %v5760_v51 }
 0x924   :  { %v4826_v19 = vpack.c.bf16 %v1963_v22, %v1952_v50  ;;  %v2017_v22 = vld [vmem:[%s7570_s18] sm:$0xff] }
 0x925   :  { %v1974_v52 = vpop.permute.xlu0 %1973  ;;  %v1985_v18 = vpop.permute.xlu1 %1984 }
 0x926   :  { %v1983_v62 = vmul.f32 %v6772_v41, %v1974_v52  ;;  %4827 = vmatpush3.bf16.msra.mxu1 %v4826_v19  ;;  %v1994_v42 = vmul.f32 %v6778_v54, %v1985_v18 }
 0x927   :  { %4828 = vmatprep.subr.bf16.mxu1 %v5760_v51 }
 0x928   :  { %v4829_v31 = vpack.c.bf16 %v1983_v62, %v1972_v34 }
 0x929   :  { %v1996_v44 = vpop.permute.xlu0 %1995  ;;  %v2007_v14 = vpop.permute.xlu1 %2006 }
 0x92a   :  { %v2005_v28 = vmul.f32 %v6782_v33, %v1996_v44  ;;  %4830 = vmatpush3.bf16.msra.mxu1 %v4829_v31  ;;  %v2016_v53 = vmul.f32 %v6788_v38, %v2007_v14  ;;  %v2640_v14 = vld [vmem:[%s7574_s6] sm:$0xff] }
 0x92b   :  { %4831 = vmatprep.subr.bf16.mxu1 %v5760_v51 }
 0x92c   :  { %v4832_v7 = vpack.c.bf16 %v2005_v28, %v1994_v42  ;;  %v2132_v42 = vld [vmem:[%s7572_s23] sm:$0xff]  ;;  %v2223_v28 = vld [vmem:[%s7573_s27 + $0x8] sm:$0xff] }
 0x92e   :  { %4833 = vmatpush3.bf16.msra.mxu1 %v4832_v7  ;;  %v2222_v7 = vld [vmem:[%s7573_s27] sm:$0xff] }
 0x92f   :  { %4555 = vmatprep.subr.mxu1 %v7555_v57 }
 0x932   :  { %4556 = vmatpush3.msra.mxu1 %v2016_v53 }
 0x933   :  { %4558 = vmatmul.mubr.msk.f32.vlgmr.msra.gmra.mrb[14].mxu1 %vm985_vm9, %v2017_v22 }
 0x93a   :  { %v2022_v50 = vpop.permute.xlu0 %2021  ;;  %v2102_v18 = vpop.permute.xlu1 %2101 }
 0xa06   :  { %v2093_v19 = vpop.f32.mrb[14].mxu1 }
 0xa07   :  { %v2094_v52 = vadd.f32 %v2093_v19, %v2022_v50  ;;  %v4559_v34 = vpop.f32.mrb[15].mxu1 }
 0xa09   :  { %v2097_v62 = vmax.f32 %v2094_v52, 0.0 }
 0xa0b   :  { %v2104_v31 = vmul.f32 %v2102_v18, %v2097_v62 }
 0xa0d   :  { %v6795_v44 = vadd.f32 %v2104_v31, %v6731_v10  ;;  %v2212_v10 = vld [vmem:[%s7571_s22] sm:$0xff] }
 0xa0f   :  { %2109 = vrot.lane.b32.xlu1 %v6795_v44, %s5736_s5  ;;  %2106 = vrot.lane.b32.xlu0 %v6795_v44, %s5762_s3 }
 0xa13   :  { %2115 = vrot.lane.b32.xlu1 %v6795_v44, %s5755_s1  ;;  %2112 = vrot.lane.b32.xlu0 %v6795_v44, %s5763_s0 }
 0xa17   :  { %2122 = vrot.lane.b32.xlu1 %v6795_v44, %s5764_s15  ;;  %2119 = vrot.lane.b32.xlu0 %v6795_v44, %s5756_s9 }
 0xa1b   :  { %2128 = vrot.lane.b32.xlu1 %v6795_v44, %s5765_s16  ;;  %2125 = vrot.lane.b32.xlu0 %v6795_v44, %s5766_s19 }
 0xa1f   :  { %2215 = vperm.xlu1 %5145, %v2212_v10   ;;  %2135 = vperm.xlu0 %5144, %v2132_v42  }
 0xa23   :  { %2231 = vperm.xlu1 %5145, %v2223_v28   ;;  %2226 = vperm.xlu0 %5144, %v2222_v7   ;;  %v2118_v28 = vmul.f32 %v6769_v20, %v6795_v44 }
 0xa27   :  { %2643 = vperm.xlu0 %5144, %v2640_v14  }
 0xa81   :  { %v2110_v53 = vpop.permute.xlu1 %2109  ;;  %v2107_v22 = vpop.permute.xlu0 %2106 }
 0xa82   :  { %v2111_v50 = vmul.f32 %v6752_v9, %v2110_v53  ;;  %v2108_v19 = vmul.f32 %v6755_v0, %v2107_v22 }
 0xa84   :  { %v4835_v52 = vpack.c.bf16 %v2111_v50, %v2108_v19 }
 0xa85   :  { %v2116_v34 = vpop.permute.xlu1 %2115  ;;  %v2113_v62 = vpop.permute.xlu0 %2112 }
 0xa86   :  { %v2117_v18 = vmul.f32 %v6760_v36, %v2116_v34  ;;  %v2114_v31 = vmul.f32 %v6763_v30, %v2113_v62  ;;  %4836 = vmatpush3.bf16.msra.mxu0 %v4835_v52 }
 0xa87   :  { %4837 = vmatprep.subr.bf16.mxu0 %v5760_v51 }
 0xa88   :  { %v4838_v10 = vpack.c.bf16 %v2117_v18, %v2114_v31  ;;  %v2131_v18 = vld [vmem:[%s7575_s26] sm:$0xff] }
 0xa89   :  { %v2120_v42 = vpop.permute.xlu0 %2119  ;;  %v2123_v14 = vpop.permute.xlu1 %2122  ;;  %v2220_v31 = vld [vmem:[%s7576_s13] sm:$0xff] }
 0xa8a   :  { %v2121_v7 = vmul.f32 %v6772_v41, %v2120_v42  ;;  %4839 = vmatpush3.bf16.msra.mxu0 %v4838_v10  ;;  %v2124_v50 = vmul.f32 %v6778_v54, %v2123_v14  ;;  %4583 = vmatprep.mubr.msk.f32.mxu1 %vm480_vm0, %v2220_v31  ;;  %v2221_v31 = vld [vmem:[%s7576_s13 + $0x8] sm:$0xff] }
 0xa8b   :  { %4840 = vmatprep.subr.bf16.mxu0 %v5760_v51 }
 0xa8c   :  { %v4841_v53 = vpack.c.bf16 %v2121_v7, %v2118_v28 }
 0xa8d   :  { %v2126_v22 = vpop.permute.xlu0 %2125  ;;  %v2129_v34 = vpop.permute.xlu1 %2128 }
 0xa8e   :  { %v2127_v19 = vmul.f32 %v6782_v33, %v2126_v22  ;;  %4842 = vmatpush3.bf16.msra.mxu0 %v4841_v53  ;;  %v2130_v62 = vmul.f32 %v6788_v38, %v2129_v34  ;;  %v2315_v22 = vld [vmem:[%s6010_s30] sm:$0xff]  ;;  %v2318_v34 = vld [vmem:[%s6010_s30 + $0x18] sm:$0xff] }
 0xa8f   :  { %4843 = vmatprep.subr.bf16.mxu0 %v5760_v51 }
 0xa90   :  { %v4844_v52 = vpack.c.bf16 %v2127_v19, %v2124_v50  ;;  %v2316_v50 = vld [vmem:[%s6010_s30 + $0x8] sm:$0xff] }
 0xa92   :  { %4845 = vmatpush3.bf16.msra.mxu0 %v4844_v52  ;;  %v2317_v52 = vld [vmem:[%s6010_s30 + $0x10] sm:$0xff] }
 0xa93   :  { %4576 = vmatprep.subr.mxu0 %v7555_v57 }
 0xa96   :  { %4577 = vmatpush3.msra.mxu0 %v2130_v62 }
 0xa97   :  { %4579 = vmatmul.mubr.msk.f32.vlgmr.msra.gmra.mrb[16].mxu0 %vm985_vm9, %v2131_v18  ;;  %v4846_v18 = vpack.c.bf16 %v2316_v50, %v2315_v22  ;;  %v2323_v22 = vld [vmem:[%s6010_s30 + $0x40] sm:$0xff]  ;;  %v2324_v50 = vld [vmem:[%s6010_s30 + $0x48] sm:$0xff] }
 0xa9e   :  { %v2136_v10 = vpop.permute.xlu0 %2135  ;;  %v2216_v53 = vpop.permute.xlu1 %2215 }
 0xb6a   :  { %v2207_v42 = vpop.f32.mrb[16].mxu0 }
 0xb6b   :  { %v2208_v28 = vadd.f32 %v2207_v42, %v2136_v10  ;;  %v4580_v7 = vpop.f32.mrb[17].mxu0  ;;  %v4850_v10 = vpack.c.bf16 %v2318_v34, %v2317_v52  ;;  %v2319_v42 = vld [vmem:[%s6010_s30 + $0x20] sm:$0xff]  ;;  %v2325_v52 = vld [vmem:[%s6010_s30 + $0x50] sm:$0xff]  ;;  %v2326_v34 = vld [vmem:[%s6010_s30 + $0x58] sm:$0xff] }
 0xb6c   :  { %v2321_v7 = vld [vmem:[%s6010_s30 + $0x30] sm:$0xff] }
 0xb6d   :  { %v2211_v14 = vmax.f32 %v2208_v28, 0.0  ;;  %v2320_v28 = vld [vmem:[%s6010_s30 + $0x28] sm:$0xff] }
 0xb6f   :  { %v2218_v19 = vmul.f32 %v2216_v53, %v2211_v14  ;;  %v2322_v14 = vld [vmem:[%s6010_s30 + $0x38] sm:$0xff] }
 0xb70   :  { %v4858_v53 = vpack.c.bf16 %v2322_v14, %v2321_v7  ;;  %v2406_v14 = vld [vmem:[%s6015_s14] sm:$0xff] }
 0xb71   :  { %v6841_v62 = vadd.f32 %v2218_v19, %v6795_v44  ;;  %v4854_v44 = vpack.c.bf16 %v2320_v28, %v2319_v42  ;;  %v4862_v19 = vpack.c.bf16 %v2324_v50, %v2323_v22  ;;  %v2328_v42 = vld [vmem:[%s6010_s30 + $0x68] sm:$0xff]  ;;  %v2329_v28 = vld [vmem:[%s6010_s30 + $0x70] sm:$0xff] }
 0xb72   :  { %v2408_v22 = vld [vmem:[%s6015_s14 + $0x10] sm:$0xff] }
 0xb73   :  { %4581 = vmatprep.subr.mxu1 %v6841_v62 }
 0xb74   :  { %4582 = vmatpush3.msra.mxu1 %v6841_v62 }
 0xb75   :  { %4584 = vmatmul.mubr.msk.f32.vlgmr.msra.gmra.mrb[16].mxu1 %vm480_vm0, %v2221_v31  ;;  %4847 = vmatprep.subr.bf16.mxu1 %v4846_v18  ;;  %v2327_v31 = vld [vmem:[%s6010_s30 + $0x60] sm:$0xff] }
 0xb76   :  { %4849 = vmatpush3.bf16.msra.mxu1 %v4846_v18  ;;  %v4866_v18 = vpack.c.bf16 %v2326_v34, %v2325_v52  ;;  %v2409_v52 = vld [vmem:[%s6015_s14 + $0x18] sm:$0xff] }
 0xb77   :  { %4851 = vmatprep.subr.bf16.mxu1 %v4850_v10  ;;  %v4882_v34 = vpack.c.bf16 %v2409_v52, %v2408_v22  ;;  %v2492_v52 = vld [vmem:[#allocation36] sm:$0xff] }
 0xb7a   :  { %4853 = vmatpush3.bf16.msra.mxu1 %v4850_v10  ;;  %v4870_v10 = vpack.c.bf16 %v2328_v42, %v2327_v31  ;;  %v2232_v42 = vpop.permute.xlu1 %2231 }
 0xb7b   :  { %4855 = vmatprep.subr.bf16.mxu1 %v4854_v44 }
 0xb7e   :  { %4857 = vmatpush3.bf16.msra.mxu1 %v4854_v44  ;;  %v2330_v44 = vld [vmem:[%s6010_s30 + $0x78] sm:$0xff]  ;;  %s7577_s30 = sld [smem:[#allocation78_spill]] }
 0xb7f   :  { %4859 = vmatprep.subr.bf16.mxu1 %v4858_v53  ;;  %v4874_v7 = vpack.c.bf16 %v2330_v44, %v2329_v28 }
 0xb82   :  { %4861 = vmatpush3.bf16.msra.mxu1 %v4858_v53  ;;  %v2407_v53 = vld [vmem:[%s6015_s14 + $0x8] sm:$0xff]  ;;  %s7578_s14 = sld [smem:[#allocation71_spill]] }
 0xb83   :  { %4863 = vmatprep.subr.bf16.mxu1 %v4862_v19  ;;  %v4878_v50 = vpack.c.bf16 %v2407_v53, %v2406_v14 }
 0xb84   :  { %v2493_v14 = vld [vmem:[%s7577_s30] sm:$0xff] }
 0xb85   :  { %4879 = vmatprep.subr.bf16.mxu0 %v4878_v50 }
 0xb86   :  { %4865 = vmatpush3.bf16.msra.mxu1 %v4862_v19  ;;  %4881 = vmatpush3.bf16.msra.mxu0 %v4878_v50 }
 0xb87   :  { %4867 = vmatprep.subr.bf16.mxu1 %v4866_v18  ;;  %4883 = vmatprep.subr.bf16.mxu0 %v4882_v34 }
 0xb8a   :  { %4869 = vmatpush3.bf16.msra.mxu1 %v4866_v18  ;;  %4885 = vmatpush3.bf16.msra.mxu0 %v4882_v34  ;;  %v2227_v18 = vpop.permute.xlu0 %2226 }
 0xb8b   :  { %4871 = vmatprep.subr.bf16.mxu1 %v4870_v10  ;;  %4632 = vmatprep.subr.mxu0 %v7555_v57 }
 0xb8e   :  { %4873 = vmatpush3.bf16.msra.mxu1 %v4870_v10 }
 0xb8f   :  { %4875 = vmatprep.subr.bf16.mxu1 %v4874_v7 }
 0xb92   :  { %4877 = vmatpush3.bf16.msra.mxu1 %v4874_v7 }
 0xb93   :  { %4901 = vmatprep.subr.bf16.mxu1 %v5760_v51 }
 0xc48   :  { %v4585_v19 = vpop.f32.mrb[16].mxu1 }
 0xc49   :  { %v2306_v31 = vpop.f32.mrb[17].mxu1  ;;  %v2312_v28 = vadd.f32 %v4585_v19, %v2232_v42  ;;  %v2644_v42 = vpop.permute.xlu0 %2643 }
 0xc4a   :  { %v2307_v10 = vadd.f32 %v2306_v31, %v2227_v18 }
 0xc4c   :  { %4618 = vmatprep.mubr.f32.mxu1 %v2307_v10 }
 0xc4d   :  { %4619 = vmatmul.mubr.f32.vlgmr.msra.gmra.mrb[18].mxu1 %v2312_v28 }
 0xc4e   :  { %4683 = vmatprep.mubr.msk.f32.mxu1 %vm5761_vm10, %v7555_v57 }
 0xd20   :  { %v4620_v44 = vpop.f32.mrb[18].mxu1 }
 0xd21   :  { %v2397_v7 = vpop.f32.mrb[19].mxu1 }
 0xd22   :  { %4629 = vmatprep.mubr.msk.f32.mxu0 %vm2410_vm12, %v2397_v7  ;;  %v2674_v7 = vld [vmem:[%s7579_s7] sm:$0xff] }
 0xd23   :  { %4630 = vmatmul.mubr.msk.f32.vlgmr.msra.gmra.mrb[18].mxu0 %vm2410_vm12, %v4620_v44  ;;  %v2754_v44 = vld [vmem:[%s7578_s14] sm:$0xff] }
 0xd24   :  { %4633 = vmatpush3.msra.mxu0 %v6841_v62  ;;  %4634 = vmatprep.mubr.msk.f32.mxu0 %vm5761_vm10, %v7555_v57 }
 0xd25   :  { %4886 = vmatprep.subr.bf16.mxu0 %v5760_v51 }
 0xd27   :  { %4635 = vmatmul.mubr.msk.f32.vlgmr.msra.gmra.mrb[20].mxu0 %vm480_vm0, %v2493_v14 }
 0xd28   :  { %4641 = vmatprep.mubr.msk.f32.mxu0 %vm5761_vm10, %v7555_v57 }
 0xdf6   :  { %v4631_v53 = vpop.f32.mrb[18].mxu0 }
 0xdf7   :  { %v2483_v22 = vpop.f32.mrb[19].mxu0 }
 0xdf8   :  { %v4887_v50 = vpack.c.bf16 %v4631_v53, %v2483_v22 }
 0xdfa   :  { %4888 = vmatpush3.bf16.msra.mxu0 %v4887_v50  ;;  %v2563_v62 = vpop.f32.mrb[20].mxu0 }
 0xdfb   :  { %4889 = vmatprep.subr.bf16.mxu0 %v5760_v51  ;;  %v4636_v34 = vpop.f32.mrb[21].mxu0 }
 0xdfd   :  { %4642 = vmatmul.mubr.msk.f32.vlgmr.msra.gmra.mrb[22].mxu0 %vm1846_vm11, %v2492_v52 }
 0xdfe   :  { %4662 = vmatprep.mubr.msk.f32.mxu0 %vm5761_vm10, %v7555_v57 }
 0xed0   :  { %v2636_v19 = vpop.f32.mrb[22].mxu0 }
 0xed1   :  { %v2637_v18 = vadd.f32 %v2636_v19, %v2563_v62  ;;  %v4643_v31 = vpop.f32.mrb[23].mxu0 }
 0xed3   :  { %v2646_v10 = vadd.f32 %v2644_v42, %v2637_v18 }
 0xed5   :  { %v2647_v28 = vmax.f32 %v2646_v10, 0.0 }
 0xed7   :  { %2651 = vrot.lane.b32.xlu0 %v2647_v28, %s5736_s5  ;;  %2648 = vrot.lane.b32.xlu1 %v2647_v28, %s5762_s3  ;;  %v2660_v10 = vmul.f32 %v6769_v20, %v2647_v28 }
 0xedb   :  { %2657 = vrot.lane.b32.xlu0 %v2647_v28, %s5755_s1  ;;  %2654 = vrot.lane.b32.xlu1 %v2647_v28, %s5763_s0 }
 0xedf   :  { %2664 = vrot.lane.b32.xlu0 %v2647_v28, %s5764_s15  ;;  %2661 = vrot.lane.b32.xlu1 %v2647_v28, %s5756_s9 }
 0xee3   :  { %2670 = vrot.lane.b32.xlu0 %v2647_v28, %s5765_s16  ;;  %2667 = vrot.lane.b32.xlu1 %v2647_v28, %s5766_s19 }
 0xee7   :  { %2757 = vperm.xlu0 %5144, %v2754_v44   ;;  %2677 = vperm.xlu1 %5145, %v2674_v7  }
 0xf49   :  { %v2652_v14 = vpop.permute.xlu0 %2651  ;;  %v2649_v53 = vpop.permute.xlu1 %2648 }
 0xf4a   :  { %v2653_v22 = vmul.f32 %v6752_v9, %v2652_v14  ;;  %v2650_v50 = vmul.f32 %v6755_v0, %v2649_v53 }
 0xf4c   :  { %v4890_v52 = vpack.c.bf16 %v2653_v22, %v2650_v50 }
 0xf4d   :  { %v2658_v62 = vpop.permute.xlu0 %2657  ;;  %v2655_v34 = vpop.permute.xlu1 %2654 }
 0xf4e   :  { %v2659_v19 = vmul.f32 %v6760_v36, %v2658_v62  ;;  %v2656_v18 = vmul.f32 %v6763_v30, %v2655_v34  ;;  %4891 = vmatpush3.bf16.msra.mxu0 %v4890_v52 }
 0xf4f   :  { %4892 = vmatprep.subr.bf16.mxu0 %v5760_v51 }
 0xf50   :  { %v4893_v31 = vpack.c.bf16 %v2659_v19, %v2656_v18  ;;  %v2673_v19 = vld [vmem:[%s7580_s17] sm:$0xff] }
 0xf51   :  { %v2662_v42 = vpop.permute.xlu1 %2661  ;;  %v2665_v7 = vpop.permute.xlu0 %2664 }
 0xf52   :  { %v2663_v44 = vmul.f32 %v6772_v41, %v2662_v42  ;;  %4894 = vmatpush3.bf16.msra.mxu0 %v4893_v31  ;;  %v2666_v22 = vmul.f32 %v6778_v54, %v2665_v7 }
 0xf53   :  { %4895 = vmatprep.subr.bf16.mxu0 %v5760_v51 }
 0xf54   :  { %v4896_v14 = vpack.c.bf16 %v2663_v44, %v2660_v10 }
 0xf55   :  { %v2668_v53 = vpop.permute.xlu1 %2667  ;;  %v2671_v62 = vpop.permute.xlu0 %2670 }
 0xf56   :  { %v2669_v50 = vmul.f32 %v6782_v33, %v2668_v53  ;;  %4897 = vmatpush3.bf16.msra.mxu0 %v4896_v14  ;;  %v2672_v34 = vmul.f32 %v6788_v38, %v2671_v62  ;;  %v3481_v62 = vld [vmem:[#allocation24] sm:$0xff] }
 0xf57   :  { %4898 = vmatprep.subr.bf16.mxu0 %v5760_v51 }
 0xf58   :  { %v4899_v52 = vpack.c.bf16 %v2669_v50, %v2666_v22  ;;  %v2788_v22 = vld [vmem:[%s7582_s11] sm:$0xff]  ;;  %v2879_v50 = vld [vmem:[%s7583_s25 + $0x8] sm:$0xff] }
 0xf5a   :  { %4900 = vmatpush3.bf16.msra.mxu0 %v4899_v52  ;;  %v2878_v52 = vld [vmem:[%s7583_s25] sm:$0xff] }
 0xf5b   :  { %4660 = vmatprep.subr.mxu0 %v7555_v57 }
 0xf5e   :  { %4661 = vmatpush3.msra.mxu0 %v2672_v34 }
 0xf5f   :  { %4663 = vmatmul.mubr.msk.f32.vlgmr.msra.gmra.mrb[24].mxu0 %vm985_vm9, %v2673_v19 }
 0xf66   :  { %v2678_v18 = vpop.permute.xlu1 %2677  ;;  %v2758_v7 = vpop.permute.xlu0 %2757 }
0x1032   :  { %v2749_v31 = vpop.f32.mrb[24].mxu0 }
0x1033   :  { %v2750_v42 = vadd.f32 %v2749_v31, %v2678_v18  ;;  %v4664_v10 = vpop.f32.mrb[25].mxu0 }
0x1035   :  { %v2753_v44 = vmax.f32 %v2750_v42, 0.0 }
0x1037   :  { %v2760_v14 = vmul.f32 %v2758_v7, %v2753_v44 }
0x1039   :  { %v6904_v53 = vadd.f32 %v2760_v14, %v2647_v28  ;;  %v2868_v28 = vld [vmem:[%s7581_s10] sm:$0xff] }
0x103b   :  { %2765 = vrot.lane.b32.xlu0 %v6904_v53, %s5736_s5  ;;  %2762 = vrot.lane.b32.xlu1 %v6904_v53, %s5762_s3  ;;  %s7584_s5 = sld [smem:[#allocation76_spill]] }
0x103c   :  { %s7585_s3 = sld [smem:[#allocation60_spill]] }
0x103f   :  { %2771 = vrot.lane.b32.xlu0 %v6904_v53, %s5755_s1  ;;  %2768 = vrot.lane.b32.xlu1 %v6904_v53, %s5763_s0 }
0x1043   :  { %2778 = vrot.lane.b32.xlu0 %v6904_v53, %s5764_s15  ;;  %2775 = vrot.lane.b32.xlu1 %v6904_v53, %s5756_s9 }
0x1047   :  { %2784 = vrot.lane.b32.xlu0 %v6904_v53, %s5765_s16  ;;  %2781 = vrot.lane.b32.xlu1 %v6904_v53, %s5766_s19 }
0x104b   :  { %2871 = vperm.xlu0 %5144, %v2868_v28   ;;  %2791 = vperm.xlu1 %5145, %v2788_v22  }
0x104f   :  { %2887 = vperm.xlu0 %5144, %v2879_v50   ;;  %2882 = vperm.xlu1 %5145, %v2878_v52   ;;  %v2774_v50 = vmul.f32 %v6769_v20, %v6904_v53 }
0x1053   :  { %3484 = vperm.xlu1 %5145, %v3481_v62  }
0x10ad   :  { %v2766_v34 = vpop.permute.xlu0 %2765  ;;  %v2763_v19 = vpop.permute.xlu1 %2762 }
0x10ae   :  { %v2767_v18 = vmul.f32 %v6752_v9, %v2766_v34  ;;  %v2764_v31 = vmul.f32 %v6755_v0, %v2763_v19  ;;  %v2787_v19 = vld [vmem:[%s6005_s29] sm:$0xff] }
0x10b0   :  { %v4902_v42 = vpack.c.bf16 %v2767_v18, %v2764_v31  ;;  %v2973_v18 = vld [vmem:[%s7585_s3 + $0x10] sm:$0xff] }
0x10b1   :  { %v2772_v10 = vpop.permute.xlu0 %2771  ;;  %v2769_v44 = vpop.permute.xlu1 %2768 }
0x10b2   :  { %v2773_v7 = vmul.f32 %v6760_v36, %v2772_v10  ;;  %v2770_v14 = vmul.f32 %v6763_v30, %v2769_v44  ;;  %4903 = vmatpush3.bf16.msra.mxu1 %v4902_v42  ;;  %v2982_v42 = vld [vmem:[%s7585_s3 + $0x58] sm:$0xff] }
0x10b3   :  { %4904 = vmatprep.subr.bf16.mxu1 %v5760_v51  ;;  %v2986_v10 = vld [vmem:[%s7585_s3 + $0x78] sm:$0xff] }
0x10b4   :  { %v4905_v28 = vpack.c.bf16 %v2773_v7, %v2770_v14  ;;  %v4949_v7 = vpack.c.bf16 %v2986_v10, %v2982_v42  ;;  %v2981_v14 = vld [vmem:[%s7585_s3 + $0x50] sm:$0xff]  ;;  %v3014_v42 = vld [vmem:[%s7585_s3 + $0x158] sm:$0xff] }
0x10b5   :  { %v2776_v22 = vpop.permute.xlu1 %2775  ;;  %v2779_v0 = vpop.permute.xlu0 %2778  ;;  %v3018_v10 = vld [vmem:[%s7585_s3 + $0x178] sm:$0xff] }
0x10b6   :  { %v2777_v9 = vmul.f32 %v6772_v41, %v2776_v22  ;;  %4906 = vmatpush3.bf16.msra.mxu1 %v4905_v28  ;;  %v2780_v30 = vmul.f32 %v6778_v54, %v2779_v0  ;;  %v2974_v54 = vld [vmem:[%s7585_s3 + $0x18] sm:$0xff]  ;;  %v2985_v28 = vld [vmem:[%s7585_s3 + $0x70] sm:$0xff] }
0x10b7   :  { %4907 = vmatprep.subr.bf16.mxu1 %v5760_v51  ;;  %v2990_v22 = vld [vmem:[%s7585_s3 + $0x98] sm:$0xff] }
0x10b8   :  { %v4908_v52 = vpack.c.bf16 %v2777_v9, %v2774_v50  ;;  %v2994_v50 = vld [vmem:[%s7585_s3 + $0xb8] sm:$0xff]  ;;  %v4951_v9 = vpack.c.bf16 %v2985_v28, %v2981_v14  ;;  %v3013_v14 = vld [vmem:[%s7585_s3 + $0x150] sm:$0xff] }
0x10b9   :  { %v2782_v36 = vpop.permute.xlu1 %2781  ;;  %v2785_v41 = vpop.permute.xlu0 %2784  ;;  %v4953_v0 = vpack.c.bf16 %v2994_v50, %v2990_v22  ;;  %v3017_v28 = vld [vmem:[%s7585_s3 + $0x170] sm:$0xff]  ;;  %v3022_v22 = vld [vmem:[%s7585_s3 + $0x198] sm:$0xff] }
0x10ba   :  { %v2783_v62 = vmul.f32 %v6782_v33, %v2782_v36  ;;  %4909 = vmatpush3.bf16.msra.mxu1 %v4908_v52  ;;  %v2786_v34 = vmul.f32 %v6788_v38, %v2785_v41  ;;  %v2978_v33 = vld [vmem:[%s7585_s3 + $0x38] sm:$0xff]  ;;  %v2977_v38 = vld [vmem:[%s7585_s3 + $0x30] sm:$0xff] }
0x10bb   :  { %4910 = vmatprep.subr.bf16.mxu1 %v5760_v51  ;;  %v2876_v51 = vld [vmem:[%s7584_s5] sm:$0xff]  ;;  %v4945_v31 = vpack.c.bf16 %v2978_v33, %v2974_v54  ;;  %v4947_v44 = vpack.c.bf16 %v2977_v38, %v2973_v18  ;;  %v2989_v52 = vld [vmem:[%s7585_s3 + $0x90] sm:$0xff]  ;;  %v3010_v54 = vld [vmem:[%s7585_s3 + $0x138] sm:$0xff] }
0x10bc   :  { %v4911_v20 = vpack.c.bf16 %v2783_v62, %v2780_v30  ;;  %4688 = vmatprep.mubr.msk.f32.mxu0 %vm480_vm0, %v2876_v51  ;;  %v2993_v36 = vld [vmem:[%s7585_s3 + $0xb0] sm:$0xff]  ;;  %v2998_v30 = vld [vmem:[%s7585_s3 + $0xd8] sm:$0xff] }
0x10bd   :  { %v3002_v62 = vld [vmem:[%s7585_s3 + $0xf8] sm:$0xff]  ;;  %v3009_v38 = vld [vmem:[%s7585_s3 + $0x130] sm:$0xff] }
0x10be   :  { %4912 = vmatpush3.bf16.msra.mxu1 %v4911_v20  ;;  %v4955_v20 = vpack.c.bf16 %v2993_v36, %v2989_v52  ;;  %v4957_v41 = vpack.c.bf16 %v3002_v62, %v2998_v30  ;;  %v3006_v51 = vld [vmem:[%s7585_s3 + $0x118] sm:$0xff]  ;;  %v3021_v52 = vld [vmem:[%s7585_s3 + $0x190] sm:$0xff] }
0x10bf   :  { %4681 = vmatprep.subr.mxu1 %v7555_v57  ;;  %v4961_v18 = vpack.c.bf16 %v3010_v54, %v3006_v51  ;;  %v3026_v50 = vld [vmem:[%s7585_s3 + $0x1b8] sm:$0xff]  ;;  %v3025_v36 = vld [vmem:[%s7585_s3 + $0x1b0] sm:$0xff]  ;;  %v2972_v54 = vld [vmem:[%s7585_s3 + $0x8] sm:$0xff] }
0x10c0   :  { %v4971_v30 = vpack.c.bf16 %v3025_v36, %v3021_v52  ;;  %v2992_v52 = vld [vmem:[%s7585_s3 + $0xa8] sm:$0xff] }
0x10c2   :  { %4682 = vmatpush3.msra.mxu1 %v2786_v34  ;;  %v2997_v34 = vld [vmem:[%s7585_s3 + $0xd0] sm:$0xff] }
0x10c3   :  { %4684 = vmatmul.mubr.msk.f32.vlgmr.msra.gmra.mrb[20].mxu1 %vm985_vm9, %v2787_v19  ;;  %4946 = vmatprep.subr.bf16.mxu1 %v4945_v31  ;;  %v3001_v19 = vld [vmem:[%s7585_s3 + $0xf0] sm:$0xff] }
0x10c4   :  { %3176 = vmatprep.mubr.f32.mxu1 %v7555_v57  ;;  %4948 = vmatpush1.bf16.msra.mxu1 %v4947_v44  ;;  %v4959_v33 = vpack.c.bf16 %v3001_v19, %v2997_v34  ;;  %v3005_v31 = vld [vmem:[%s7585_s3 + $0x110] sm:$0xff] }
0x10c5   :  { %4950 = vmatprep.subr.bf16.mxu1 %v4949_v7  ;;  %v4963_v44 = vpack.c.bf16 %v3009_v38, %v3005_v31  ;;  %v4965_v7 = vpack.c.bf16 %v3018_v10, %v3014_v42  ;;  %v2971_v31 = vld [vmem:[%s7585_s3] sm:$0xff]  ;;  %v2980_v42 = vld [vmem:[%s7585_s3 + $0x48] sm:$0xff] }
0x10c6   :  { %v2975_v38 = vld [vmem:[%s7585_s3 + $0x20] sm:$0xff]  ;;  %v2984_v10 = vld [vmem:[%s7585_s3 + $0x68] sm:$0xff] }
0x10c8   :  { %4952 = vmatpush1.bf16.msra.mxu1 %v4951_v9  ;;  %v4967_v9 = vpack.c.bf16 %v3017_v28, %v3013_v14  ;;  %v2877_v14 = vld [vmem:[%s7584_s5 + $0x8] sm:$0xff]  ;;  %v4915_v28 = vpack.c.bf16 %v2975_v38, %v2971_v31 }
0x10c9   :  { %4954 = vmatprep.subr.bf16.mxu1 %v4953_v0  ;;  %v4969_v0 = vpack.c.bf16 %v3026_v50, %v3022_v22  ;;  %v4917_v22 = vpack.c.bf16 %v2984_v10, %v2980_v42  ;;  %v2979_v50 = vld [vmem:[%s7585_s3 + $0x40] sm:$0xff] }
0x10ca   :  { %v2792_v62 = vpop.permute.xlu1 %2791  ;;  %v2872_v51 = vpop.permute.xlu0 %2871  ;;  %v3003_v42 = vld [vmem:[%s7585_s3 + $0x100] sm:$0xff] }
0x10cb   :  { %v3007_v10 = vld [vmem:[%s7585_s3 + $0x120] sm:$0xff] }
0x10cc   :  { %4956 = vmatpush1.bf16.msra.mxu1 %v4955_v20 }
0x10cd   :  { %4958 = vmatprep.subr.bf16.mxu1 %v4957_v41 }
0x10d0   :  { %4960 = vmatpush1.bf16.msra.mxu1 %v4959_v33  ;;  %v2976_v33 = vld [vmem:[%s7585_s3 + $0x28] sm:$0xff] }
0x10d1   :  { %4962 = vmatprep.subr.bf16.mxu1 %v4961_v18 }
0x10d4   :  { %4964 = vmatpush1.bf16.msra.mxu1 %v4963_v44 }
0x10d5   :  { %4966 = vmatprep.subr.bf16.mxu1 %v4965_v7  ;;  %v4913_v7 = vpack.c.bf16 %v2976_v33, %v2972_v54  ;;  %v2999_v54 = vld [vmem:[%s7585_s3 + $0xe0] sm:$0xff]  ;;  %v3004_v33 = vld [vmem:[%s7585_s3 + $0x108] sm:$0xff] }
0x10d8   :  { %4968 = vmatpush1.bf16.msra.mxu1 %v4967_v9  ;;  %v2983_v9 = vld [vmem:[%s7585_s3 + $0x60] sm:$0xff] }
0x10d9   :  { %4970 = vmatprep.subr.bf16.mxu1 %v4969_v0  ;;  %v2988_v0 = vld [vmem:[%s7585_s3 + $0x88] sm:$0xff] }
0x10da   :  { %v4921_v36 = vpack.c.bf16 %v2992_v52, %v2988_v0  ;;  %v3024_v0 = vld [vmem:[%s7585_s3 + $0x1a8] sm:$0xff] }
0x10dc   :  { %4972 = vmatpush1.bf16.msra.mxu1 %v4971_v30  ;;  %v2987_v30 = vld [vmem:[%s7585_s3 + $0x80] sm:$0xff] }
0x1196   :  { %v2863_v20 = vpop.f32.mrb[20].mxu1 }
0x1197   :  { %v2864_v41 = vadd.f32 %v2863_v20, %v2792_v62  ;;  %v4685_v34 = vpop.f32.mrb[21].mxu1  ;;  %v2991_v62 = vld [vmem:[%s7585_s3 + $0xa0] sm:$0xff]  ;;  %v2996_v20 = vld [vmem:[%s7585_s3 + $0xc8] sm:$0xff] }
0x1198   :  { %v4923_v34 = vpack.c.bf16 %v2991_v62, %v2987_v30  ;;  %v3023_v30 = vld [vmem:[%s7585_s3 + $0x1a0] sm:$0xff]  ;;  %v3028_v62 = vld [vmem:[%s7585_s3 + $0x1c8] sm:$0xff] }
0x1199   :  { %v2867_v19 = vmax.f32 %v2864_v41, 0.0  ;;  %v3000_v41 = vld [vmem:[%s7585_s3 + $0xe8] sm:$0xff] }
0x119b   :  { %v2874_v18 = vmul.f32 %v2872_v51, %v2867_v19  ;;  %v4925_v19 = vpack.c.bf16 %v3000_v41, %v2996_v20  ;;  %v2995_v51 = vld [vmem:[%s7585_s3 + $0xc0] sm:$0xff]  ;;  %v3032_v20 = vld [vmem:[%s7585_s3 + $0x1e8] sm:$0xff] }
0x119c   :  { %v4927_v31 = vpack.c.bf16 %v2999_v54, %v2995_v51  ;;  %v3031_v51 = vld [vmem:[%s7585_s3 + $0x1e0] sm:$0xff] }
0x119d   :  { %v2875_v44 = vadd.f32 %v2874_v18, %v6904_v53  ;;  %v4919_v53 = vpack.c.bf16 %v2983_v9, %v2979_v50  ;;  %v3008_v18 = vld [vmem:[%s7585_s3 + $0x128] sm:$0xff]  ;;  %v3015_v50 = vld [vmem:[%s7585_s3 + $0x160] sm:$0xff] }
0x119e   :  { %v4929_v38 = vpack.c.bf16 %v3008_v18, %v3004_v33  ;;  %v3020_v9 = vld [vmem:[%s7585_s3 + $0x188] sm:$0xff]  ;;  %v3030_v33 = vld [vmem:[%s7585_s3 + $0x1d8] sm:$0xff] }
0x119f   :  { %4686 = vmatprep.subr.mxu0 %v2875_v44  ;;  %v3034_v18 = vld [vmem:[%s7585_s3 + $0x1f8] sm:$0xff] }
0x11a0   :  { %4687 = vmatpush3.msra.mxu0 %v2875_v44  ;;  %v3012_v44 = vld [vmem:[%s7585_s3 + $0x148] sm:$0xff] }
0x11a1   :  { %4689 = vmatmul.mubr.msk.f32.vlgmr.msra.gmra.mrb[26].mxu0 %vm480_vm0, %v2877_v14  ;;  %4914 = vmatprep.subr.bf16.mxu0 %v4913_v7  ;;  %v3016_v7 = vld [vmem:[%s7585_s3 + $0x168] sm:$0xff]  ;;  %v4931_v14 = vpack.c.bf16 %v3007_v10, %v3003_v42  ;;  %v3033_v42 = vld [vmem:[%s7585_s3 + $0x1f0] sm:$0xff] }
0x11a2   :  { %4916 = vmatpush1.bf16.msra.mxu0 %v4915_v28  ;;  %3099 = vmatprep.mubr.f32.mxu0 %v7555_v57  ;;  %v4933_v28 = vpack.c.bf16 %v3016_v7, %v3012_v44  ;;  %v2883_v7 = vpop.permute.xlu1 %2882 }
0x11a3   :  { %4918 = vmatprep.subr.bf16.mxu0 %v4917_v22  ;;  %v3011_v22 = vld [vmem:[%s7585_s3 + $0x140] sm:$0xff] }
0x11a4   :  { %v4935_v52 = vpack.c.bf16 %v3015_v50, %v3011_v22  ;;  %v2888_v22 = vpop.permute.xlu0 %2887  ;;  %v3190_v50 = vld [vmem:[#allocation25] sm:$0xff] }
0x11a6   :  { %4920 = vmatpush1.bf16.msra.mxu0 %v4919_v53  ;;  %v4937_v53 = vpack.c.bf16 %v3024_v0, %v3020_v9 }
0x11a7   :  { %4922 = vmatprep.subr.bf16.mxu0 %v4921_v36  ;;  %v3019_v36 = vld [vmem:[%s7585_s3 + $0x180] sm:$0xff] }
0x11a8   :  { %v4939_v41 = vpack.c.bf16 %v3023_v30, %v3019_v36 }
0x11aa   :  { %4924 = vmatpush1.bf16.msra.mxu0 %v4923_v34  ;;  %v4941_v34 = vpack.c.bf16 %v3032_v20, %v3028_v62 }
0x11ab   :  { %4926 = vmatprep.subr.bf16.mxu0 %v4925_v19  ;;  %v3027_v19 = vld [vmem:[%s7585_s3 + $0x1c0] sm:$0xff] }
0x11ac   :  { %v4943_v54 = vpack.c.bf16 %v3031_v51, %v3027_v19  ;;  %v3485_v19 = vpop.permute.xlu1 %3484 }
0x11ae   :  { %4928 = vmatpush1.bf16.msra.mxu0 %v4927_v31  ;;  %v4973_v31 = vpack.c.bf16 %v3034_v18, %v3030_v33 }
0x11af   :  { %4930 = vmatprep.subr.bf16.mxu0 %v4929_v38  ;;  %v3029_v38 = vld [vmem:[%s7585_s3 + $0x1d0] sm:$0xff] }
0x11b0   :  { %v4975_v10 = vpack.c.bf16 %v3033_v42, %v3029_v38  ;;  %4974 = vmatprep.subr.bf16.mxu1 %v4973_v31 }
0x11b2   :  { %4932 = vmatpush1.bf16.msra.mxu0 %v4931_v14  ;;  %4976 = vmatpush1.bf16.msra.mxu1 %v4975_v10 }
0x11b3   :  { %4934 = vmatprep.subr.bf16.mxu0 %v4933_v28 }
0x11b6   :  { %4936 = vmatpush1.bf16.msra.mxu0 %v4935_v52 }
0x11b7   :  { %4938 = vmatprep.subr.bf16.mxu0 %v4937_v53 }
0x11ba   :  { %4940 = vmatpush1.bf16.msra.mxu0 %v4939_v41 }
0x11bb   :  { %4942 = vmatprep.subr.bf16.mxu0 %v4941_v34 }
0x11be   :  { %4944 = vmatpush1.bf16.msra.mxu0 %v4943_v54 }
0x11bf   :  { %3194 = vmatprep.subr.mxu0 %v6698_v15 }
0x1274   :  { %v4690_v44 = vpop.f32.mrb[26].mxu0 }
0x1275   :  { %v2962_v14 = vpop.f32.mrb[27].mxu0  ;;  %v2968_v15 = vadd.f32 %v4690_v44, %v2888_v22  ;;  %v3628_v22 = vld [vmem:[#allocation18] sm:$0xff] }
0x1276   :  { %v2963_v28 = vadd.f32 %v2962_v14, %v2883_v7 }
0x1278   :  { %3100 = vmatmul.mubr.f32.vlgmr.msra.gmra.mrb[28].mxu0 %v2963_v28  ;;  %3177 = vmatmul.mubr.f32.vlgmr.msra.gmra.mrb[22].mxu1 %v2963_v28 }
0x1279   :  { %3195 = vmatpush1.msra.mxu0 %v6701_v16  ;;  %3105 = vmatprep.mubr.f32.mxu0 %v7555_v57 }
0x127a   :  { %3265 = vmatprep.subr.mxu0 %v6704_v49  ;;  %3182 = vmatprep.mubr.f32.mxu1 %v7555_v57 }
0x127c   :  { %3106 = vmatmul.mubr.f32.gmra.mrb[30].mxu0 %v2968_v15  ;;  %3183 = vmatmul.mubr.f32.gmra.mrb[24].mxu1 %v2968_v15  ;;  %v3783_v15 = vld [vmem:[#allocation15] sm:$0xff] }
0x127d   :  { %3258 = vmatprep.mubr.f32.mxu0 %v7555_v57  ;;  %3701 = vmatprep.mubr.f32.mxu1 %v7555_v57 }
0x1280   :  { %4368 = vmatmul.mubr.msk.f32.vlgmr.msra.gmra.mrb[32].mxu0 %vm480_vm0, %v3190_v50 }
0x1281   :  { %3266 = vmatpush1.msra.mxu0 %v6708_v3  ;;  %3329 = vmatprep.mubr.f32.mxu0 %v7555_v57  ;;  %v3189_v3 = vld [vmem:[#allocation27] sm:$0xff] }
0x1284   :  { %4369 = vmatmul.mubr.msk.f32.vlgmr.msra.gmra.mrb[34].mxu0 %vm480_vm0, %v3190_v50 }
0x1285   :  { %3403 = vmatprep.mubr.f32.mxu0 %v7555_v57 }
0x134b   :  { %v3101_v16 = vpop.f32.mrb[28].mxu0  ;;  %v3178_v49 = vpop.f32.mrb[22].mxu1 }
0x134c   :  { %v3103_v9 = vpop.f32.mrb[29].mxu0  ;;  %v3180_v0 = vpop.f32.mrb[23].mxu1 }
0x134f   :  { %v3107_v52 = vpop.f32.mrb[30].mxu0  ;;  %v3184_v53 = vpop.f32.mrb[24].mxu1 }
0x1350   :  { %v4979_v36 = vpack.c.bf16 %v3107_v52, %v3101_v16  ;;  %v4983_v30 = vpack.c.bf16 %v3184_v53, %v3178_v49  ;;  %v3109_v62 = vpop.f32.mrb[31].mxu0  ;;  %v3186_v20 = vpop.f32.mrb[25].mxu1 }
0x1351   :  { %v4977_v41 = vpack.c.bf16 %v3109_v62, %v3103_v9  ;;  %v4981_v34 = vpack.c.bf16 %v3186_v20, %v3180_v0 }
0x1353   :  { %4978 = vmatprep.subr.bf16.mxu0 %v4977_v41 }
0x1354   :  { %4980 = vmatpush1.bf16.msra.mxu0 %v4979_v36 }
0x1355   :  { %4982 = vmatprep.subr.bf16.mxu0 %v4981_v34 }
0x1357   :  { %4370 = vmatmul.mubr.msk.f32.vlgmr.msra.gmra.mrb[32].mxu0 %vm1846_vm11, %v3189_v3 }
0x1358   :  { %4984 = vmatpush1.bf16.msra.mxu0 %v4983_v30  ;;  %3474 = vmatprep.mubr.f32.mxu0 %v7555_v57 }
0x135b   :  { %4371 = vmatmul.mubr.msk.f32.vlgmr.msra.gmra.mrb[34].mxu0 %vm1846_vm11, %v3189_v3 }
0x135c   :  { %3772 = vmatprep.mubr.f32.mxu0 %v7555_v57 }
0x142a   :  { %v3405_v51 = vpop.f32.mrb[32].mxu0 }
0x142b   :  { %v3487_v54 = vadd.f32 %v3485_v19, %v3405_v51  ;;  %v3407_v33 = vpop.f32.mrb[33].mxu0 }
0x142c   :  { %v3488_v18 = vadd.f32 %v3485_v19, %v3407_v33 }
0x142d   :  { %v7029_v31 = vmax.f32 %v3487_v54, 0.0 }
0x142e   :  { %v7031_v38 = vmax.f32 %v3488_v18, 0.0  ;;  %v3476_v42 = vpop.f32.mrb[34].mxu0 }
0x142f   :  { %3495 = vrot.lane.b32.xlu0 %v7029_v31, %s5752_s24  ;;  %v3478_v10 = vpop.f32.mrb[35].mxu0  ;;  %v3489_v44 = vadd.f32 %v3485_v19, %v3476_v42 }
0x1430   :  { %3497 = vrot.lane.b32.xlu1 %v7031_v38, %s5752_s24  ;;  %v3490_v14 = vadd.f32 %v3485_v19, %v3478_v10 }
0x1431   :  { %v7049_v7 = vmax.f32 %v3489_v44, 0.0 }
0x1432   :  { %v7063_v28 = vmax.f32 %v3490_v14, 0.0 }
0x1433   :  { %3511 = vrot.lane.b32.xlu0 %v7029_v31, %s5753_s28 }
0x1434   :  { %3513 = vrot.lane.b32.xlu1 %v7031_v38, %s5753_s28 }
0x1437   :  { %3527 = vrot.lane.b32.xlu0 %v7029_v31, %s5754_s20 }
0x1438   :  { %3529 = vrot.lane.b32.xlu1 %v7031_v38, %s5754_s20 }
0x143b   :  { %3543 = vrot.lane.b32.xlu0 %v7029_v31, %s5755_s1 }
0x143c   :  { %3545 = vrot.lane.b32.xlu1 %v7031_v38, %s5755_s1 }
0x143f   :  { %3563 = vrot.lane.b32.xlu0 %v7029_v31, %s5756_s9 }
0x1440   :  { %3567 = vrot.lane.b32.xlu1 %v7049_v7, %s5756_s9 }
0x1443   :  { %3565 = vrot.lane.b32.xlu0 %v7031_v38, %s5756_s9 }
0x1444   :  { %3583 = vrot.lane.b32.xlu1 %v7049_v7, %s5757_s2 }
0x1447   :  { %3581 = vrot.lane.b32.xlu0 %v7031_v38, %s5757_s2 }
0x1448   :  { %3599 = vrot.lane.b32.xlu1 %v7049_v7, %s5758_s21 }
0x144b   :  { %3597 = vrot.lane.b32.xlu0 %v7031_v38, %s5758_s21 }
0x144c   :  { %3501 = vrot.lane.b32.xlu1 %v7063_v28, %s5752_s24 }
0x144f   :  { %3499 = vrot.lane.b32.xlu0 %v7049_v7, %s5752_s24 }
0x1450   :  { %3517 = vrot.lane.b32.xlu1 %v7063_v28, %s5753_s28 }
0x1453   :  { %3515 = vrot.lane.b32.xlu0 %v7049_v7, %s5753_s28 }
0x1454   :  { %3533 = vrot.lane.b32.xlu1 %v7063_v28, %s5754_s20 }
0x1457   :  { %3531 = vrot.lane.b32.xlu0 %v7049_v7, %s5754_s20 }
0x1458   :  { %3549 = vrot.lane.b32.xlu1 %v7063_v28, %s5755_s1 }
0x145b   :  { %3547 = vrot.lane.b32.xlu0 %v7049_v7, %s5755_s1 }
0x145c   :  { %3569 = vrot.lane.b32.xlu1 %v7063_v28, %s5756_s9 }
0x145f   :  { %3579 = vrot.lane.b32.xlu0 %v7029_v31, %s5757_s2 }
0x1460   :  { %3585 = vrot.lane.b32.xlu1 %v7063_v28, %s5757_s2 }
0x1463   :  { %3595 = vrot.lane.b32.xlu0 %v7029_v31, %s5758_s21 }
0x1464   :  { %3601 = vrot.lane.b32.xlu1 %v7063_v28, %s5758_s21 }
0x1467   :  { %3613 = vrot.lane.b32.xlu0 %v7031_v38, %s5759_s4 }
0x1468   :  { %3615 = vrot.lane.b32.xlu1 %v7049_v7, %s5759_s4 }
0x146b   :  { %3611 = vrot.lane.b32.xlu0 %v7029_v31, %s5759_s4 }
0x146c   :  { %3617 = vrot.lane.b32.xlu1 %v7063_v28, %s5759_s4 }
0x146f   :  { %3631 = vperm.xlu0 %5144, %v3628_v22  }
0x1470   :  { %3786 = vperm.xlu1 %5145, %v3783_v15  }
0x14a1   :  { %v3496_v50 = vpop.permute.xlu0 %3495 }
0x14a2   :  { %v3498_v16 = vpop.permute.xlu1 %3497 }
0x14a3   :  { %v3505_v49 = vsel %vm640_vm1, %v3496_v50, %v3498_v16 }
0x14a4   :  { %v3508_v53 = vmul.f32 %v3505_v49, %v6353_v26 }
0x14a5   :  { %v3512_v9 = vpop.permute.xlu0 %3511 }
0x14a6   :  { %v3514_v0 = vpop.permute.xlu1 %3513 }
0x14a7   :  { %v3521_v52 = vsel %vm679_vm2, %v3512_v9, %v3514_v0 }
0x14a8   :  { %v3524_v36 = vmul.f32 %v3521_v52, %v6270_v61 }
0x14a9   :  { %v3528_v30 = vpop.permute.xlu0 %3527 }
0x14aa   :  { %v3530_v62 = vpop.permute.xlu1 %3529  ;;  %v4985_v20 = vpack.c.bf16 %v3524_v36, %v3508_v53 }
0x14ab   :  { %v3537_v14 = vsel %vm719_vm3, %v3528_v30, %v3530_v62 }
0x14ac   :  { %4986 = vmatprep.subr.bf16.mxu1 %v4985_v20  ;;  %v3540_v53 = vmul.f32 %v3537_v14, %v7558_v8 }
0x14ad   :  { %v3544_v41 = vpop.permute.xlu0 %3543 }
0x14ae   :  { %v3546_v34 = vpop.permute.xlu1 %3545 }
0x14af   :  { %v3553_v10 = vsel %vm759_vm4, %v3544_v41, %v3546_v34 }
0x14b0   :  { %v3556_v22 = vmul.f32 %v3553_v10, %v7559_v13 }
0x14b1   :  { %v7107_v3 = vpop.permute.xlu0 %3563 }
0x14b2   :  { %v3568_v19 = vpop.permute.xlu1 %3567  ;;  %v4989_v57 = vpack.c.bf16 %v3556_v22, %v3540_v53 }
0x14b5   :  { %v3566_v51 = vpop.permute.xlu0 %3565 }
0x14b6   :  { %v7109_v54 = vpop.permute.xlu1 %3583  ;;  %v3573_v22 = vsel %vm826_vm5, %v7107_v3, %v3566_v51 }
0x14b9   :  { %v7111_v33 = vpop.permute.xlu0 %3581 }
0x14ba   :  { %v7113_v18 = vpop.permute.xlu1 %3599 }
0x14bd   :  { %v7115_v42 = vpop.permute.xlu0 %3597 }
0x14be   :  { %v3502_v44 = vpop.permute.xlu1 %3501 }
0x14bf   :  { %v3506_v15 = vsel %vm640_vm1, %v3502_v44, %v3496_v50  ;;  %v3572_v50 = vsel %vm826_vm5, %v3566_v51, %v3568_v19 }
0x14c0   :  { %v3507_v20 = vmul.f32 %v3506_v15, %v6267_v60  ;;  %v3576_v53 = vmul.f32 %v3572_v50, %v6340_v39 }
0x14c1   :  { %v3500_v49 = vpop.permute.xlu0 %3499 }
0x14c2   :  { %v3518_v52 = vpop.permute.xlu1 %3517  ;;  %v3503_v61 = vsel %vm640_vm1, %v3500_v49, %v3502_v44  ;;  %v3504_v26 = vsel %vm640_vm1, %v3498_v16, %v3500_v49 }
0x14c3   :  { %v3522_v36 = vsel %vm679_vm2, %v3518_v52, %v3512_v9  ;;  %v3509_v44 = vmul.f32 %v3504_v26, %v6365_v2  ;;  %v3510_v60 = vmul.f32 %v3503_v61, %v6221_v35  ;;  %v3604_v61 = vsel %vm906_vm7, %v7115_v42, %v7113_v18 }
0x14c4   :  { %v3523_v10 = vmul.f32 %v3522_v36, %v6277_v1  ;;  %v3608_v50 = vmul.f32 %v3604_v61, %v6439_v43 }
0x14c5   :  { %v3516_v13 = vpop.permute.xlu0 %3515 }
0x14c6   :  { %v4987_v59 = vpack.c.bf16 %v3523_v10, %v3507_v20  ;;  %v3519_v14 = vsel %vm679_vm2, %v3516_v13, %v3518_v52  ;;  %v3520_v9 = vsel %vm679_vm2, %v3514_v0, %v3516_v13  ;;  %v3534_v15 = vpop.permute.xlu1 %3533 }
0x14c7   :  { %v3525_v16 = vmul.f32 %v3520_v9, %v6274_v63  ;;  %v3526_v49 = vmul.f32 %v3519_v14, %v7557_v56  ;;  %v3538_v13 = vsel %vm719_vm3, %v3534_v15, %v3528_v30 }
0x14c8   :  { %4988 = vmatpush1.bf16.msra.mxu1 %v4987_v59  ;;  %v3539_v30 = vmul.f32 %v3538_v13, %v6307_v12 }
0x14c9   :  { %v5003_v52 = vpack.c.bf16 %v3525_v16, %v3509_v44  ;;  %v3532_v0 = vpop.permute.xlu0 %3531  ;;  %4990 = vmatprep.subr.bf16.mxu1 %v4989_v57  ;;  %v5001_v26 = vpack.c.bf16 %v3526_v49, %v3510_v60  ;;  %v3560_v57 = vmul.f32 %v7031_v38, %v7563_v4  ;;  %v3575_v60 = vmul.f32 %v3573_v22, %v6337_v37 }
0x14ca   :  { %v3536_v36 = vsel %vm719_vm3, %v3530_v62, %v3532_v0  ;;  %v3550_v20 = vpop.permute.xlu1 %3549  ;;  %v3535_v59 = vsel %vm719_vm3, %v3532_v0, %v3534_v15  ;;  %v3588_v62 = vsel %vm866_vm6, %v7111_v33, %v7109_v54 }
0x14cb   :  { %v3554_v51 = vsel %vm759_vm4, %v3550_v20, %v3544_v41  ;;  %5002 = vmatprep.subr.bf16.mxu0 %v5001_v26  ;;  %v3541_v41 = vmul.f32 %v3536_v36, %v6304_v11  ;;  %v4993_v9 = vpack.c.bf16 %v3576_v53, %v3560_v57  ;;  %v3542_v15 = vmul.f32 %v3535_v59, %v7560_v29 }
0x14cc   :  { %v3555_v10 = vmul.f32 %v3554_v51, %v6325_v25  ;;  %5004 = vmatpush1.bf16.msra.mxu0 %v5003_v52  ;;  %v3559_v26 = vmul.f32 %v7029_v31, %v7562_v48  ;;  %v3592_v36 = vmul.f32 %v3588_v62, %v6369_v5 }
0x14cd   :  { %v3548_v14 = vpop.permute.xlu0 %3547 }
0x14ce   :  { %v4991_v44 = vpack.c.bf16 %v3555_v10, %v3539_v30  ;;  %v3551_v16 = vsel %vm759_vm4, %v3548_v14, %v3550_v20  ;;  %v3552_v49 = vsel %vm759_vm4, %v3546_v34, %v3548_v14  ;;  %v3570_v22 = vpop.permute.xlu1 %3569  ;;  %v3562_v34 = vmul.f32 %v7063_v28, %v7565_v47 }
0x14cf   :  { %v3557_v52 = vmul.f32 %v3552_v49, %v6321_v21  ;;  %v3558_v13 = vmul.f32 %v3551_v16, %v7561_v55  ;;  %v3571_v0 = vsel %vm826_vm5, %v3568_v19, %v3570_v22  ;;  %v3574_v53 = vsel %vm826_vm5, %v3570_v22, %v7107_v3 }
0x14d0   :  { %v3578_v61 = vmul.f32 %v3574_v53, %v6349_v32  ;;  %4992 = vmatpush1.bf16.msra.mxu1 %v4991_v44  ;;  %v4995_v19 = vpack.c.bf16 %v3575_v60, %v3559_v26  ;;  %v3577_v57 = vmul.f32 %v3571_v0, %v6346_v45  ;;  %v4997_v10 = vpack.c.bf16 %v3608_v50, %v3592_v36  ;;  %v7586_v36 = vld [vmem:[#allocation94_spill] sm:$0xff] }
0x14d1   :  { %v5007_v20 = vpack.c.bf16 %v3557_v52, %v3541_v41  ;;  %v3580_v59 = vpop.permute.xlu0 %3579  ;;  %4994 = vmatprep.subr.bf16.mxu1 %v4993_v9  ;;  %v5005_v51 = vpack.c.bf16 %v3558_v13, %v3542_v15  ;;  %v3561_v14 = vmul.f32 %v7049_v7, %v7564_v40 }
0x14d2   :  { %v3586_v30 = vpop.permute.xlu1 %3585  ;;  %v5009_v3 = vpack.c.bf16 %v3578_v61, %v3562_v34  ;;  %v3589_v44 = vsel %vm866_vm6, %v3580_v59, %v7111_v33 }
0x14d3   :  { %5006 = vmatprep.subr.bf16.mxu0 %v5005_v51  ;;  %v3587_v62 = vsel %vm866_vm6, %v7109_v54, %v3586_v30  ;;  %v3590_v60 = vsel %vm866_vm6, %v3586_v30, %v3580_v59  ;;  %v5011_v50 = vpack.c.bf16 %v3577_v57, %v3561_v14  ;;  %v3591_v33 = vmul.f32 %v3589_v44, %v6458_v46  ;;  %v7587_v57 = vld [vmem:[#allocation96_spill] sm:$0xff]  ;;  %v7588_v44 = vld [vmem:[#allocation93_spill] sm:$0xff] }
0x14d4   :  { %4996 = vmatpush1.bf16.msra.mxu1 %v4995_v19  ;;  %5008 = vmatpush1.bf16.msra.mxu0 %v5007_v20  ;;  %v3593_v22 = vmul.f32 %v3587_v62, %v6375_v58  ;;  %v3594_v52 = vmul.f32 %v3590_v60, %v6431_v6  ;;  %v3627_v14 = vld [vmem:[#allocation28] sm:$0xff]  ;;  %v7589_v60 = vld [vmem:[#allocation95_spill] sm:$0xff] }
0x14d5   :  { %v3596_v41 = vpop.permute.xlu0 %3595  ;;  %4998 = vmatprep.subr.bf16.mxu1 %v4997_v10  ;;  %5010 = vmatprep.subr.bf16.mxu0 %v5009_v3 }
0x14d6   :  { %v3605_v9 = vsel %vm906_vm7, %v3596_v41, %v7115_v42  ;;  %v3602_v15 = vpop.permute.xlu1 %3601 }
0x14d7   :  { %v3607_v16 = vmul.f32 %v3605_v9, %v6436_v17  ;;  %v3603_v54 = vsel %vm906_vm7, %v7113_v18, %v3602_v15  ;;  %v3606_v49 = vsel %vm906_vm7, %v3602_v15, %v3596_v41 }
0x14d8   :  { %v3609_v13 = vmul.f32 %v3603_v54, %v6450_v23  ;;  %v3610_v42 = vmul.f32 %v3606_v49, %v6453_v24  ;;  %5012 = vmatpush1.bf16.msra.mxu0 %v5011_v50  ;;  %v7590_v50 = vmov 0.0  }
0x14d9   :  { %v4999_v0 = vpack.c.bf16 %v3607_v16, %v3591_v33  ;;  %v3614_v53 = vpop.permute.xlu0 %3613 }
0x14da   :  { %v5015_v26 = vpack.c.bf16 %v3609_v13, %v3593_v22  ;;  %v3616_v61 = vpop.permute.xlu1 %3615  ;;  %v5013_v34 = vpack.c.bf16 %v3610_v42, %v3594_v52 }
0x14db   :  { %v3620_v18 = vsel %vm946_vm8, %v3614_v53, %v3616_v61  ;;  %5000 = vmatpush1.bf16.msra.mxu1 %v4999_v0 }
0x14dc   :  { %v3624_v20 = vmul.f32 %v3620_v18, %v7586_v36  ;;  %5014 = vmatprep.subr.bf16.mxu0 %v5013_v34 }
0x14dd   :  { %v3612_v59 = vpop.permute.xlu0 %3611  ;;  %5016 = vmatpush1.bf16.msra.mxu0 %v5015_v26 }
0x14de   :  { %v3621_v51 = vsel %vm946_vm8, %v3612_v59, %v3614_v53  ;;  %3653 = vmatprep.subr.mxu1 %v3624_v20  ;;  %v3618_v19 = vpop.permute.xlu1 %3617 }
0x14df   :  { %v3623_v30 = vmul.f32 %v3621_v51, %v7587_v57  ;;  %v3619_v3 = vsel %vm946_vm8, %v3616_v61, %v3618_v19  ;;  %v3622_v10 = vsel %vm946_vm8, %v3618_v19, %v3612_v59  ;;  %v4085_v19 = vld [vmem:[#allocation16] sm:$0xff] }
0x14e0   :  { %v3625_v62 = vmul.f32 %v3619_v3, %v7588_v44  ;;  %v3626_v41 = vmul.f32 %v3622_v10, %v7589_v60 }
0x14e1   :  { %3654 = vmatpush1.msra.mxu1 %v3623_v30  ;;  %v4100_v30 = vld [vmem:[#allocation21] sm:$0xff] }
0x14e2   :  { %4372 = vmatmul.mubr.msk.f32.vlgmr.msra.gmra.mrb[26].mxu1 %vm985_vm9, %v3627_v14  ;;  %3724 = vmatprep.subr.mxu0 %v3626_v41 }
0x14e3   :  { %3725 = vmatpush1.msra.mxu0 %v3625_v62  ;;  %4003 = vmatprep.mubr.f32.mxu1 %v7590_v50 }
0x14e4   :  { %4373 = vmatmul.mubr.msk.f32.vlgmr.msra.gmra.mrb[36].mxu0 %vm985_vm9, %v3627_v14 }
0x14e5   :  { %4074 = vmatprep.mubr.f32.mxu0 %v7590_v50 }
0x14ee   :  { %v3632_v9 = vpop.permute.xlu0 %3631 }
0x14ef   :  { %v3787_v13 = vpop.permute.xlu1 %3786 }
0x15b5   :  { %v3703_v15 = vpop.f32.mrb[26].mxu1 }
0x15b6   :  { %v3704_v33 = vadd.f32 %v3703_v15, %v3632_v9  ;;  %v3705_v16 = vpop.f32.mrb[27].mxu1  ;;  %v7591_v15 = vld [vmem:[#allocation92_spill] sm:$0xff] }
0x15b7   :  { %v3706_v54 = vadd.f32 %v3705_v16, %v3632_v9  ;;  %v3774_v49 = vpop.f32.mrb[36].mxu0  ;;  %v7592_v16 = vld [vmem:[#allocation87_spill] sm:$0xff] }
0x15b8   :  { %v3779_v22 = vmax.f32 %v3704_v33, 0.0  ;;  %v3776_v52 = vpop.f32.mrb[37].mxu0  ;;  %v3775_v0 = vadd.f32 %v3774_v49, %v3632_v9 }
0x15b9   :  { %v3780_v42 = vmax.f32 %v3706_v54, 0.0 }
0x15ba   :  { %v3789_v53 = vmul.f32 %v3787_v13, %v3779_v22  ;;  %v3781_v18 = vmax.f32 %v3775_v0, 0.0 }
0x15bb   :  { %v3790_v26 = vmul.f32 %v3787_v13, %v3780_v42 }
0x15bc   :  { %v7230_v61 = vadd.f32 %v3789_v53, %v7029_v31  ;;  %v3791_v20 = vmul.f32 %v3787_v13, %v3781_v18 }
0x15bd   :  { %v7233_v34 = vadd.f32 %v3790_v26, %v7031_v38  ;;  %v3777_v38 = vadd.f32 %v3776_v52, %v3632_v9 }
0x15be   :  { %3797 = vrot.lane.b32.xlu0 %v7230_v61, %s5752_s24  ;;  %v7244_v31 = vadd.f32 %v3791_v20, %v7049_v7  ;;  %v7334_v57 = vmul.f32 %v7230_v61, %v7562_v48 }
0x15bf   :  { %3799 = vrot.lane.b32.xlu1 %v7233_v34, %s5752_s24  ;;  %v3782_v7 = vmax.f32 %v3777_v38, 0.0 }
0x15c1   :  { %v3792_v59 = vmul.f32 %v3787_v13, %v3782_v7 }
0x15c2   :  { %3813 = vrot.lane.b32.xlu0 %v7230_v61, %s5753_s28 }
0x15c3   :  { %3815 = vrot.lane.b32.xlu1 %v7233_v34, %s5753_s28  ;;  %v7275_v51 = vadd.f32 %v3792_v59, %v7063_v28  ;;  %v3930_v28 = vld [vmem:[#allocation19] sm:$0xff] }
0x15c6   :  { %3829 = vrot.lane.b32.xlu0 %v7230_v61, %s5754_s20 }
0x15c7   :  { %3817 = vrot.lane.b32.xlu1 %v7244_v31, %s5753_s28 }
0x15ca   :  { %3845 = vrot.lane.b32.xlu0 %v7230_v61, %s5755_s1 }
0x15cb   :  { %3831 = vrot.lane.b32.xlu1 %v7233_v34, %s5754_s20 }
0x15ce   :  { %3865 = vrot.lane.b32.xlu0 %v7230_v61, %s5756_s9 }
0x15cf   :  { %3847 = vrot.lane.b32.xlu1 %v7233_v34, %s5755_s1 }
0x15d2   :  { %3801 = vrot.lane.b32.xlu0 %v7244_v31, %s5752_s24 }
0x15d3   :  { %3849 = vrot.lane.b32.xlu1 %v7244_v31, %s5755_s1 }
0x15d6   :  { %3833 = vrot.lane.b32.xlu0 %v7244_v31, %s5754_s20 }
0x15d7   :  { %3869 = vrot.lane.b32.xlu1 %v7244_v31, %s5756_s9 }
0x15da   :  { %3867 = vrot.lane.b32.xlu0 %v7233_v34, %s5756_s9 }
0x15db   :  { %3885 = vrot.lane.b32.xlu1 %v7244_v31, %s5757_s2 }
0x15de   :  { %3883 = vrot.lane.b32.xlu0 %v7233_v34, %s5757_s2 }
0x15df   :  { %3901 = vrot.lane.b32.xlu1 %v7244_v31, %s5758_s21 }
0x15e2   :  { %3899 = vrot.lane.b32.xlu0 %v7233_v34, %s5758_s21 }
0x15e3   :  { %3819 = vrot.lane.b32.xlu1 %v7275_v51, %s5753_s28 }
0x15e6   :  { %3803 = vrot.lane.b32.xlu0 %v7275_v51, %s5752_s24 }
0x15e7   :  { %3851 = vrot.lane.b32.xlu1 %v7275_v51, %s5755_s1 }
0x15ea   :  { %3835 = vrot.lane.b32.xlu0 %v7275_v51, %s5754_s20 }
0x15eb   :  { %3897 = vrot.lane.b32.xlu1 %v7230_v61, %s5758_s21 }
0x15ee   :  { %3881 = vrot.lane.b32.xlu0 %v7230_v61, %s5757_s2 }
0x15ef   :  { %3871 = vrot.lane.b32.xlu1 %v7275_v51, %s5756_s9 }
0x15f2   :  { %3915 = vrot.lane.b32.xlu0 %v7233_v34, %s5759_s4 }
0x15f3   :  { %3903 = vrot.lane.b32.xlu1 %v7275_v51, %s5758_s21 }
0x15f6   :  { %3887 = vrot.lane.b32.xlu0 %v7275_v51, %s5757_s2 }
0x15f7   :  { %3917 = vrot.lane.b32.xlu1 %v7244_v31, %s5759_s4 }
0x15fa   :  { %3913 = vrot.lane.b32.xlu0 %v7230_v61, %s5759_s4 }
0x15fb   :  { %3919 = vrot.lane.b32.xlu1 %v7275_v51, %s5759_s4 }
0x15fe   :  { %3933 = vperm.xlu0 %5144, %v3930_v28  }
0x15ff   :  { %4088 = vperm.xlu1 %5145, %v4085_v19  }
0x1602   :  { %4103 = vperm.xlu0 %5144, %v4100_v30  }
0x1630   :  { %v3798_v3 = vpop.permute.xlu0 %3797 }
0x1631   :  { %v3800_v10 = vpop.permute.xlu1 %3799 }
0x1632   :  { %v3807_v14 = vsel %vm640_vm1, %v3798_v3, %v3800_v10 }
0x1633   :  { %v3810_v33 = vmul.f32 %v3807_v14, %v7591_v15 }
0x1634   :  { %v3814_v62 = vpop.permute.xlu0 %3813 }
0x1635   :  { %v3816_v41 = vpop.permute.xlu1 %3815 }
0x1636   :  { %v3823_v9 = vsel %vm679_vm2, %v3814_v62, %v3816_v41 }
0x1637   :  { %v3826_v54 = vmul.f32 %v3823_v9, %v7592_v16  ;;  %v7593_v9 = vld [vmem:[#allocation90_spill] sm:$0xff] }
0x1638   :  { %v3830_v49 = vpop.permute.xlu0 %3829 }
0x1639   :  { %v3818_v22 = vpop.permute.xlu1 %3817  ;;  %v5017_v52 = vpack.c.bf16 %v3826_v54, %v3810_v33 }
0x163a   :  { %v3822_v54 = vsel %vm679_vm2, %v3816_v41, %v3818_v22 }
0x163b   :  { %5018 = vmatprep.subr.bf16.mxu1 %v5017_v52 }
0x163c   :  { %v3846_v13 = vpop.permute.xlu0 %3845 }
0x163d   :  { %v3832_v42 = vpop.permute.xlu1 %3831 }
0x163e   :  { %v3839_v14 = vsel %vm719_vm3, %v3830_v49, %v3832_v42 }
0x163f   :  { %v3842_v50 = vmul.f32 %v3839_v14, %v7558_v8  ;;  %v3862_v8 = vmul.f32 %v7233_v34, %v7563_v4  ;;  %v7594_v14 = vld [vmem:[#allocation86_spill] sm:$0xff] }
0x1640   :  { %v7311_v0 = vpop.permute.xlu0 %3865 }
0x1641   :  { %v3848_v53 = vpop.permute.xlu1 %3847 }
0x1642   :  { %v3855_v19 = vsel %vm759_vm4, %v3846_v13, %v3848_v53 }
0x1643   :  { %v3858_v15 = vmul.f32 %v3855_v19, %v7593_v9 }
0x1644   :  { %v3802_v26 = vpop.permute.xlu0 %3801 }
0x1645   :  { %v3850_v18 = vpop.permute.xlu1 %3849  ;;  %v3806_v33 = vsel %vm640_vm1, %v3800_v10, %v3802_v26  ;;  %v3827_v10 = vmul.f32 %v3822_v54, %v6274_v63  ;;  %v5021_v36 = vpack.c.bf16 %v3858_v15, %v3842_v50 }
0x1646   :  { %v3811_v60 = vmul.f32 %v3806_v33, %v6365_v2 }
0x1648   :  { %v3834_v20 = vpop.permute.xlu0 %3833  ;;  %v5035_v33 = vpack.c.bf16 %v3827_v10, %v3811_v60 }
0x1649   :  { %v7313_v38 = vpop.permute.xlu1 %3869  ;;  %v3838_v41 = vsel %vm719_vm3, %v3832_v42, %v3834_v20 }
0x164c   :  { %v3868_v7 = vpop.permute.xlu0 %3867 }
0x164d   :  { %v7315_v59 = vpop.permute.xlu1 %3885  ;;  %v3874_v2 = vsel %vm826_vm5, %v3868_v7, %v7313_v38 }
0x1650   :  { %v3884_v28 = vpop.permute.xlu0 %3883 }
0x1651   :  { %v7319_v30 = vpop.permute.xlu1 %3901 }
0x1654   :  { %v3900_v16 = vpop.permute.xlu0 %3899 }
0x1655   :  { %v3820_v52 = vpop.permute.xlu1 %3819  ;;  %v3906_v60 = vsel %vm906_vm7, %v3900_v16, %v7319_v30 }
0x1656   :  { %v3824_v44 = vsel %vm679_vm2, %v3820_v52, %v3814_v62  ;;  %v3821_v19 = vsel %vm679_vm2, %v3818_v22, %v3820_v52 }
0x1657   :  { %v3825_v48 = vmul.f32 %v3824_v44, %v6277_v1  ;;  %v3828_v42 = vmul.f32 %v3821_v19, %v7557_v56  ;;  %v3854_v1 = vsel %vm759_vm4, %v3848_v53, %v3850_v18  ;;  %v3843_v44 = vmul.f32 %v3838_v41, %v6304_v11 }
0x1658   :  { %v3804_v9 = vpop.permute.xlu0 %3803  ;;  %v3875_v56 = vsel %vm826_vm5, %v7311_v0, %v3868_v7  ;;  %v3859_v10 = vmul.f32 %v3854_v1, %v6321_v21  ;;  %v3910_v21 = vmul.f32 %v3906_v60, %v6439_v43  ;;  %v7597_v60 = vld [vmem:[#allocation95_spill] sm:$0xff] }
0x1659   :  { %v3805_v62 = vsel %vm640_vm1, %v3802_v26, %v3804_v9  ;;  %v3808_v63 = vsel %vm640_vm1, %v3804_v9, %v3798_v3  ;;  %v3852_v22 = vpop.permute.xlu1 %3851  ;;  %v3878_v3 = vmul.f32 %v3874_v2, %v6340_v39 }
0x165a   :  { %v3809_v50 = vmul.f32 %v3808_v63, %v7594_v14  ;;  %v3812_v15 = vmul.f32 %v3805_v62, %v6221_v35  ;;  %v3856_v4 = vsel %vm759_vm4, %v3852_v22, %v3846_v13  ;;  %v3853_v26 = vsel %vm759_vm4, %v3850_v18, %v3852_v22 }
0x165b   :  { %v3857_v13 = vmul.f32 %v3856_v4, %v6325_v25  ;;  %v3860_v7 = vmul.f32 %v3853_v26, %v7561_v55  ;;  %v3890_v25 = vsel %vm866_vm6, %v3884_v28, %v7315_v59  ;;  %v5039_v9 = vpack.c.bf16 %v3859_v10, %v3843_v44  ;;  %v7595_v44 = vld [vmem:[#allocation94_spill] sm:$0xff] }
0x165c   :  { %v5019_v54 = vpack.c.bf16 %v3825_v48, %v3809_v50  ;;  %v3836_v35 = vpop.permute.xlu0 %3835  ;;  %v5033_v52 = vpack.c.bf16 %v3828_v42, %v3812_v15  ;;  %v3894_v62 = vmul.f32 %v3890_v25, %v6369_v5 }
0x165d   :  { %v3837_v11 = vsel %vm719_vm3, %v3834_v20, %v3836_v35  ;;  %v3840_v53 = vsel %vm719_vm3, %v3836_v35, %v3830_v49  ;;  %v3898_v18 = vpop.permute.xlu1 %3897  ;;  %v3863_v49 = vmul.f32 %v7244_v31, %v7564_v40  ;;  %v3877_v20 = vmul.f32 %v3875_v56, %v6337_v37  ;;  %v7596_v35 = vld [vmem:[#allocation96_spill] sm:$0xff] }
0x165e   :  { %v3841_v39 = vmul.f32 %v3840_v53, %v6307_v12  ;;  %v3844_v19 = vmul.f32 %v3837_v11, %v7560_v29  ;;  %5020 = vmatpush1.bf16.msra.mxu1 %v5019_v54  ;;  %5034 = vmatprep.subr.bf16.mxu0 %v5033_v52  ;;  %v3864_v29 = vmul.f32 %v7275_v51, %v7565_v47  ;;  %v3929_v52 = vld [vmem:[#allocation30] sm:$0xff] }
0x165f   :  { %5022 = vmatprep.subr.bf16.mxu1 %v5021_v36  ;;  %5036 = vmatpush1.bf16.msra.mxu0 %v5035_v33  ;;  %v5025_v36 = vpack.c.bf16 %v3878_v3, %v3862_v8  ;;  %v3907_v43 = vsel %vm906_vm7, %v3898_v18, %v3900_v16  ;;  %v5027_v5 = vpack.c.bf16 %v3877_v20, %v7334_v57  ;;  %v7598_v11 = vld [vmem:[#allocation93_spill] sm:$0xff] }
0x1660   :  { %v5023_v55 = vpack.c.bf16 %v3857_v13, %v3841_v39  ;;  %v3882_v41 = vpop.permute.xlu0 %3881  ;;  %v5037_v12 = vpack.c.bf16 %v3860_v7, %v3844_v19  ;;  %v5029_v42 = vpack.c.bf16 %v3910_v21, %v3894_v62  ;;  %v3909_v14 = vmul.f32 %v3907_v43, %v6436_v17  ;;  %v4099_v43 = vld [vmem:[#allocation22] sm:$0xff] }
0x1661   :  { %v3891_v2 = vsel %vm866_vm6, %v3882_v41, %v3884_v28  ;;  %v3872_v48 = vpop.permute.xlu1 %3871 }
0x1662   :  { %v3873_v37 = vsel %vm826_vm5, %v7313_v38, %v3872_v48  ;;  %v3876_v40 = vsel %vm826_vm5, %v3872_v48, %v7311_v0  ;;  %5024 = vmatpush1.bf16.msra.mxu1 %v5023_v55  ;;  %5038 = vmatprep.subr.bf16.mxu0 %v5037_v12  ;;  %v3893_v8 = vmul.f32 %v3891_v2, %v6458_v46 }
0x1663   :  { %v3879_v47 = vmul.f32 %v3873_v37, %v6346_v45  ;;  %v3880_v28 = vmul.f32 %v3876_v40, %v6349_v32  ;;  %5026 = vmatprep.subr.bf16.mxu1 %v5025_v36  ;;  %5040 = vmatpush1.bf16.msra.mxu0 %v5039_v9 }
0x1664   :  { %v3916_v38 = vpop.permute.xlu0 %3915  ;;  %v5031_v32 = vpack.c.bf16 %v3909_v14, %v3893_v8 }
0x1665   :  { %v5043_v63 = vpack.c.bf16 %v3879_v47, %v3863_v49  ;;  %v3904_v22 = vpop.permute.xlu1 %3903  ;;  %v5041_v0 = vpack.c.bf16 %v3880_v28, %v3864_v29 }
0x1666   :  { %v3905_v16 = vsel %vm906_vm7, %v7319_v30, %v3904_v22  ;;  %5028 = vmatpush1.bf16.msra.mxu1 %v5027_v5  ;;  %v3908_v45 = vsel %vm906_vm7, %v3904_v22, %v3898_v18  ;;  %v7599_v18 = vmov 0.0  }
0x1667   :  { %5030 = vmatprep.subr.bf16.mxu1 %v5029_v42  ;;  %5042 = vmatprep.subr.bf16.mxu0 %v5041_v0  ;;  %v3911_v46 = vmul.f32 %v3905_v16, %v6450_v23  ;;  %v3912_v30 = vmul.f32 %v3908_v45, %v6453_v24 }
0x1668   :  { %v3888_v57 = vpop.permute.xlu0 %3887  ;;  %5044 = vmatpush1.bf16.msra.mxu0 %v5043_v63 }
0x1669   :  { %v3889_v50 = vsel %vm866_vm6, %v7315_v59, %v3888_v57  ;;  %v3892_v17 = vsel %vm866_vm6, %v3888_v57, %v3882_v41  ;;  %v3918_v15 = vpop.permute.xlu1 %3917 }
0x166a   :  { %v3895_v4 = vmul.f32 %v3889_v50, %v6375_v58  ;;  %v3896_v33 = vmul.f32 %v3892_v17, %v6431_v6  ;;  %v3922_v1 = vsel %vm946_vm8, %v3916_v38, %v3918_v15  ;;  %5032 = vmatpush1.bf16.msra.mxu1 %v5031_v32 }
0x166b   :  { %v3926_v23 = vmul.f32 %v3922_v1, %v7595_v44 }
0x166c   :  { %v5047_v26 = vpack.c.bf16 %v3911_v46, %v3895_v4  ;;  %v3914_v56 = vpop.permute.xlu0 %3913  ;;  %v5045_v3 = vpack.c.bf16 %v3912_v30, %v3896_v33 }
0x166d   :  { %v3923_v59 = vsel %vm946_vm8, %v3914_v56, %v3916_v38  ;;  %v3920_v54 = vpop.permute.xlu1 %3919  ;;  %3955 = vmatprep.subr.mxu1 %v3926_v23 }
0x166e   :  { %v3925_v24 = vmul.f32 %v3923_v59, %v7596_v35  ;;  %v3921_v58 = vsel %vm946_vm8, %v3918_v15, %v3920_v54  ;;  %v3924_v6 = vsel %vm946_vm8, %v3920_v54, %v3914_v56  ;;  %5046 = vmatprep.subr.bf16.mxu0 %v5045_v3 }
0x166f   :  { %v3928_v13 = vmul.f32 %v3924_v6, %v7597_v60  ;;  %5048 = vmatpush1.bf16.msra.mxu0 %v5047_v26  ;;  %v3927_v53 = vmul.f32 %v3921_v58, %v7598_v11 }
0x1670   :  { %3956 = vmatpush1.msra.mxu1 %v3925_v24 }
0x1671   :  { %4374 = vmatmul.mubr.msk.f32.vlgmr.msra.gmra.mrb[28].mxu1 %vm985_vm9, %v3929_v52  ;;  %4026 = vmatprep.subr.mxu0 %v3928_v13 }
0x1672   :  { %4173 = vmatprep.mubr.f32.mxu1 %v7599_v18 }
0x1673   :  { %4027 = vmatpush1.msra.mxu0 %v3927_v53 }
0x1674   :  { %4375 = vmatmul.mubr.msk.f32.vlgmr.msra.gmra.mrb[38].mxu0 %vm985_vm9, %v3929_v52 }
0x167d   :  { %v3934_v7 = vpop.permute.xlu0 %3933 }
0x167e   :  { %v4089_v20 = vpop.permute.xlu1 %4088 }
0x1744   :  { %v4005_v39 = vpop.f32.mrb[28].mxu1 }
0x1745   :  { %v4006_v27 = vadd.f32 %v4005_v39, %v3934_v7  ;;  %v4007_v19 = vpop.f32.mrb[29].mxu1 }
0x1746   :  { %v4008_v10 = vadd.f32 %v4007_v19, %v3934_v7 }
0x1747   :  { %v4081_v25 = vmax.f32 %v4006_v27, 0.0  ;;  %v4076_v49 = vpop.f32.mrb[38].mxu0 }
0x1748   :  { %v4082_v55 = vmax.f32 %v4008_v10, 0.0  ;;  %v4077_v41 = vadd.f32 %v4076_v49, %v3934_v7  ;;  %v4078_v12 = vpop.f32.mrb[39].mxu0 }
0x1749   :  { %v4091_v29 = vmul.f32 %v4089_v20, %v4081_v25  ;;  %v4079_v9 = vadd.f32 %v4078_v12, %v3934_v7 }
0x174a   :  { %v4092_v21 = vmul.f32 %v4089_v20, %v4082_v55  ;;  %v4083_v2 = vmax.f32 %v4077_v41, 0.0 }
0x174b   :  { %v4084_v48 = vmax.f32 %v4079_v9, 0.0  ;;  %v4095_v37 = vadd.f32 %v4091_v29, %v7230_v61  ;;  %v4104_v61 = vpop.permute.xlu0 %4103 }
0x174c   :  { %v4093_v36 = vmul.f32 %v4089_v20, %v4083_v2  ;;  %v4096_v62 = vadd.f32 %v4092_v21, %v7233_v34 }
0x174d   :  { %v4094_v40 = vmul.f32 %v4089_v20, %v4084_v48 }
0x174e   :  { %4109 = vmatprep.subr.mxu1 %v4096_v62  ;;  %v4097_v28 = vadd.f32 %v4093_v36, %v7244_v31 }
0x174f   :  { %4110 = vmatpush1.msra.mxu1 %v4095_v37  ;;  %v4098_v47 = vadd.f32 %v4094_v40, %v7275_v51 }
0x1750   :  { %4376 = vmatmul.mubr.msk.f32.vlgmr.msra.gmra.mrb[30].mxu1 %vm480_vm0, %v4099_v43 }
0x1751   :  { %4180 = vmatprep.subr.mxu1 %v4098_v47  ;;  %4244 = vmatprep.mubr.f32.mxu1 %v7599_v18 }
0x1752   :  { %4181 = vmatpush1.msra.mxu1 %v4097_v28 }
0x1754   :  { %4377 = vmatmul.mubr.msk.f32.vlgmr.msra.gmra.mrb[32].mxu1 %vm480_vm0, %v4099_v43 }
0x1823   :  { %v4175_v34 = vpop.f32.mrb[30].mxu1 }
0x1824   :  { %v4176_v5 = vadd.f32 %v4175_v34, %v4104_v61  ;;  %v4177_v8 = vpop.f32.mrb[31].mxu1 }
0x1825   :  { %v4178_v38 = vadd.f32 %v4177_v8, %v4104_v61 }
0x1826   :  { %4251 = vst [vmem:[%s6020_s12] sm:$0xff] %v4176_v5 }
0x1827   :  { %4252 = vst [vmem:[%s6020_s12 + $0x8] sm:$0xff] %v4178_v38  ;;  %v4246_v51 = vpop.f32.mrb[32].mxu1 }
0x1828   :  { %v4247_v63 = vadd.f32 %v4246_v51, %v4104_v61  ;;  %v4248_v31 = vpop.f32.mrb[33].mxu1 }
0x1829   :  { %v4249_v22 = vadd.f32 %v4248_v31, %v4104_v61 }
0x182a   :  { %4253 = vst [vmem:[%s6020_s12 + $0x10] sm:$0xff] %v4247_v63 }
0x182b   :  { %4254 = vst [vmem:[%s6020_s12 + $0x18] sm:$0xff] %v4249_v22 }
0x182c   :  { %4259 = vsyncpa [#allocation3], 1 }
0x182d   :  { %4260 = vsyncpa [#allocation5], 1 }
0x182e   :  { %4261 = vsyncpa [#allocation8], 1 }
0x182f   :  { %4262 = vsyncpa [#allocation11], 1 }
0x1830   :  { %4263 = vsyncpa [#allocation14], 1 }
0x1831   :  { %4264 = vsyncpa [#allocation17], 1 }
0x1832   :  { %4265 = vsyncpa [#allocation20], 1 }
0x1833   :  { %4266 = vsyncpa [#allocation23], 1 }
0x1834   :  { %4267 = vsyncpa [#allocation26], 1 }
0x1835   :  { %4268 = vsyncpa [#allocation29], 1 }
0x1836   :  { %4269 = vsyncpa [#allocation32], 1 }
0x1837   :  { %4270 = vsyncpa [#allocation35], 1 }

</bundles_post_ra>
